<compile_context>
chip_gen: v5e
topology: v5e:2x2
jax: 0.10.0
libtpu: 0.0.40
codegen_flags: <defaults>
</compile_context>

<pallas_src>
import jax
import jax.numpy as jnp
from jax.experimental import pallas as pl
from jax.experimental.pallas import tpu as pltpu

# ---------------- model hyper-parameters (SearchPredictModel.__init__) -------
ALL_USERS_NUM = 10
ALL_FEATURES_NUM = 50          # vocab size; padding_idx == ALL_FEATURES_NUM
INPUT_DIM = 16
HIDDEN_DIM = 32
MULTI_HEAD = 4
PREDICT_HIDDEN_WIDTH = (64, 32)
OUTPUT_DIM = 1
ITEM_NUM = 8                   # (default 15; smaller for the test shapes)
USE_LABEL = False
LEAKY_SLOPE = 0.01             # nn.LeakyReLU default negative_slope


def _ceil_to(n, m):
    return ((n + m - 1) // m) * m


def _whole_spec(a):
    """BlockSpec covering the full array at every grid step (weights)."""
    nd = a.ndim
    return pl.BlockSpec(a.shape, lambda i, nd=nd: (0,) * nd)


# ============================ Pallas kernels =================================

def rnn_lastk_kernel(x_ref, wx_ref, wh_ref, b_ref, wt_ref, bt_ref, out_ref):
    """Time-aware RNN over T steps for a tile of independent rows.

    x_ref:   (tN, T, Din+1) f32; last channel is the per-step time delta.
    wx_ref:  (Din, H) bf16, wh_ref: (H, H) bf16
    b_ref, wt_ref, bt_ref: (1, H) f32
    out_ref: (tN, n_out, H) f32 -- only the last n_out hidden states are kept.

    # TODO(synk): TimeAwareRNN / SimpleRNN cell definitions are not present in
    # the reference source; a standard exponential time-decay tanh-RNN cell is
    # implemented:  h_t = tanh(x_t Wx + b + (h_{t-1} * exp(-relu(dt*wt+bt))) Wh)
    """
    tN, T, Dp1 = x_ref.shape
    Din = Dp1 - 1
    n_out = out_ref.shape[1]

    x = x_ref[...]                                   # (tN, T, Din+1)
    dt = x[..., Din:]                                # (tN, T, 1)
    wh = wh_ref[...]
    b = b_ref[...]

    # Hoisted out of the serial recurrence: the per-step time decay (EUP exp)
    # and the input projections (MXU) depend only on the inputs, so the
    # loop-carried chain is just mul + matmul + tanh.
    decay = jnp.exp(-jnp.maximum(dt * wt_ref[...] + bt_ref[...], 0.0))  # (tN,T,H)
    xw = [jnp.dot(x[:, t, :Din].astype(jnp.bfloat16), wx_ref[...],
                  preferred_element_type=jnp.float32) + b
          for t in range(T)]

    h = jnp.zeros((tN, wh.shape[1]), jnp.float32)
    for t in range(T):                               # static full unroll
        h = jnp.tanh(
            xw[t]
            + jnp.dot((h * decay[:, t, :]).astype(jnp.bfloat16), wh,
                      preferred_element_type=jnp.float32))
        if t >= T - n_out:                           # emit only the needed states
            out_ref[:, t - (T - n_out), :] = h


def head_kernel(h_ref, xself_ref, hcont_ref,
                wvaT_ref, wvb_ref, bv_ref,
                w1_self_ref, w1_h0_ref, w1_att_ref, w1_cont_ref, b1_ref,
                w2_ref, b2_ref, wp_ref, bp_ref, out_ref):
    """Multi-head session attention + MLP + sigmoid for a tile of bB rows.

    h_ref:      (bB, S, H) f32   per-session RNN final states
    xself_ref:  (bB, D)  f32     self-item embedding
    hcont_ref:  (bB, H)  f32     continuous-behaviour RNN state
    wvaT_ref:   (MH, H)  bf16    v1 weight rows acting on h (transposed)
    wvb_ref:    (H, MH)  bf16    v1 weight rows acting on h[:, 0, :]
    bv_ref:     (MH, 1)  f32
    w1_att_ref: (MH*H, P0) bf16  (flat, torch head order)
    out_ref:    (bB, 1)  f32
    """
    h = h_ref[...]                                    # (bB, S, H)
    bB, S, H = h.shape
    MH = wvaT_ref.shape[0]
    h0 = h[:, 0, :]                                   # (bB, H)
    h_bf = h.astype(jnp.bfloat16)
    h0_bf = h0.astype(jnp.bfloat16)

    # Attention scores, lane-dense over S: (bB, MH, S).  The small (bB,MH,H)
    # weight broadcast is hoisted once; it lets both einsums use the batched
    # contract-last-dim pattern the MXU lowers well (same as flash attention).
    wva_b = jnp.broadcast_to(wvaT_ref[...][None], (bB, MH, H))
    s_bms = (jnp.einsum('bmh,bsh->bms', wva_b, h_bf,
                        preferred_element_type=jnp.float32)
             + jnp.dot(h0_bf, wvb_ref[...],
                       preferred_element_type=jnp.float32)[:, :, None]
             + bv_ref[...])                           # (bB, MH, S)

    # softmax over sessions; tanh is bounded in [-1,1] so exp cannot overflow
    # and the usual max-subtraction is skipped.
    e = jnp.exp(jnp.tanh(s_bms))
    a_bms = e * pl.reciprocal(jnp.sum(e, axis=-1, keepdims=True), approx=True)

    # attention-weighted session summary per head: one batched MXU einsum
    # instead of MH separate VPU broadcast-multiply-reduce passes.
    h_att = jnp.einsum('bms,bsh->bmh', a_bms.astype(jnp.bfloat16), h_bf,
                       preferred_element_type=jnp.float32)     # (bB, MH, H)
    # lay the heads out lane-dense so the first MLP layer is one K=MH*H matmul
    h_att_flat = jnp.concatenate([h_att[:, m, :] for m in range(MH)], axis=-1)

    # first MLP layer, decomposed over the torch concat order
    # [x_self | h[:,0,:] | h_attention (MH heads) | h_continuous]
    z = (jnp.dot(xself_ref[...].astype(jnp.bfloat16), w1_self_ref[...],
                 preferred_element_type=jnp.float32)
         + jnp.dot(h0_bf, w1_h0_ref[...], preferred_element_type=jnp.float32)
         + jnp.dot(h_att_flat.astype(jnp.bfloat16), w1_att_ref[...],
                   preferred_element_type=jnp.float32)
         + jnp.dot(hcont_ref[...].astype(jnp.bfloat16), w1_cont_ref[...],
                   preferred_element_type=jnp.float32)
         + b1_ref[...])
    z = jnp.where(z > 0, z, LEAKY_SLOPE * z)

    z = jnp.dot(z.astype(jnp.bfloat16), w2_ref[...],
                preferred_element_type=jnp.float32) + b2_ref[...]
    z = jnp.where(z > 0, z, LEAKY_SLOPE * z)

    y = jnp.dot(z.astype(jnp.bfloat16), wp_ref[...],
                preferred_element_type=jnp.float32) + bp_ref[...]
    out_ref[...] = jax.nn.sigmoid(y)


# ============================ Pallas wrappers ================================

def run_timeaware_rnn(x, p, n_out, block_n=256):
    """x: (N, T, Din+1) f32 with last channel = dt.  Returns (N, n_out, H)."""
    N, T, Dp1 = x.shape
    H = p['wh'].shape[1]
    assert n_out <= T
    if N <= block_n:
        tN, Np = N, N
    else:
        tN = block_n
        Np = _ceil_to(N, tN)
        if Np != N:
            x = jnp.pad(x, ((0, Np - N), (0, 0), (0, 0)))
    grid = (Np // tN,)

    wx = p['wx'].astype(jnp.bfloat16)
    wh = p['wh'].astype(jnp.bfloat16)

    out = pl.pallas_call(
        rnn_lastk_kernel,
        grid=grid,
        in_specs=[pl.BlockSpec((tN, T, Dp1), lambda i: (i, 0, 0)),
                  _whole_spec(wx), _whole_spec(wh),
                  _whole_spec(p['b']), _whole_spec(p['wt']),
                  _whole_spec(p['bt'])],
        out_specs=pl.BlockSpec((tN, n_out, H), lambda i: (i, 0, 0)),
        out_shape=jax.ShapeDtypeStruct((Np, n_out, H), jnp.float32),
        compiler_params=pltpu.CompilerParams(
            dimension_semantics=("parallel",)),
    )(x, wx, wh, p['b'], p['wt'], p['bt'])
    return out[:N]


def run_head(h_bsh, x_self, h_cont, p, block_b=128):
    """h_bsh: (B, S, H); x_self: (B, D); h_cont: (B, H) -> (B, 1) sigmoid."""
    B, S, H = h_bsh.shape
    D = x_self.shape[1]
    if B <= block_b:
        bB, Bp = B, B
    else:
        bB = block_b                               # multiple of 8
        Bp = _ceil_to(B, bB)
        pad = Bp - B
        if pad:
            h_bsh = jnp.pad(h_bsh, ((0, pad), (0, 0), (0, 0)))
            x_self = jnp.pad(x_self, ((0, pad), (0, 0)))
            h_cont = jnp.pad(h_cont, ((0, pad), (0, 0)))
    grid = (Bp // bB,)

    bf = jnp.bfloat16
    wvaT = p['wva'].T.astype(bf)                   # (MH, H)
    wvb = p['wvb'].astype(bf)                      # (H, MH)
    bv = p['bv'].T                                 # (MH, 1) f32
    w1_self = p['w1_self'].astype(bf)
    w1_h0 = p['w1_h0'].astype(bf)
    w1_att = p['w1_att'].astype(bf)                # (MH*H, P0)
    w1_cont = p['w1_cont'].astype(bf)
    w2 = p['w2'].astype(bf)
    wp = p['wp'].astype(bf)

    args = (h_bsh, x_self, h_cont, wvaT, wvb, bv,
            w1_self, w1_h0, w1_att, w1_cont, p['b1'],
            w2, p['b2'], wp, p['bp'])
    in_specs = ([pl.BlockSpec((bB, S, H), lambda i: (i, 0, 0)),
                 pl.BlockSpec((bB, D), lambda i: (i, 0)),
                 pl.BlockSpec((bB, H), lambda i: (i, 0))]
                + [_whole_spec(a) for a in args[3:]])

    out = pl.pallas_call(
        head_kernel,
        grid=grid,
        in_specs=in_specs,
        out_specs=pl.BlockSpec((bB, OUTPUT_DIM), lambda i: (i, 0)),
        out_shape=jax.ShapeDtypeStruct((Bp, OUTPUT_DIM), jnp.float32),
        compiler_params=pltpu.CompilerParams(
            dimension_semantics=("parallel",)),
    )(*args)
    return out[:B]


# ============================ JAX glue (gathers etc.) ========================

def get_top_k(emb, x, self_loc):
    """x: (B, S1, S2, F) int32.  Returns (B, S1, ITEM_NUM, F)."""
    B, S1, S2, F = x.shape
    real_loc = x[:, :, :, 0] != ALL_FEATURES_NUM                     # (B,S1,S2)
    bidx = jnp.arange(B)
    x_self_id = x[bidx, 0, self_loc, F - 3]                          # (B,)
    e_self = emb[x_self_id]                                          # (B,D)
    e_items = emb[x[:, :, :, F - 3]]                                 # (B,S1,S2,D)
    eps = 1e-8
    num = jnp.einsum('bd,bijd->bij', e_self, e_items)
    den = (jnp.maximum(jnp.linalg.norm(e_self, axis=-1), eps)[:, None, None]
           * jnp.maximum(jnp.linalg.norm(e_items, axis=-1), eps))
    sim = num / den
    # matches torch: fill value is the GLOBAL min over all real entries - 1
    min_real = jnp.min(jnp.where(real_loc, sim, jnp.inf))
    sim = jnp.where(real_loc, sim, min_real - 1.0)
    # TODO(synk): top-k selection has no clean Pallas TPU equivalent; done in JAX.
    _, top_idx = jax.lax.top_k(sim, ITEM_NUM)                        # (B,S1,K)
    top_idx = jnp.sort(top_idx, axis=-1)
    x_self_full = x[bidx, 0, self_loc]                               # (B,F)
    xg = jnp.take_along_axis(x, top_idx[..., None], axis=2)          # (B,S1,K,F)
    xg = xg.at[:, 0, -1, :].set(x_self_full)
    return xg


def get_rnn_input(emb, x):
    """x: (B, S, T, F) int32  ->  (features (B,S,T,D+1), x_self (B,1,1,D))."""
    ids = x[..., :-2]                                                # (B,S,T,F-2)
    t = x[..., -2].astype(jnp.float32)                               # (B,S,T)
    dt = jnp.concatenate(
        [jnp.zeros_like(t[..., :1]), t[..., 1:] - t[..., :-1]], axis=-1)
    dt = dt[..., None]                                               # (B,S,T,1)
    xe = jnp.sum(emb[ids], axis=-2)                                  # (B,S,T,D)
    x_self = xe[:, 0:1, -1:, :]                                      # (B,1,1,D)
    return jnp.concatenate([xe, dt], axis=-1), x_self


def forward(params, x, x_continuous, self_loc):
    emb = params['emb']
    B = x.shape[0]
    Bc = x_continuous.shape[0]
    label_len = B // Bc
    D = emb.shape[1]
    H = params['rnn']['wh'].shape[1]

    xg = get_top_k(emb, x, self_loc)
    xr, x_self = get_rnn_input(emb, xg)                  # (B,S1,K,D+1), (B,1,1,D)
    S1 = xr.shape[1]
    x_self_rep = jnp.broadcast_to(x_self, (B, S1, ITEM_NUM, D))
    xr = jnp.concatenate([x_self_rep, xr], axis=-1)      # (B,S1,K,2D+1)
    xr = xr.reshape(B * S1, ITEM_NUM, 2 * D + 1)         # batch-major rows
    x_self_sq = x_self.reshape(B, D)

    xc = x_continuous[:, None]                           # (Bc,1,Lc,F)
    xc, _ = get_rnn_input(emb, xc)                       # (Bc,1,Lc,D+1)
    xc = xc.reshape(Bc, -1, D + 1)                       # (Bc,Lc,D+1)

    # --- search RNN (Pallas): only the final state per (b, session) is used --
    h_last = run_timeaware_rnn(xr, params['rnn'], n_out=1)     # (B*S1, 1, H)
    h = h_last.reshape(B, S1, H)

    # --- continuous RNN (Pallas): only the last label_len states are used ----
    # TODO(synk): SimpleRNN(x, label_len) semantics inferred: the final
    # label_len hidden states, reshaped to (batch_size, hidden_dim).
    hc = run_timeaware_rnn(xc, params['rnn_cont'], n_out=label_len)  # (Bc,L,H)
    h_cont = hc.reshape(B, H)

    # --- attention + MLP + sigmoid head (Pallas) ---
    return run_head(h, x_self_sq, h_cont, params)


# ============================ parameter init =================================

def make_params(key):
    D, H, MH = INPUT_DIM, HIDDEN_DIM, MULTI_HEAD
    P0, P1 = PREDICT_HIDDEN_WIDTH
    ks = jax.random.split(key, 12)
    s = 0.1

    emb = jax.random.normal(ks[0], (ALL_FEATURES_NUM + 1, D), jnp.float32)
    emb = emb.at[ALL_FEATURES_NUM].set(0.0)               # padding_idx row

    def rnn_params(k, din):
        k1, k2, k3, k4, k5 = jax.random.split(k, 5)
        return dict(
            wx=s * jax.random.normal(k1, (din, H), jnp.float32),
            wh=s * jax.random.normal(k2, (H, H), jnp.float32),
            b=s * jax.random.normal(k3, (1, H), jnp.float32),
            wt=s * jax.random.normal(k4, (1, H), jnp.float32),
            bt=s * jax.random.normal(k5, (1, H), jnp.float32))

    rnn = rnn_params(ks[1], 2 * D)        # search_input = 2*input_dim
    rnn_cont = rnn_params(ks[2], D)       # continuous_input = input_dim

    wv = s * jax.random.normal(ks[3], (2 * H, MH), jnp.float32)   # v1
    bv = s * jax.random.normal(ks[4], (1, MH), jnp.float32)
    w1 = s * jax.random.normal(ks[5], (D + (2 + MH) * H, P0), jnp.float32)
    b1 = s * jax.random.normal(ks[6], (1, P0), jnp.float32)
    w2 = s * jax.random.normal(ks[7], (P0, P1), jnp.float32)
    b2 = s * jax.random.normal(ks[8], (1, P1), jnp.float32)
    wp = s * jax.random.normal(ks[9], (P1, OUTPUT_DIM), jnp.float32)
    bp = s * jax.random.normal(ks[10], (1, OUTPUT_DIM), jnp.float32)

    # split W1 rows to match torch concat order [x_self | h0 | h_att | h_cont]
    return dict(emb=emb, rnn=rnn, rnn_cont=rnn_cont,
                wva=wv[:H], wvb=wv[H:], bv=bv,
                w1_self=w1[:D], w1_h0=w1[D:D + H],
                w1_att=w1[D + H:D + (1 + MH) * H],        # (MH*H, P0) flat
                w1_cont=w1[D + (1 + MH) * H:],
                b1=b1, w2=w2, b2=b2, wp=wp, bp=bp)


# ============================ main ===========================================

if __name__ == "__main__":
    key = jax.random.PRNGKey(0)
    pkey, dkey = jax.random.split(key)
    params = make_params(pkey)

    # small synthetic input shapes
    B, label_len = 4, 2
    Bc = B // label_len
    S1, S2 = 3, 12            # sessions, items per session
    NID = 3                   # id columns; F = NID + 2 (time, label)
    F = NID + 2
    Lc = 10                   # continuous sequence length

    k1, k2, k3, k4, k5, k6 = jax.random.split(dkey, 6)
    ids = jax.random.randint(k1, (B, S1, S2, NID), 0, ALL_FEATURES_NUM)
    times = jnp.cumsum(jax.random.randint(k2, (B, S1, S2, 1), 1, 5), axis=2)
    labels = jax.random.randint(k3, (B, S1, S2, 1), 0, 2)
    x = jnp.concatenate([ids, times, labels], axis=-1).astype(jnp.int32)
    # mark a couple of positions in the last session as padding
    x = x.at[:, S1 - 1, S2 - 2:, 0].set(ALL_FEATURES_NUM)

    ids_c = jax.random.randint(k4, (Bc, Lc, NID), 0, ALL_FEATURES_NUM)
    times_c = jnp.cumsum(jax.random.randint(k5, (Bc, Lc, 1), 1, 5), axis=1)
    labels_c = jax.random.randint(k6, (Bc, Lc, 1), 0, 2)
    x_continuous = jnp.concatenate(
        [ids_c, times_c, labels_c], axis=-1).astype(jnp.int32)

    self_loc = jax.random.randint(jax.random.PRNGKey(7), (B,), 0, S2
                                  ).astype(jnp.int32)

    fwd = jax.jit(forward)
    y = fwd(params, x, x_continuous, self_loc)
    y = jax.block_until_ready(y)
    assert y.shape == (B, OUTPUT_DIM)
    assert bool(jnp.all(jnp.isfinite(y)))
    assert bool(jnp.all((y >= 0.0) & (y <= 1.0)))
    print("KERNEL_OK")
</pallas_src>

<mosaic_0001>
module attributes {stable_mosaic.version = 11 : i64} {
  func.func @rnn_lastk_kernel(%arg0: i32, %arg1: memref<12x8x33xf32, #tpu.memory_space<vmem>>, %arg2: memref<32x32xbf16, #tpu.memory_space<vmem>>, %arg3: memref<32x32xbf16, #tpu.memory_space<vmem>>, %arg4: memref<1x32xf32, #tpu.memory_space<vmem>>, %arg5: memref<1x32xf32, #tpu.memory_space<vmem>>, %arg6: memref<1x32xf32, #tpu.memory_space<vmem>>, %arg7: memref<12x1x32xf32, #tpu.memory_space<vmem>>) attributes {dimension_semantics = [#tpu.dimension_semantics<parallel>], iteration_bounds = array<i64: 1>, scalar_prefetch = 0 : i64, scratch_operands = 0 : i64, tpu.core_type = #tpu.core_type<tc>, window_params = [{transform_indices = @transform_0, window_bounds = array<i64: 12, 8, 33>}, {pipeline_mode = #tpu.pipeline_mode<synchronous>, transform_indices = @transform_1, window_bounds = array<i64: 32, 32>}, {pipeline_mode = #tpu.pipeline_mode<synchronous>, transform_indices = @transform_2, window_bounds = array<i64: 32, 32>}, {pipeline_mode = #tpu.pipeline_mode<synchronous>, transform_indices = @transform_3, window_bounds = array<i64: 1, 32>}, {pipeline_mode = #tpu.pipeline_mode<synchronous>, transform_indices = @transform_4, window_bounds = array<i64: 1, 32>}, {pipeline_mode = #tpu.pipeline_mode<synchronous>, transform_indices = @transform_5, window_bounds = array<i64: 1, 32>}, {transform_indices = @transform_6, window_bounds = array<i64: 12, 1, 32>}]} {
    %c0 = arith.constant 0 : index
    %c0_0 = arith.constant 0 : index
    %c0_1 = arith.constant 0 : index
    %0 = vector.load %arg1[%c0, %c0_0, %c0_1] : memref<12x8x33xf32, #tpu.memory_space<vmem>>, vector<12x8x33xf32>
    %1 = vector.extract_strided_slice %0 {offsets = [0, 0, 32], sizes = [12, 8, 1], strides = [1, 1, 1]} : vector<12x8x33xf32> to vector<12x8x1xf32>
    %c0_2 = arith.constant 0 : index
    %c0_3 = arith.constant 0 : index
    %2 = vector.load %arg3[%c0_2, %c0_3] : memref<32x32xbf16, #tpu.memory_space<vmem>>, vector<32x32xbf16>
    %c0_4 = arith.constant 0 : index
    %c0_5 = arith.constant 0 : index
    %3 = vector.load %arg4[%c0_4, %c0_5] : memref<1x32xf32, #tpu.memory_space<vmem>>, vector<1x32xf32>
    %c0_6 = arith.constant 0 : index
    %c0_7 = arith.constant 0 : index
    %4 = vector.load %arg5[%c0_6, %c0_7] : memref<1x32xf32, #tpu.memory_space<vmem>>, vector<1x32xf32>
    %5 = vector.shape_cast %4 : vector<1x32xf32> to vector<1x1x32xf32>
    %6 = vector.broadcast %1 : vector<12x8x1xf32> to vector<12x8x32xf32>
    %7 = vector.broadcast %5 : vector<1x1x32xf32> to vector<12x8x32xf32>
    %8 = arith.mulf %6, %7 : vector<12x8x32xf32>
    %c0_8 = arith.constant 0 : index
    %c0_9 = arith.constant 0 : index
    %9 = vector.load %arg6[%c0_8, %c0_9] : memref<1x32xf32, #tpu.memory_space<vmem>>, vector<1x32xf32>
    %10 = vector.shape_cast %9 : vector<1x32xf32> to vector<1x1x32xf32>
    %11 = vector.broadcast %10 : vector<1x1x32xf32> to vector<12x8x32xf32>
    %12 = arith.addf %8, %11 : vector<12x8x32xf32>
    %cst = arith.constant 0.000000e+00 : f32
    %13 = vector.broadcast %cst : f32 to vector<12x8x32xf32>
    %14 = arith.maximumf %12, %13 : vector<12x8x32xf32>
    %cst_10 = arith.constant 0.000000e+00 : f32
    %15 = vector.broadcast %cst_10 : f32 to vector<12x8x32xf32>
    %16 = arith.subf %15, %14 : vector<12x8x32xf32>
    %17 = math.exp %16 : vector<12x8x32xf32>
    %18 = vector.extract_strided_slice %0 {offsets = [0, 0, 0], sizes = [12, 1, 32], strides = [1, 1, 1]} : vector<12x8x33xf32> to vector<12x1x32xf32>
    %19 = vector.shape_cast %18 : vector<12x1x32xf32> to vector<12x32xf32>
    %20 = arith.truncf %19 : vector<12x32xf32> to vector<12x32xbf16>
    %c0_11 = arith.constant 0 : index
    %c0_12 = arith.constant 0 : index
    %21 = vector.load %arg2[%c0_11, %c0_12] : memref<32x32xbf16, #tpu.memory_space<vmem>>, vector<32x32xbf16>
    %cst_13 = arith.constant dense<0.000000e+00> : vector<12x32xf32>
    %22 = tpu.matmul %20, %21, %cst_13 {dimension_numbers = #tpu.dot_dimension_numbers<[1], [0], [0], [1], [0, 0, 1, 1], [], []>} : vector<12x32xbf16>, vector<32x32xbf16>, vector<12x32xf32> -> vector<12x32xf32>
    %23 = vector.broadcast %3 : vector<1x32xf32> to vector<12x32xf32>
    %24 = arith.addf %22, %23 : vector<12x32xf32>
    %25 = vector.extract_strided_slice %0 {offsets = [0, 1, 0], sizes = [12, 1, 32], strides = [1, 1, 1]} : vector<12x8x33xf32> to vector<12x1x32xf32>
    %26 = vector.shape_cast %25 : vector<12x1x32xf32> to vector<12x32xf32>
    %27 = arith.truncf %26 : vector<12x32xf32> to vector<12x32xbf16>
    %c0_14 = arith.constant 0 : index
    %c0_15 = arith.constant 0 : index
    %28 = vector.load %arg2[%c0_14, %c0_15] : memref<32x32xbf16, #tpu.memory_space<vmem>>, vector<32x32xbf16>
    %cst_16 = arith.constant dense<0.000000e+00> : vector<12x32xf32>
    %29 = tpu.matmul %27, %28, %cst_16 {dimension_numbers = #tpu.dot_dimension_numbers<[1], [0], [0], [1], [0, 0, 1, 1], [], []>} : vector<12x32xbf16>, vector<32x32xbf16>, vector<12x32xf32> -> vector<12x32xf32>
    %30 = vector.broadcast %3 : vector<1x32xf32> to vector<12x32xf32>
    %31 = arith.addf %29, %30 : vector<12x32xf32>
    %32 = vector.extract_strided_slice %0 {offsets = [0, 2, 0], sizes = [12, 1, 32], strides = [1, 1, 1]} : vector<12x8x33xf32> to vector<12x1x32xf32>
    %33 = vector.shape_cast %32 : vector<12x1x32xf32> to vector<12x32xf32>
    %34 = arith.truncf %33 : vector<12x32xf32> to vector<12x32xbf16>
    %c0_17 = arith.constant 0 : index
    %c0_18 = arith.constant 0 : index
    %35 = vector.load %arg2[%c0_17, %c0_18] : memref<32x32xbf16, #tpu.memory_space<vmem>>, vector<32x32xbf16>
    %cst_19 = arith.constant dense<0.000000e+00> : vector<12x32xf32>
    %36 = tpu.matmul %34, %35, %cst_19 {dimension_numbers = #tpu.dot_dimension_numbers<[1], [0], [0], [1], [0, 0, 1, 1], [], []>} : vector<12x32xbf16>, vector<32x32xbf16>, vector<12x32xf32> -> vector<12x32xf32>
    %37 = vector.broadcast %3 : vector<1x32xf32> to vector<12x32xf32>
    %38 = arith.addf %36, %37 : vector<12x32xf32>
    %39 = vector.extract_strided_slice %0 {offsets = [0, 3, 0], sizes = [12, 1, 32], strides = [1, 1, 1]} : vector<12x8x33xf32> to vector<12x1x32xf32>
    %40 = vector.shape_cast %39 : vector<12x1x32xf32> to vector<12x32xf32>
    %41 = arith.truncf %40 : vector<12x32xf32> to vector<12x32xbf16>
    %c0_20 = arith.constant 0 : index
    %c0_21 = arith.constant 0 : index
    %42 = vector.load %arg2[%c0_20, %c0_21] : memref<32x32xbf16, #tpu.memory_space<vmem>>, vector<32x32xbf16>
    %cst_22 = arith.constant dense<0.000000e+00> : vector<12x32xf32>
    %43 = tpu.matmul %41, %42, %cst_22 {dimension_numbers = #tpu.dot_dimension_numbers<[1], [0], [0], [1], [0, 0, 1, 1], [], []>} : vector<12x32xbf16>, vector<32x32xbf16>, vector<12x32xf32> -> vector<12x32xf32>
    %44 = vector.broadcast %3 : vector<1x32xf32> to vector<12x32xf32>
    %45 = arith.addf %43, %44 : vector<12x32xf32>
    %46 = vector.extract_strided_slice %0 {offsets = [0, 4, 0], sizes = [12, 1, 32], strides = [1, 1, 1]} : vector<12x8x33xf32> to vector<12x1x32xf32>
    %47 = vector.shape_cast %46 : vector<12x1x32xf32> to vector<12x32xf32>
    %48 = arith.truncf %47 : vector<12x32xf32> to vector<12x32xbf16>
    %c0_23 = arith.constant 0 : index
    %c0_24 = arith.constant 0 : index
    %49 = vector.load %arg2[%c0_23, %c0_24] : memref<32x32xbf16, #tpu.memory_space<vmem>>, vector<32x32xbf16>
    %cst_25 = arith.constant dense<0.000000e+00> : vector<12x32xf32>
    %50 = tpu.matmul %48, %49, %cst_25 {dimension_numbers = #tpu.dot_dimension_numbers<[1], [0], [0], [1], [0, 0, 1, 1], [], []>} : vector<12x32xbf16>, vector<32x32xbf16>, vector<12x32xf32> -> vector<12x32xf32>
    %51 = vector.broadcast %3 : vector<1x32xf32> to vector<12x32xf32>
    %52 = arith.addf %50, %51 : vector<12x32xf32>
    %53 = vector.extract_strided_slice %0 {offsets = [0, 5, 0], sizes = [12, 1, 32], strides = [1, 1, 1]} : vector<12x8x33xf32> to vector<12x1x32xf32>
    %54 = vector.shape_cast %53 : vector<12x1x32xf32> to vector<12x32xf32>
    %55 = arith.truncf %54 : vector<12x32xf32> to vector<12x32xbf16>
    %c0_26 = arith.constant 0 : index
    %c0_27 = arith.constant 0 : index
    %56 = vector.load %arg2[%c0_26, %c0_27] : memref<32x32xbf16, #tpu.memory_space<vmem>>, vector<32x32xbf16>
    %cst_28 = arith.constant dense<0.000000e+00> : vector<12x32xf32>
    %57 = tpu.matmul %55, %56, %cst_28 {dimension_numbers = #tpu.dot_dimension_numbers<[1], [0], [0], [1], [0, 0, 1, 1], [], []>} : vector<12x32xbf16>, vector<32x32xbf16>, vector<12x32xf32> -> vector<12x32xf32>
    %58 = vector.broadcast %3 : vector<1x32xf32> to vector<12x32xf32>
    %59 = arith.addf %57, %58 : vector<12x32xf32>
    %60 = vector.extract_strided_slice %0 {offsets = [0, 6, 0], sizes = [12, 1, 32], strides = [1, 1, 1]} : vector<12x8x33xf32> to vector<12x1x32xf32>
    %61 = vector.shape_cast %60 : vector<12x1x32xf32> to vector<12x32xf32>
    %62 = arith.truncf %61 : vector<12x32xf32> to vector<12x32xbf16>
    %c0_29 = arith.constant 0 : index
    %c0_30 = arith.constant 0 : index
    %63 = vector.load %arg2[%c0_29, %c0_30] : memref<32x32xbf16, #tpu.memory_space<vmem>>, vector<32x32xbf16>
    %cst_31 = arith.constant dense<0.000000e+00> : vector<12x32xf32>
    %64 = tpu.matmul %62, %63, %cst_31 {dimension_numbers = #tpu.dot_dimension_numbers<[1], [0], [0], [1], [0, 0, 1, 1], [], []>} : vector<12x32xbf16>, vector<32x32xbf16>, vector<12x32xf32> -> vector<12x32xf32>
    %65 = vector.broadcast %3 : vector<1x32xf32> to vector<12x32xf32>
    %66 = arith.addf %64, %65 : vector<12x32xf32>
    %67 = vector.extract_strided_slice %0 {offsets = [0, 7, 0], sizes = [12, 1, 32], strides = [1, 1, 1]} : vector<12x8x33xf32> to vector<12x1x32xf32>
    %68 = vector.shape_cast %67 : vector<12x1x32xf32> to vector<12x32xf32>
    %69 = arith.truncf %68 : vector<12x32xf32> to vector<12x32xbf16>
    %c0_32 = arith.constant 0 : index
    %c0_33 = arith.constant 0 : index
    %70 = vector.load %arg2[%c0_32, %c0_33] : memref<32x32xbf16, #tpu.memory_space<vmem>>, vector<32x32xbf16>
    %cst_34 = arith.constant dense<0.000000e+00> : vector<12x32xf32>
    %71 = tpu.matmul %69, %70, %cst_34 {dimension_numbers = #tpu.dot_dimension_numbers<[1], [0], [0], [1], [0, 0, 1, 1], [], []>} : vector<12x32xbf16>, vector<32x32xbf16>, vector<12x32xf32> -> vector<12x32xf32>
    %72 = vector.broadcast %3 : vector<1x32xf32> to vector<12x32xf32>
    %73 = arith.addf %71, %72 : vector<12x32xf32>
    %cst_35 = arith.constant 0.000000e+00 : f32
    %74 = vector.broadcast %cst_35 : f32 to vector<12x32xf32>
    %75 = vector.extract_strided_slice %17 {offsets = [0, 0, 0], sizes = [12, 1, 32], strides = [1, 1, 1]} : vector<12x8x32xf32> to vector<12x1x32xf32>
    %76 = vector.shape_cast %75 : vector<12x1x32xf32> to vector<12x32xf32>
    %77 = arith.mulf %74, %76 : vector<12x32xf32>
    %78 = arith.truncf %77 : vector<12x32xf32> to vector<12x32xbf16>
    %cst_36 = arith.constant dense<0.000000e+00> : vector<12x32xf32>
    %79 = tpu.matmul %78, %2, %cst_36 {dimension_numbers = #tpu.dot_dimension_numbers<[1], [0], [0], [1], [0, 0, 1, 1], [], []>} : vector<12x32xbf16>, vector<32x32xbf16>, vector<12x32xf32> -> vector<12x32xf32>
    %80 = arith.addf %24, %79 : vector<12x32xf32>
    %81 = math.tanh %80 : vector<12x32xf32>
    %82 = vector.extract_strided_slice %17 {offsets = [0, 1, 0], sizes = [12, 1, 32], strides = [1, 1, 1]} : vector<12x8x32xf32> to vector<12x1x32xf32>
    %83 = vector.shape_cast %82 : vector<12x1x32xf32> to vector<12x32xf32>
    %84 = arith.mulf %81, %83 : vector<12x32xf32>
    %85 = arith.truncf %84 : vector<12x32xf32> to vector<12x32xbf16>
    %cst_37 = arith.constant dense<0.000000e+00> : vector<12x32xf32>
    %86 = tpu.matmul %85, %2, %cst_37 {dimension_numbers = #tpu.dot_dimension_numbers<[1], [0], [0], [1], [0, 0, 1, 1], [], []>} : vector<12x32xbf16>, vector<32x32xbf16>, vector<12x32xf32> -> vector<12x32xf32>
    %87 = arith.addf %31, %86 : vector<12x32xf32>
    %88 = math.tanh %87 : vector<12x32xf32>
    %89 = vector.extract_strided_slice %17 {offsets = [0, 2, 0], sizes = [12, 1, 32], strides = [1, 1, 1]} : vector<12x8x32xf32> to vector<12x1x32xf32>
    %90 = vector.shape_cast %89 : vector<12x1x32xf32> to vector<12x32xf32>
    %91 = arith.mulf %88, %90 : vector<12x32xf32>
    %92 = arith.truncf %91 : vector<12x32xf32> to vector<12x32xbf16>
    %cst_38 = arith.constant dense<0.000000e+00> : vector<12x32xf32>
    %93 = tpu.matmul %92, %2, %cst_38 {dimension_numbers = #tpu.dot_dimension_numbers<[1], [0], [0], [1], [0, 0, 1, 1], [], []>} : vector<12x32xbf16>, vector<32x32xbf16>, vector<12x32xf32> -> vector<12x32xf32>
    %94 = arith.addf %38, %93 : vector<12x32xf32>
    %95 = math.tanh %94 : vector<12x32xf32>
    %96 = vector.extract_strided_slice %17 {offsets = [0, 3, 0], sizes = [12, 1, 32], strides = [1, 1, 1]} : vector<12x8x32xf32> to vector<12x1x32xf32>
    %97 = vector.shape_cast %96 : vector<12x1x32xf32> to vector<12x32xf32>
    %98 = arith.mulf %95, %97 : vector<12x32xf32>
    %99 = arith.truncf %98 : vector<12x32xf32> to vector<12x32xbf16>
    %cst_39 = arith.constant dense<0.000000e+00> : vector<12x32xf32>
    %100 = tpu.matmul %99, %2, %cst_39 {dimension_numbers = #tpu.dot_dimension_numbers<[1], [0], [0], [1], [0, 0, 1, 1], [], []>} : vector<12x32xbf16>, vector<32x32xbf16>, vector<12x32xf32> -> vector<12x32xf32>
    %101 = arith.addf %45, %100 : vector<12x32xf32>
    %102 = math.tanh %101 : vector<12x32xf32>
    %103 = vector.extract_strided_slice %17 {offsets = [0, 4, 0], sizes = [12, 1, 32], strides = [1, 1, 1]} : vector<12x8x32xf32> to vector<12x1x32xf32>
    %104 = vector.shape_cast %103 : vector<12x1x32xf32> to vector<12x32xf32>
    %105 = arith.mulf %102, %104 : vector<12x32xf32>
    %106 = arith.truncf %105 : vector<12x32xf32> to vector<12x32xbf16>
    %cst_40 = arith.constant dense<0.000000e+00> : vector<12x32xf32>
    %107 = tpu.matmul %106, %2, %cst_40 {dimension_numbers = #tpu.dot_dimension_numbers<[1], [0], [0], [1], [0, 0, 1, 1], [], []>} : vector<12x32xbf16>, vector<32x32xbf16>, vector<12x32xf32> -> vector<12x32xf32>
    %108 = arith.addf %52, %107 : vector<12x32xf32>
    %109 = math.tanh %108 : vector<12x32xf32>
    %110 = vector.extract_strided_slice %17 {offsets = [0, 5, 0], sizes = [12, 1, 32], strides = [1, 1, 1]} : vector<12x8x32xf32> to vector<12x1x32xf32>
    %111 = vector.shape_cast %110 : vector<12x1x32xf32> to vector<12x32xf32>
    %112 = arith.mulf %109, %111 : vector<12x32xf32>
    %113 = arith.truncf %112 : vector<12x32xf32> to vector<12x32xbf16>
    %cst_41 = arith.constant dense<0.000000e+00> : vector<12x32xf32>
    %114 = tpu.matmul %113, %2, %cst_41 {dimension_numbers = #tpu.dot_dimension_numbers<[1], [0], [0], [1], [0, 0, 1, 1], [], []>} : vector<12x32xbf16>, vector<32x32xbf16>, vector<12x32xf32> -> vector<12x32xf32>
    %115 = arith.addf %59, %114 : vector<12x32xf32>
    %116 = math.tanh %115 : vector<12x32xf32>
    %117 = vector.extract_strided_slice %17 {offsets = [0, 6, 0], sizes = [12, 1, 32], strides = [1, 1, 1]} : vector<12x8x32xf32> to vector<12x1x32xf32>
    %118 = vector.shape_cast %117 : vector<12x1x32xf32> to vector<12x32xf32>
    %119 = arith.mulf %116, %118 : vector<12x32xf32>
    %120 = arith.truncf %119 : vector<12x32xf32> to vector<12x32xbf16>
    %cst_42 = arith.constant dense<0.000000e+00> : vector<12x32xf32>
    %121 = tpu.matmul %120, %2, %cst_42 {dimension_numbers = #tpu.dot_dimension_numbers<[1], [0], [0], [1], [0, 0, 1, 1], [], []>} : vector<12x32xbf16>, vector<32x32xbf16>, vector<12x32xf32> -> vector<12x32xf32>
    %122 = arith.addf %66, %121 : vector<12x32xf32>
    %123 = math.tanh %122 : vector<12x32xf32>
    %124 = vector.extract_strided_slice %17 {offsets = [0, 7, 0], sizes = [12, 1, 32], strides = [1, 1, 1]} : vector<12x8x32xf32> to vector<12x1x32xf32>
    %125 = vector.shape_cast %124 : vector<12x1x32xf32> to vector<12x32xf32>
    %126 = arith.mulf %123, %125 : vector<12x32xf32>
    %127 = arith.truncf %126 : vector<12x32xf32> to vector<12x32xbf16>
    %cst_43 = arith.constant dense<0.000000e+00> : vector<12x32xf32>
    %128 = tpu.matmul %127, %2, %cst_43 {dimension_numbers = #tpu.dot_dimension_numbers<[1], [0], [0], [1], [0, 0, 1, 1], [], []>} : vector<12x32xbf16>, vector<32x32xbf16>, vector<12x32xf32> -> vector<12x32xf32>
    %129 = arith.addf %73, %128 : vector<12x32xf32>
    %130 = math.tanh %129 : vector<12x32xf32>
    %c0_44 = arith.constant 0 : index
    %c0_45 = arith.constant 0 : index
    %c0_46 = arith.constant 0 : index
    %131 = vector.load %arg7[%c0_44, %c0_45, %c0_46] : memref<12x1x32xf32, #tpu.memory_space<vmem>>, vector<12x1x32xf32>
    %132 = vector.shape_cast %131 : vector<12x1x32xf32> to vector<12x32xf32>
    %133 = vector.shape_cast %130 : vector<12x32xf32> to vector<12x1x32xf32>
    tpu.vector_store %arg7[%c0_44, %c0_45, %c0_46], %133 {strides = array<i32>} : memref<12x1x32xf32, #tpu.memory_space<vmem>>, vector<12x1x32xf32>,
    return
  }
  func.func @transform_0(%arg0: i32) -> (i32, i32, i32) {
    %c0_i32 = arith.constant 0 : i32
    %c0_i32_0 = arith.constant 0 : i32
    %c0_i32_1 = arith.constant 0 : i32
    return %arg0, %c0_i32, %c0_i32_0 : i32, i32, i32
  }
  func.func @transform_1(%arg0: i32) -> (i32, i32) {
    %c0_i32 = arith.constant 0 : i32
    %c0_i32_0 = arith.constant 0 : i32
    %c0_i32_1 = arith.constant 0 : i32
    return %c0_i32, %c0_i32_0 : i32, i32
  }
  func.func @transform_2(%arg0: i32) -> (i32, i32) {
    %c0_i32 = arith.constant 0 : i32
    %c0_i32_0 = arith.constant 0 : i32
    %c0_i32_1 = arith.constant 0 : i32
    return %c0_i32, %c0_i32_0 : i32, i32
  }
  func.func @transform_3(%arg0: i32) -> (i32, i32) {
    %c0_i32 = arith.constant 0 : i32
    %c0_i32_0 = arith.constant 0 : i32
    %c0_i32_1 = arith.constant 0 : i32
    return %c0_i32, %c0_i32_0 : i32, i32
  }
  func.func @transform_4(%arg0: i32) -> (i32, i32) {
    %c0_i32 = arith.constant 0 : i32
    %c0_i32_0 = arith.constant 0 : i32
    %c0_i32_1 = arith.constant 0 : i32
    return %c0_i32, %c0_i32_0 : i32, i32
  }
  func.func @transform_5(%arg0: i32) -> (i32, i32) {
    %c0_i32 = arith.constant 0 : i32
    %c0_i32_0 = arith.constant 0 : i32
    %c0_i32_1 = arith.constant 0 : i32
    return %c0_i32, %c0_i32_0 : i32, i32
  }
  func.func @transform_6(%arg0: i32) -> (i32, i32, i32) {
    %c0_i32 = arith.constant 0 : i32
    %c0_i32_0 = arith.constant 0 : i32
    %c0_i32_1 = arith.constant 0 : i32
    return %arg0, %c0_i32, %c0_i32_0 : i32, i32, i32
  }
}

module attributes {stable_mosaic.version = 11 : i64} {
  func.func @rnn_lastk_kernel(%arg0: i32, %arg1: memref<2x10x17xf32, #tpu.memory_space<vmem>>, %arg2: memref<16x32xbf16, #tpu.memory_space<vmem>>, %arg3: memref<32x32xbf16, #tpu.memory_space<vmem>>, %arg4: memref<1x32xf32, #tpu.memory_space<vmem>>, %arg5: memref<1x32xf32, #tpu.memory_space<vmem>>, %arg6: memref<1x32xf32, #tpu.memory_space<vmem>>, %arg7: memref<2x2x32xf32, #tpu.memory_space<vmem>>) attributes {dimension_semantics = [#tpu.dimension_semantics<parallel>], iteration_bounds = array<i64: 1>, scalar_prefetch = 0 : i64, scratch_operands = 0 : i64, tpu.core_type = #tpu.core_type<tc>, window_params = [{transform_indices = @transform_0, window_bounds = array<i64: 2, 10, 17>}, {pipeline_mode = #tpu.pipeline_mode<synchronous>, transform_indices = @transform_1, window_bounds = array<i64: 16, 32>}, {pipeline_mode = #tpu.pipeline_mode<synchronous>, transform_indices = @transform_2, window_bounds = array<i64: 32, 32>}, {pipeline_mode = #tpu.pipeline_mode<synchronous>, transform_indices = @transform_3, window_bounds = array<i64: 1, 32>}, {pipeline_mode = #tpu.pipeline_mode<synchronous>, transform_indices = @transform_4, window_bounds = array<i64: 1, 32>}, {pipeline_mode = #tpu.pipeline_mode<synchronous>, transform_indices = @transform_5, window_bounds = array<i64: 1, 32>}, {transform_indices = @transform_6, window_bounds = array<i64: 2, 2, 32>}]} {
    %c0 = arith.constant 0 : index
    %c0_0 = arith.constant 0 : index
    %c0_1 = arith.constant 0 : index
    %0 = vector.load %arg1[%c0, %c0_0, %c0_1] : memref<2x10x17xf32, #tpu.memory_space<vmem>>, vector<2x10x17xf32>
    %1 = vector.extract_strided_slice %0 {offsets = [0, 0, 16], sizes = [2, 10, 1], strides = [1, 1, 1]} : vector<2x10x17xf32> to vector<2x10x1xf32>
    %c0_2 = arith.constant 0 : index
    %c0_3 = arith.constant 0 : index
    %2 = vector.load %arg3[%c0_2, %c0_3] : memref<32x32xbf16, #tpu.memory_space<vmem>>, vector<32x32xbf16>
    %c0_4 = arith.constant 0 : index
    %c0_5 = arith.constant 0 : index
    %3 = vector.load %arg4[%c0_4, %c0_5] : memref<1x32xf32, #tpu.memory_space<vmem>>, vector<1x32xf32>
    %c0_6 = arith.constant 0 : index
    %c0_7 = arith.constant 0 : index
    %4 = vector.load %arg5[%c0_6, %c0_7] : memref<1x32xf32, #tpu.memory_space<vmem>>, vector<1x32xf32>
    %5 = vector.shape_cast %4 : vector<1x32xf32> to vector<1x1x32xf32>
    %6 = vector.broadcast %1 : vector<2x10x1xf32> to vector<2x10x32xf32>
    %7 = vector.broadcast %5 : vector<1x1x32xf32> to vector<2x10x32xf32>
    %8 = arith.mulf %6, %7 : vector<2x10x32xf32>
    %c0_8 = arith.constant 0 : index
    %c0_9 = arith.constant 0 : index
    %9 = vector.load %arg6[%c0_8, %c0_9] : memref<1x32xf32, #tpu.memory_space<vmem>>, vector<1x32xf32>
    %10 = vector.shape_cast %9 : vector<1x32xf32> to vector<1x1x32xf32>
    %11 = vector.broadcast %10 : vector<1x1x32xf32> to vector<2x10x32xf32>
    %12 = arith.addf %8, %11 : vector<2x10x32xf32>
    %cst = arith.constant 0.000000e+00 : f32
    %13 = vector.broadcast %cst : f32 to vector<2x10x32xf32>
    %14 = arith.maximumf %12, %13 : vector<2x10x32xf32>
    %cst_10 = arith.constant 0.000000e+00 : f32
    %15 = vector.broadcast %cst_10 : f32 to vector<2x10x32xf32>
    %16 = arith.subf %15, %14 : vector<2x10x32xf32>
    %17 = math.exp %16 : vector<2x10x32xf32>
    %18 = vector.extract_strided_slice %0 {offsets = [0, 0, 0], sizes = [2, 1, 16], strides = [1, 1, 1]} : vector<2x10x17xf32> to vector<2x1x16xf32>
    %19 = vector.shape_cast %18 : vector<2x1x16xf32> to vector<2x16xf32>
    %20 = arith.truncf %19 : vector<2x16xf32> to vector<2x16xbf16>
    %c0_11 = arith.constant 0 : index
    %c0_12 = arith.constant 0 : index
    %21 = vector.load %arg2[%c0_11, %c0_12] : memref<16x32xbf16, #tpu.memory_space<vmem>>, vector<16x32xbf16>
    %cst_13 = arith.constant dense<0.000000e+00> : vector<2x32xf32>
    %22 = tpu.matmul %20, %21, %cst_13 {dimension_numbers = #tpu.dot_dimension_numbers<[1], [0], [0], [1], [0, 0, 1, 1], [], []>} : vector<2x16xbf16>, vector<16x32xbf16>, vector<2x32xf32> -> vector<2x32xf32>
    %23 = vector.broadcast %3 : vector<1x32xf32> to vector<2x32xf32>
    %24 = arith.addf %22, %23 : vector<2x32xf32>
    %25 = vector.extract_strided_slice %0 {offsets = [0, 1, 0], sizes = [2, 1, 16], strides = [1, 1, 1]} : vector<2x10x17xf32> to vector<2x1x16xf32>
    %26 = vector.shape_cast %25 : vector<2x1x16xf32> to vector<2x16xf32>
    %27 = arith.truncf %26 : vector<2x16xf32> to vector<2x16xbf16>
    %c0_14 = arith.constant 0 : index
    %c0_15 = arith.constant 0 : index
    %28 = vector.load %arg2[%c0_14, %c0_15] : memref<16x32xbf16, #tpu.memory_space<vmem>>, vector<16x32xbf16>
    %cst_16 = arith.constant dense<0.000000e+00> : vector<2x32xf32>
    %29 = tpu.matmul %27, %28, %cst_16 {dimension_numbers = #tpu.dot_dimension_numbers<[1], [0], [0], [1], [0, 0, 1, 1], [], []>} : vector<2x16xbf16>, vector<16x32xbf16>, vector<2x32xf32> -> vector<2x32xf32>
    %30 = vector.broadcast %3 : vector<1x32xf32> to vector<2x32xf32>
    %31 = arith.addf %29, %30 : vector<2x32xf32>
    %32 = vector.extract_strided_slice %0 {offsets = [0, 2, 0], sizes = [2, 1, 16], strides = [1, 1, 1]} : vector<2x10x17xf32> to vector<2x1x16xf32>
    %33 = vector.shape_cast %32 : vector<2x1x16xf32> to vector<2x16xf32>
    %34 = arith.truncf %33 : vector<2x16xf32> to vector<2x16xbf16>
    %c0_17 = arith.constant 0 : index
    %c0_18 = arith.constant 0 : index
    %35 = vector.load %arg2[%c0_17, %c0_18] : memref<16x32xbf16, #tpu.memory_space<vmem>>, vector<16x32xbf16>
    %cst_19 = arith.constant dense<0.000000e+00> : vector<2x32xf32>
    %36 = tpu.matmul %34, %35, %cst_19 {dimension_numbers = #tpu.dot_dimension_numbers<[1], [0], [0], [1], [0, 0, 1, 1], [], []>} : vector<2x16xbf16>, vector<16x32xbf16>, vector<2x32xf32> -> vector<2x32xf32>
    %37 = vector.broadcast %3 : vector<1x32xf32> to vector<2x32xf32>
    %38 = arith.addf %36, %37 : vector<2x32xf32>
    %39 = vector.extract_strided_slice %0 {offsets = [0, 3, 0], sizes = [2, 1, 16], strides = [1, 1, 1]} : vector<2x10x17xf32> to vector<2x1x16xf32>
    %40 = vector.shape_cast %39 : vector<2x1x16xf32> to vector<2x16xf32>
    %41 = arith.truncf %40 : vector<2x16xf32> to vector<2x16xbf16>
    %c0_20 = arith.constant 0 : index
    %c0_21 = arith.constant 0 : index
    %42 = vector.load %arg2[%c0_20, %c0_21] : memref<16x32xbf16, #tpu.memory_space<vmem>>, vector<16x32xbf16>
    %cst_22 = arith.constant dense<0.000000e+00> : vector<2x32xf32>
    %43 = tpu.matmul %41, %42, %cst_22 {dimension_numbers = #tpu.dot_dimension_numbers<[1], [0], [0], [1], [0, 0, 1, 1], [], []>} : vector<2x16xbf16>, vector<16x32xbf16>, vector<2x32xf32> -> vector<2x32xf32>
    %44 = vector.broadcast %3 : vector<1x32xf32> to vector<2x32xf32>
    %45 = arith.addf %43, %44 : vector<2x32xf32>
    %46 = vector.extract_strided_slice %0 {offsets = [0, 4, 0], sizes = [2, 1, 16], strides = [1, 1, 1]} : vector<2x10x17xf32> to vector<2x1x16xf32>
    %47 = vector.shape_cast %46 : vector<2x1x16xf32> to vector<2x16xf32>
    %48 = arith.truncf %47 : vector<2x16xf32> to vector<2x16xbf16>
    %c0_23 = arith.constant 0 : index
    %c0_24 = arith.constant 0 : index
    %49 = vector.load %arg2[%c0_23, %c0_24] : memref<16x32xbf16, #tpu.memory_space<vmem>>, vector<16x32xbf16>
    %cst_25 = arith.constant dense<0.000000e+00> : vector<2x32xf32>
    %50 = tpu.matmul %48, %49, %cst_25 {dimension_numbers = #tpu.dot_dimension_numbers<[1], [0], [0], [1], [0, 0, 1, 1], [], []>} : vector<2x16xbf16>, vector<16x32xbf16>, vector<2x32xf32> -> vector<2x32xf32>
    %51 = vector.broadcast %3 : vector<1x32xf32> to vector<2x32xf32>
    %52 = arith.addf %50, %51 : vector<2x32xf32>
    %53 = vector.extract_strided_slice %0 {offsets = [0, 5, 0], sizes = [2, 1, 16], strides = [1, 1, 1]} : vector<2x10x17xf32> to vector<2x1x16xf32>
    %54 = vector.shape_cast %53 : vector<2x1x16xf32> to vector<2x16xf32>
    %55 = arith.truncf %54 : vector<2x16xf32> to vector<2x16xbf16>
    %c0_26 = arith.constant 0 : index
    %c0_27 = arith.constant 0 : index
    %56 = vector.load %arg2[%c0_26, %c0_27] : memref<16x32xbf16, #tpu.memory_space<vmem>>, vector<16x32xbf16>
    %cst_28 = arith.constant dense<0.000000e+00> : vector<2x32xf32>
    %57 = tpu.matmul %55, %56, %cst_28 {dimension_numbers = #tpu.dot_dimension_numbers<[1], [0], [0], [1], [0, 0, 1, 1], [], []>} : vector<2x16xbf16>, vector<16x32xbf16>, vector<2x32xf32> -> vector<2x32xf32>
    %58 = vector.broadcast %3 : vector<1x32xf32> to vector<2x32xf32>
    %59 = arith.addf %57, %58 : vector<2x32xf32>
    %60 = vector.extract_strided_slice %0 {offsets = [0, 6, 0], sizes = [2, 1, 16], strides = [1, 1, 1]} : vector<2x10x17xf32> to vector<2x1x16xf32>
    %61 = vector.shape_cast %60 : vector<2x1x16xf32> to vector<2x16xf32>
    %62 = arith.truncf %61 : vector<2x16xf32> to vector<2x16xbf16>
    %c0_29 = arith.constant 0 : index
    %c0_30 = arith.constant 0 : index
    %63 = vector.load %arg2[%c0_29, %c0_30] : memref<16x32xbf16, #tpu.memory_space<vmem>>, vector<16x32xbf16>
    %cst_31 = arith.constant dense<0.000000e+00> : vector<2x32xf32>
    %64 = tpu.matmul %62, %63, %cst_31 {dimension_numbers = #tpu.dot_dimension_numbers<[1], [0], [0], [1], [0, 0, 1, 1], [], []>} : vector<2x16xbf16>, vector<16x32xbf16>, vector<2x32xf32> -> vector<2x32xf32>
    %65 = vector.broadcast %3 : vector<1x32xf32> to vector<2x32xf32>
    %66 = arith.addf %64, %65 : vector<2x32xf32>
    %67 = vector.extract_strided_slice %0 {offsets = [0, 7, 0], sizes = [2, 1, 16], strides = [1, 1, 1]} : vector<2x10x17xf32> to vector<2x1x16xf32>
    %68 = vector.shape_cast %67 : vector<2x1x16xf32> to vector<2x16xf32>
    %69 = arith.truncf %68 : vector<2x16xf32> to vector<2x16xbf16>
    %c0_32 = arith.constant 0 : index
    %c0_33 = arith.constant 0 : index
    %70 = vector.load %arg2[%c0_32, %c0_33] : memref<16x32xbf16, #tpu.memory_space<vmem>>, vector<16x32xbf16>
    %cst_34 = arith.constant dense<0.000000e+00> : vector<2x32xf32>
    %71 = tpu.matmul %69, %70, %cst_34 {dimension_numbers = #tpu.dot_dimension_numbers<[1], [0], [0], [1], [0, 0, 1, 1], [], []>} : vector<2x16xbf16>, vector<16x32xbf16>, vector<2x32xf32> -> vector<2x32xf32>
    %72 = vector.broadcast %3 : vector<1x32xf32> to vector<2x32xf32>
    %73 = arith.addf %71, %72 : vector<2x32xf32>
    %74 = vector.extract_strided_slice %0 {offsets = [0, 8, 0], sizes = [2, 1, 16], strides = [1, 1, 1]} : vector<2x10x17xf32> to vector<2x1x16xf32>
    %75 = vector.shape_cast %74 : vector<2x1x16xf32> to vector<2x16xf32>
    %76 = arith.truncf %75 : vector<2x16xf32> to vector<2x16xbf16>
    %c0_35 = arith.constant 0 : index
    %c0_36 = arith.constant 0 : index
    %77 = vector.load %arg2[%c0_35, %c0_36] : memref<16x32xbf16, #tpu.memory_space<vmem>>, vector<16x32xbf16>
    %cst_37 = arith.constant dense<0.000000e+00> : vector<2x32xf32>
    %78 = tpu.matmul %76, %77, %cst_37 {dimension_numbers = #tpu.dot_dimension_numbers<[1], [0], [0], [1], [0, 0, 1, 1], [], []>} : vector<2x16xbf16>, vector<16x32xbf16>, vector<2x32xf32> -> vector<2x32xf32>
    %79 = vector.broadcast %3 : vector<1x32xf32> to vector<2x32xf32>
    %80 = arith.addf %78, %79 : vector<2x32xf32>
    %81 = vector.extract_strided_slice %0 {offsets = [0, 9, 0], sizes = [2, 1, 16], strides = [1, 1, 1]} : vector<2x10x17xf32> to vector<2x1x16xf32>
    %82 = vector.shape_cast %81 : vector<2x1x16xf32> to vector<2x16xf32>
    %83 = arith.truncf %82 : vector<2x16xf32> to vector<2x16xbf16>
    %c0_38 = arith.constant 0 : index
    %c0_39 = arith.constant 0 : index
    %84 = vector.load %arg2[%c0_38, %c0_39] : memref<16x32xbf16, #tpu.memory_space<vmem>>, vector<16x32xbf16>
    %cst_40 = arith.constant dense<0.000000e+00> : vector<2x32xf32>
    %85 = tpu.matmul %83, %84, %cst_40 {dimension_numbers = #tpu.dot_dimension_numbers<[1], [0], [0], [1], [0, 0, 1, 1], [], []>} : vector<2x16xbf16>, vector<16x32xbf16>, vector<2x32xf32> -> vector<2x32xf32>
    %86 = vector.broadcast %3 : vector<1x32xf32> to vector<2x32xf32>
    %87 = arith.addf %85, %86 : vector<2x32xf32>
    %cst_41 = arith.constant 0.000000e+00 : f32
    %88 = vector.broadcast %cst_41 : f32 to vector<2x32xf32>
    %89 = vector.extract_strided_slice %17 {offsets = [0, 0, 0], sizes = [2, 1, 32], strides = [1, 1, 1]} : vector<2x10x32xf32> to vector<2x1x32xf32>
    %90 = vector.shape_cast %89 : vector<2x1x32xf32> to vector<2x32xf32>
    %91 = arith.mulf %88, %90 : vector<2x32xf32>
    %92 = arith.truncf %91 : vector<2x32xf32> to vector<2x32xbf16>
    %cst_42 = arith.constant dense<0.000000e+00> : vector<2x32xf32>
    %93 = tpu.matmul %92, %2, %cst_42 {dimension_numbers = #tpu.dot_dimension_numbers<[1], [0], [0], [1], [0, 0, 1, 1], [], []>} : vector<2x32xbf16>, vector<32x32xbf16>, vector<2x32xf32> -> vector<2x32xf32>
    %94 = arith.addf %24, %93 : vector<2x32xf32>
    %95 = math.tanh %94 : vector<2x32xf32>
    %96 = vector.extract_strided_slice %17 {offsets = [0, 1, 0], sizes = [2, 1, 32], strides = [1, 1, 1]} : vector<2x10x32xf32> to vector<2x1x32xf32>
    %97 = vector.shape_cast %96 : vector<2x1x32xf32> to vector<2x32xf32>
    %98 = arith.mulf %95, %97 : vector<2x32xf32>
    %99 = arith.truncf %98 : vector<2x32xf32> to vector<2x32xbf16>
    %cst_43 = arith.constant dense<0.000000e+00> : vector<2x32xf32>
    %100 = tpu.matmul %99, %2, %cst_43 {dimension_numbers = #tpu.dot_dimension_numbers<[1], [0], [0], [1], [0, 0, 1, 1], [], []>} : vector<2x32xbf16>, vector<32x32xbf16>, vector<2x32xf32> -> vector<2x32xf32>
    %101 = arith.addf %31, %100 : vector<2x32xf32>
    %102 = math.tanh %101 : vector<2x32xf32>
    %103 = vector.extract_strided_slice %17 {offsets = [0, 2, 0], sizes = [2, 1, 32], strides = [1, 1, 1]} : vector<2x10x32xf32> to vector<2x1x32xf32>
    %104 = vector.shape_cast %103 : vector<2x1x32xf32> to vector<2x32xf32>
    %105 = arith.mulf %102, %104 : vector<2x32xf32>
    %106 = arith.truncf %105 : vector<2x32xf32> to vector<2x32xbf16>
    %cst_44 = arith.constant dense<0.000000e+00> : vector<2x32xf32>
    %107 = tpu.matmul %106, %2, %cst_44 {dimension_numbers = #tpu.dot_dimension_numbers<[1], [0], [0], [1], [0, 0, 1, 1], [], []>} : vector<2x32xbf16>, vector<32x32xbf16>, vector<2x32xf32> -> vector<2x32xf32>
    %108 = arith.addf %38, %107 : vector<2x32xf32>
    %109 = math.tanh %108 : vector<2x32xf32>
    %110 = vector.extract_strided_slice %17 {offsets = [0, 3, 0], sizes = [2, 1, 32], strides = [1, 1, 1]} : vector<2x10x32xf32> to vector<2x1x32xf32>
    %111 = vector.shape_cast %110 : vector<2x1x32xf32> to vector<2x32xf32>
    %112 = arith.mulf %109, %111 : vector<2x32xf32>
    %113 = arith.truncf %112 : vector<2x32xf32> to vector<2x32xbf16>
    %cst_45 = arith.constant dense<0.000000e+00> : vector<2x32xf32>
    %114 = tpu.matmul %113, %2, %cst_45 {dimension_numbers = #tpu.dot_dimension_numbers<[1], [0], [0], [1], [0, 0, 1, 1], [], []>} : vector<2x32xbf16>, vector<32x32xbf16>, vector<2x32xf32> -> vector<2x32xf32>
    %115 = arith.addf %45, %114 : vector<2x32xf32>
    %116 = math.tanh %115 : vector<2x32xf32>
    %117 = vector.extract_strided_slice %17 {offsets = [0, 4, 0], sizes = [2, 1, 32], strides = [1, 1, 1]} : vector<2x10x32xf32> to vector<2x1x32xf32>
    %118 = vector.shape_cast %117 : vector<2x1x32xf32> to vector<2x32xf32>
    %119 = arith.mulf %116, %118 : vector<2x32xf32>
    %120 = arith.truncf %119 : vector<2x32xf32> to vector<2x32xbf16>
    %cst_46 = arith.constant dense<0.000000e+00> : vector<2x32xf32>
    %121 = tpu.matmul %120, %2, %cst_46 {dimension_numbers = #tpu.dot_dimension_numbers<[1], [0], [0], [1], [0, 0, 1, 1], [], []>} : vector<2x32xbf16>, vector<32x32xbf16>, vector<2x32xf32> -> vector<2x32xf32>
    %122 = arith.addf %52, %121 : vector<2x32xf32>
    %123 = math.tanh %122 : vector<2x32xf32>
    %124 = vector.extract_strided_slice %17 {offsets = [0, 5, 0], sizes = [2, 1, 32], strides = [1, 1, 1]} : vector<2x10x32xf32> to vector<2x1x32xf32>
    %125 = vector.shape_cast %124 : vector<2x1x32xf32> to vector<2x32xf32>
    %126 = arith.mulf %123, %125 : vector<2x32xf32>
    %127 = arith.truncf %126 : vector<2x32xf32> to vector<2x32xbf16>
    %cst_47 = arith.constant dense<0.000000e+00> : vector<2x32xf32>
    %128 = tpu.matmul %127, %2, %cst_47 {dimension_numbers = #tpu.dot_dimension_numbers<[1], [0], [0], [1], [0, 0, 1, 1], [], []>} : vector<2x32xbf16>, vector<32x32xbf16>, vector<2x32xf32> -> vector<2x32xf32>
    %129 = arith.addf %59, %128 : vector<2x32xf32>
    %130 = math.tanh %129 : vector<2x32xf32>
    %131 = vector.extract_strided_slice %17 {offsets = [0, 6, 0], sizes = [2, 1, 32], strides = [1, 1, 1]} : vector<2x10x32xf32> to vector<2x1x32xf32>
    %132 = vector.shape_cast %131 : vector<2x1x32xf32> to vector<2x32xf32>
    %133 = arith.mulf %130, %132 : vector<2x32xf32>
    %134 = arith.truncf %133 : vector<2x32xf32> to vector<2x32xbf16>
    %cst_48 = arith.constant dense<0.000000e+00> : vector<2x32xf32>
    %135 = tpu.matmul %134, %2, %cst_48 {dimension_numbers = #tpu.dot_dimension_numbers<[1], [0], [0], [1], [0, 0, 1, 1], [], []>} : vector<2x32xbf16>, vector<32x32xbf16>, vector<2x32xf32> -> vector<2x32xf32>
    %136 = arith.addf %66, %135 : vector<2x32xf32>
    %137 = math.tanh %136 : vector<2x32xf32>
    %138 = vector.extract_strided_slice %17 {offsets = [0, 7, 0], sizes = [2, 1, 32], strides = [1, 1, 1]} : vector<2x10x32xf32> to vector<2x1x32xf32>
    %139 = vector.shape_cast %138 : vector<2x1x32xf32> to vector<2x32xf32>
    %140 = arith.mulf %137, %139 : vector<2x32xf32>
    %141 = arith.truncf %140 : vector<2x32xf32> to vector<2x32xbf16>
    %cst_49 = arith.constant dense<0.000000e+00> : vector<2x32xf32>
    %142 = tpu.matmul %141, %2, %cst_49 {dimension_numbers = #tpu.dot_dimension_numbers<[1], [0], [0], [1], [0, 0, 1, 1], [], []>} : vector<2x32xbf16>, vector<32x32xbf16>, vector<2x32xf32> -> vector<2x32xf32>
    %143 = arith.addf %73, %142 : vector<2x32xf32>
    %144 = math.tanh %143 : vector<2x32xf32>
    %145 = vector.extract_strided_slice %17 {offsets = [0, 8, 0], sizes = [2, 1, 32], strides = [1, 1, 1]} : vector<2x10x32xf32> to vector<2x1x32xf32>
    %146 = vector.shape_cast %145 : vector<2x1x32xf32> to vector<2x32xf32>
    %147 = arith.mulf %144, %146 : vector<2x32xf32>
    %148 = arith.truncf %147 : vector<2x32xf32> to vector<2x32xbf16>
    %cst_50 = arith.constant dense<0.000000e+00> : vector<2x32xf32>
    %149 = tpu.matmul %148, %2, %cst_50 {dimension_numbers = #tpu.dot_dimension_numbers<[1], [0], [0], [1], [0, 0, 1, 1], [], []>} : vector<2x32xbf16>, vector<32x32xbf16>, vector<2x32xf32> -> vector<2x32xf32>
    %150 = arith.addf %80, %149 : vector<2x32xf32>
    %151 = math.tanh %150 : vector<2x32xf32>
    %c0_51 = arith.constant 0 : index
    %c0_52 = arith.constant 0 : index
    %c0_53 = arith.constant 0 : index
    %152 = vector.load %arg7[%c0_51, %c0_52, %c0_53] : memref<2x2x32xf32, #tpu.memory_space<vmem>>, vector<2x1x32xf32>
    %153 = vector.shape_cast %152 : vector<2x1x32xf32> to vector<2x32xf32>
    %154 = vector.shape_cast %151 : vector<2x32xf32> to vector<2x1x32xf32>
    tpu.vector_store %arg7[%c0_51, %c0_52, %c0_53], %154 {strides = array<i32>} : memref<2x2x32xf32, #tpu.memory_space<vmem>>, vector<2x1x32xf32>,
    %155 = vector.extract_strided_slice %17 {offsets = [0, 9, 0], sizes = [2, 1, 32], strides = [1, 1, 1]} : vector<2x10x32xf32> to vector<2x1x32xf32>
    %156 = vector.shape_cast %155 : vector<2x1x32xf32> to vector<2x32xf32>
    %157 = arith.mulf %151, %156 : vector<2x32xf32>
    %158 = arith.truncf %157 : vector<2x32xf32> to vector<2x32xbf16>
    %cst_54 = arith.constant dense<0.000000e+00> : vector<2x32xf32>
    %159 = tpu.matmul %158, %2, %cst_54 {dimension_numbers = #tpu.dot_dimension_numbers<[1], [0], [0], [1], [0, 0, 1, 1], [], []>} : vector<2x32xbf16>, vector<32x32xbf16>, vector<2x32xf32> -> vector<2x32xf32>
    %160 = arith.addf %87, %159 : vector<2x32xf32>
    %161 = math.tanh %160 : vector<2x32xf32>
    %c0_55 = arith.constant 0 : index
    %c1 = arith.constant 1 : index
    %c0_56 = arith.constant 0 : index
    %162 = vector.load %arg7[%c0_55, %c1, %c0_56] : memref<2x2x32xf32, #tpu.memory_space<vmem>>, vector<2x1x32xf32>
    %163 = vector.shape_cast %162 : vector<2x1x32xf32> to vector<2x32xf32>
    %164 = vector.shape_cast %161 : vector<2x32xf32> to vector<2x1x32xf32>
    tpu.vector_store %arg7[%c0_55, %c1, %c0_56], %164 {strides = array<i32>} : memref<2x2x32xf32, #tpu.memory_space<vmem>>, vector<2x1x32xf32>,
    return
  }
  func.func @transform_0(%arg0: i32) -> (i32, i32, i32) {
    %c0_i32 = arith.constant 0 : i32
    %c0_i32_0 = arith.constant 0 : i32
    %c0_i32_1 = arith.constant 0 : i32
    return %arg0, %c0_i32, %c0_i32_0 : i32, i32, i32
  }
  func.func @transform_1(%arg0: i32) -> (i32, i32) {
    %c0_i32 = arith.constant 0 : i32
    %c0_i32_0 = arith.constant 0 : i32
    %c0_i32_1 = arith.constant 0 : i32
    return %c0_i32, %c0_i32_0 : i32, i32
  }
  func.func @transform_2(%arg0: i32) -> (i32, i32) {
    %c0_i32 = arith.constant 0 : i32
    %c0_i32_0 = arith.constant 0 : i32
    %c0_i32_1 = arith.constant 0 : i32
    return %c0_i32, %c0_i32_0 : i32, i32
  }
  func.func @transform_3(%arg0: i32) -> (i32, i32) {
    %c0_i32 = arith.constant 0 : i32
    %c0_i32_0 = arith.constant 0 : i32
    %c0_i32_1 = arith.constant 0 : i32
    return %c0_i32, %c0_i32_0 : i32, i32
  }
  func.func @transform_4(%arg0: i32) -> (i32, i32) {
    %c0_i32 = arith.constant 0 : i32
    %c0_i32_0 = arith.constant 0 : i32
    %c0_i32_1 = arith.constant 0 : i32
    return %c0_i32, %c0_i32_0 : i32, i32
  }
  func.func @transform_5(%arg0: i32) -> (i32, i32) {
    %c0_i32 = arith.constant 0 : i32
    %c0_i32_0 = arith.constant 0 : i32
    %c0_i32_1 = arith.constant 0 : i32
    return %c0_i32, %c0_i32_0 : i32, i32
  }
  func.func @transform_6(%arg0: i32) -> (i32, i32, i32) {
    %c0_i32 = arith.constant 0 : i32
    %c0_i32_0 = arith.constant 0 : i32
    %c0_i32_1 = arith.constant 0 : i32
    return %arg0, %c0_i32, %c0_i32_0 : i32, i32, i32
  }
}

module attributes {stable_mosaic.version = 11 : i64} {
  func.func @head_kernel(%arg0: i32, %arg1: memref<4x3x32xf32, #tpu.memory_space<vmem>>, %arg2: memref<4x16xf32, #tpu.memory_space<vmem>>, %arg3: memref<4x32xf32, #tpu.memory_space<vmem>>, %arg4: memref<4x32xbf16, #tpu.memory_space<vmem>>, %arg5: memref<32x4xbf16, #tpu.memory_space<vmem>>, %arg6: memref<4x1xf32, #tpu.memory_space<vmem>>, %arg7: memref<16x64xbf16, #tpu.memory_space<vmem>>, %arg8: memref<32x64xbf16, #tpu.memory_space<vmem>>, %arg9: memref<128x64xbf16, #tpu.memory_space<vmem>>, %arg10: memref<32x64xbf16, #tpu.memory_space<vmem>>, %arg11: memref<1x64xf32, #tpu.memory_space<vmem>>, %arg12: memref<64x32xbf16, #tpu.memory_space<vmem>>, %arg13: memref<1x32xf32, #tpu.memory_space<vmem>>, %arg14: memref<32x1xbf16, #tpu.memory_space<vmem>>, %arg15: memref<1x1xf32, #tpu.memory_space<vmem>>, %arg16: memref<4x1xf32, #tpu.memory_space<vmem>>) attributes {dimension_semantics = [#tpu.dimension_semantics<parallel>], iteration_bounds = array<i64: 1>, scalar_prefetch = 0 : i64, scratch_operands = 0 : i64, tpu.core_type = #tpu.core_type<tc>, window_params = [{transform_indices = @transform_0, window_bounds = array<i64: 4, 3, 32>}, {transform_indices = @transform_1, window_bounds = array<i64: 4, 16>}, {transform_indices = @transform_2, window_bounds = array<i64: 4, 32>}, {pipeline_mode = #tpu.pipeline_mode<synchronous>, transform_indices = @transform_3, window_bounds = array<i64: 4, 32>}, {pipeline_mode = #tpu.pipeline_mode<synchronous>, transform_indices = @transform_4, window_bounds = array<i64: 32, 4>}, {pipeline_mode = #tpu.pipeline_mode<synchronous>, transform_indices = @transform_5, window_bounds = array<i64: 4, 1>}, {pipeline_mode = #tpu.pipeline_mode<synchronous>, transform_indices = @transform_6, window_bounds = array<i64: 16, 64>}, {pipeline_mode = #tpu.pipeline_mode<synchronous>, transform_indices = @transform_7, window_bounds = array<i64: 32, 64>}, {pipeline_mode = #tpu.pipeline_mode<synchronous>, transform_indices = @transform_8, window_bounds = array<i64: 128, 64>}, {pipeline_mode = #tpu.pipeline_mode<synchronous>, transform_indices = @transform_9, window_bounds = array<i64: 32, 64>}, {pipeline_mode = #tpu.pipeline_mode<synchronous>, transform_indices = @transform_10, window_bounds = array<i64: 1, 64>}, {pipeline_mode = #tpu.pipeline_mode<synchronous>, transform_indices = @transform_11, window_bounds = array<i64: 64, 32>}, {pipeline_mode = #tpu.pipeline_mode<synchronous>, transform_indices = @transform_12, window_bounds = array<i64: 1, 32>}, {pipeline_mode = #tpu.pipeline_mode<synchronous>, transform_indices = @transform_13, window_bounds = array<i64: 32, 1>}, {pipeline_mode = #tpu.pipeline_mode<synchronous>, transform_indices = @transform_14, window_bounds = array<i64: 1, 1>}, {transform_indices = @transform_15, window_bounds = array<i64: 4, 1>}]} {
    %c0 = arith.constant 0 : index
    %c0_0 = arith.constant 0 : index
    %c0_1 = arith.constant 0 : index
    %0 = vector.load %arg1[%c0, %c0_0, %c0_1] : memref<4x3x32xf32, #tpu.memory_space<vmem>>, vector<4x3x32xf32>
    %1 = vector.extract_strided_slice %0 {offsets = [0, 0, 0], sizes = [4, 1, 32], strides = [1, 1, 1]} : vector<4x3x32xf32> to vector<4x1x32xf32>
    %2 = vector.shape_cast %1 : vector<4x1x32xf32> to vector<4x32xf32>
    %3 = arith.truncf %0 : vector<4x3x32xf32> to vector<4x3x32xbf16>
    %4 = arith.truncf %2 : vector<4x32xf32> to vector<4x32xbf16>
    %c0_2 = arith.constant 0 : index
    %c0_3 = arith.constant 0 : index
    %5 = vector.load %arg4[%c0_2, %c0_3] : memref<4x32xbf16, #tpu.memory_space<vmem>>, vector<4x32xbf16>
    %6 = vector.shape_cast %5 : vector<4x32xbf16> to vector<1x4x32xbf16>
    %7 = vector.shape_cast %6 : vector<1x4x32xbf16> to vector<1x4x32xbf16>
    %8 = vector.broadcast %7 : vector<1x4x32xbf16> to vector<4x4x32xbf16>
    "tpu.trace_start"() <{level = 10 : i32, message = "bmh,bsh->bms"}> : () -> ()
    %cst = arith.constant dense<0.000000e+00> : vector<4x4x3xf32>
    %9 = tpu.matmul %8, %3, %cst {dimension_numbers = #tpu.dot_dimension_numbers<[2], [2], [1], [1], [0, 0, 0, 1, 1, 1], [0], [0]>} : vector<4x4x32xbf16>, vector<4x3x32xbf16>, vector<4x4x3xf32> -> vector<4x4x3xf32>
    "tpu.trace_stop"() : () -> ()
    %c0_4 = arith.constant 0 : index
    %c0_5 = arith.constant 0 : index
    %10 = vector.load %arg5[%c0_4, %c0_5] : memref<32x4xbf16, #tpu.memory_space<vmem>>, vector<32x4xbf16>
    %cst_6 = arith.constant dense<0.000000e+00> : vector<4x4xf32>
    %11 = tpu.matmul %4, %10, %cst_6 {dimension_numbers = #tpu.dot_dimension_numbers<[1], [0], [0], [1], [0, 0, 1, 1], [], []>} : vector<4x32xbf16>, vector<32x4xbf16>, vector<4x4xf32> -> vector<4x4xf32>
    %12 = vector.shape_cast %11 : vector<4x4xf32> to vector<4x4x1xf32>
    %13 = vector.broadcast %12 : vector<4x4x1xf32> to vector<4x4x3xf32>
    %14 = arith.addf %9, %13 : vector<4x4x3xf32>
    %c0_7 = arith.constant 0 : index
    %c0_8 = arith.constant 0 : index
    %15 = vector.load %arg6[%c0_7, %c0_8] : memref<4x1xf32, #tpu.memory_space<vmem>>, vector<4x1xf32>
    %16 = vector.shape_cast %15 : vector<4x1xf32> to vector<1x4x1xf32>
    %17 = vector.broadcast %16 : vector<1x4x1xf32> to vector<4x4x3xf32>
    %18 = arith.addf %14, %17 : vector<4x4x3xf32>
    %19 = math.tanh %18 : vector<4x4x3xf32>
    %20 = math.exp %19 : vector<4x4x3xf32>
    %cst_9 = arith.constant dense<0.000000e+00> : vector<4x4xf32>
    %21 = vector.multi_reduction <add>, %20, %cst_9 [2] : vector<4x4x3xf32> to vector<4x4xf32>
    %22 = vector.shape_cast %21 : vector<4x4xf32> to vector<4x4x1xf32>
    %23 = tpu.reciprocal %22 {approx = true} : vector<4x4x1xf32> -> vector<4x4x1xf32>
    %24 = vector.broadcast %23 : vector<4x4x1xf32> to vector<4x4x3xf32>
    %25 = arith.mulf %20, %24 : vector<4x4x3xf32>
    %26 = arith.truncf %25 : vector<4x4x3xf32> to vector<4x4x3xbf16>
    "tpu.trace_start"() <{level = 10 : i32, message = "bms,bsh->bmh"}> : () -> ()
    %cst_10 = arith.constant dense<0.000000e+00> : vector<4x4x32xf32>
    %27 = tpu.matmul %26, %3, %cst_10 {dimension_numbers = #tpu.dot_dimension_numbers<[2], [1], [1], [2], [0, 0, 0, 1, 1, 2], [0], [0]>} : vector<4x4x3xbf16>, vector<4x3x32xbf16>, vector<4x4x32xf32> -> vector<4x4x32xf32>
    "tpu.trace_stop"() : () -> ()
    %28 = vector.extract_strided_slice %27 {offsets = [0, 0, 0], sizes = [4, 1, 32], strides = [1, 1, 1]} : vector<4x4x32xf32> to vector<4x1x32xf32>
    %29 = vector.shape_cast %28 : vector<4x1x32xf32> to vector<4x32xf32>
    %30 = vector.extract_strided_slice %27 {offsets = [0, 1, 0], sizes = [4, 1, 32], strides = [1, 1, 1]} : vector<4x4x32xf32> to vector<4x1x32xf32>
    %31 = vector.shape_cast %30 : vector<4x1x32xf32> to vector<4x32xf32>
    %32 = vector.extract_strided_slice %27 {offsets = [0, 2, 0], sizes = [4, 1, 32], strides = [1, 1, 1]} : vector<4x4x32xf32> to vector<4x1x32xf32>
    %33 = vector.shape_cast %32 : vector<4x1x32xf32> to vector<4x32xf32>
    %34 = vector.extract_strided_slice %27 {offsets = [0, 3, 0], sizes = [4, 1, 32], strides = [1, 1, 1]} : vector<4x4x32xf32> to vector<4x1x32xf32>
    %35 = vector.shape_cast %34 : vector<4x1x32xf32> to vector<4x32xf32>
    %36 = tpu.concatenate %29, %31, %33, %35 in 1 : vector<4x32xf32>, vector<4x32xf32>, vector<4x32xf32>, vector<4x32xf32> -> vector<4x128xf32>
    %c0_11 = arith.constant 0 : index
    %c0_12 = arith.constant 0 : index
    %37 = vector.load %arg2[%c0_11, %c0_12] : memref<4x16xf32, #tpu.memory_space<vmem>>, vector<4x16xf32>
    %38 = arith.truncf %37 : vector<4x16xf32> to vector<4x16xbf16>
    %c0_13 = arith.constant 0 : index
    %c0_14 = arith.constant 0 : index
    %39 = vector.load %arg7[%c0_13, %c0_14] : memref<16x64xbf16, #tpu.memory_space<vmem>>, vector<16x64xbf16>
    %cst_15 = arith.constant dense<0.000000e+00> : vector<4x64xf32>
    %40 = tpu.matmul %38, %39, %cst_15 {dimension_numbers = #tpu.dot_dimension_numbers<[1], [0], [0], [1], [0, 0, 1, 1], [], []>} : vector<4x16xbf16>, vector<16x64xbf16>, vector<4x64xf32> -> vector<4x64xf32>
    %c0_16 = arith.constant 0 : index
    %c0_17 = arith.constant 0 : index
    %41 = vector.load %arg8[%c0_16, %c0_17] : memref<32x64xbf16, #tpu.memory_space<vmem>>, vector<32x64xbf16>
    %cst_18 = arith.constant dense<0.000000e+00> : vector<4x64xf32>
    %42 = tpu.matmul %4, %41, %cst_18 {dimension_numbers = #tpu.dot_dimension_numbers<[1], [0], [0], [1], [0, 0, 1, 1], [], []>} : vector<4x32xbf16>, vector<32x64xbf16>, vector<4x64xf32> -> vector<4x64xf32>
    %43 = arith.addf %40, %42 : vector<4x64xf32>
    %44 = arith.truncf %36 : vector<4x128xf32> to vector<4x128xbf16>
    %c0_19 = arith.constant 0 : index
    %c0_20 = arith.constant 0 : index
    %45 = vector.load %arg9[%c0_19, %c0_20] : memref<128x64xbf16, #tpu.memory_space<vmem>>, vector<128x64xbf16>
    %cst_21 = arith.constant dense<0.000000e+00> : vector<4x64xf32>
    %46 = tpu.matmul %44, %45, %cst_21 {dimension_numbers = #tpu.dot_dimension_numbers<[1], [0], [0], [1], [0, 0, 1, 1], [], []>} : vector<4x128xbf16>, vector<128x64xbf16>, vector<4x64xf32> -> vector<4x64xf32>
    %47 = arith.addf %43, %46 : vector<4x64xf32>
    %c0_22 = arith.constant 0 : index
    %c0_23 = arith.constant 0 : index
    %48 = vector.load %arg3[%c0_22, %c0_23] : memref<4x32xf32, #tpu.memory_space<vmem>>, vector<4x32xf32>
    %49 = arith.truncf %48 : vector<4x32xf32> to vector<4x32xbf16>
    %c0_24 = arith.constant 0 : index
    %c0_25 = arith.constant 0 : index
    %50 = vector.load %arg10[%c0_24, %c0_25] : memref<32x64xbf16, #tpu.memory_space<vmem>>, vector<32x64xbf16>
    %cst_26 = arith.constant dense<0.000000e+00> : vector<4x64xf32>
    %51 = tpu.matmul %49, %50, %cst_26 {dimension_numbers = #tpu.dot_dimension_numbers<[1], [0], [0], [1], [0, 0, 1, 1], [], []>} : vector<4x32xbf16>, vector<32x64xbf16>, vector<4x64xf32> -> vector<4x64xf32>
    %52 = arith.addf %47, %51 : vector<4x64xf32>
    %c0_27 = arith.constant 0 : index
    %c0_28 = arith.constant 0 : index
    %53 = vector.load %arg11[%c0_27, %c0_28] : memref<1x64xf32, #tpu.memory_space<vmem>>, vector<1x64xf32>
    %54 = vector.broadcast %53 : vector<1x64xf32> to vector<4x64xf32>
    %55 = arith.addf %52, %54 : vector<4x64xf32>
    %cst_29 = arith.constant 0.000000e+00 : f32
    %56 = vector.broadcast %cst_29 : f32 to vector<4x64xf32>
    %57 = arith.cmpf ogt, %55, %56 : vector<4x64xf32>
    %cst_30 = arith.constant 0.00999999977 : f32
    %58 = vector.broadcast %cst_30 : f32 to vector<4x64xf32>
    %59 = arith.mulf %58, %55 : vector<4x64xf32>
    %60 = arith.select %57, %55, %59 : vector<4x64xi1>, vector<4x64xf32>
    %61 = arith.truncf %60 : vector<4x64xf32> to vector<4x64xbf16>
    %c0_31 = arith.constant 0 : index
    %c0_32 = arith.constant 0 : index
    %62 = vector.load %arg12[%c0_31, %c0_32] : memref<64x32xbf16, #tpu.memory_space<vmem>>, vector<64x32xbf16>
    %cst_33 = arith.constant dense<0.000000e+00> : vector<4x32xf32>
    %63 = tpu.matmul %61, %62, %cst_33 {dimension_numbers = #tpu.dot_dimension_numbers<[1], [0], [0], [1], [0, 0, 1, 1], [], []>} : vector<4x64xbf16>, vector<64x32xbf16>, vector<4x32xf32> -> vector<4x32xf32>
    %c0_34 = arith.constant 0 : index
    %c0_35 = arith.constant 0 : index
    %64 = vector.load %arg13[%c0_34, %c0_35] : memref<1x32xf32, #tpu.memory_space<vmem>>, vector<1x32xf32>
    %65 = vector.broadcast %64 : vector<1x32xf32> to vector<4x32xf32>
    %66 = arith.addf %63, %65 : vector<4x32xf32>
    %cst_36 = arith.constant 0.000000e+00 : f32
    %67 = vector.broadcast %cst_36 : f32 to vector<4x32xf32>
    %68 = arith.cmpf ogt, %66, %67 : vector<4x32xf32>
    %cst_37 = arith.constant 0.00999999977 : f32
    %69 = vector.broadcast %cst_37 : f32 to vector<4x32xf32>
    %70 = arith.mulf %69, %66 : vector<4x32xf32>
    %71 = arith.select %68, %66, %70 : vector<4x32xi1>, vector<4x32xf32>
    %72 = arith.truncf %71 : vector<4x32xf32> to vector<4x32xbf16>
    %c0_38 = arith.constant 0 : index
    %c0_39 = arith.constant 0 : index
    %73 = vector.load %arg14[%c0_38, %c0_39] : memref<32x1xbf16, #tpu.memory_space<vmem>>, vector<32x1xbf16>
    %cst_40 = arith.constant dense<0.000000e+00> : vector<4x1xf32>
    %74 = tpu.matmul %72, %73, %cst_40 {dimension_numbers = #tpu.dot_dimension_numbers<[1], [0], [0], [1], [0, 0, 1, 1], [], []>} : vector<4x32xbf16>, vector<32x1xbf16>, vector<4x1xf32> -> vector<4x1xf32>
    %c0_41 = arith.constant 0 : index
    %c0_42 = arith.constant 0 : index
    %75 = vector.load %arg15[%c0_41, %c0_42] : memref<1x1xf32, #tpu.memory_space<vmem>>, vector<1x1xf32>
    %76 = vector.broadcast %75 : vector<1x1xf32> to vector<4x1xf32>
    %77 = arith.addf %74, %76 : vector<4x1xf32>
    %78 = arith.negf %77 : vector<4x1xf32>
    %79 = math.exp %78 : vector<4x1xf32>
    %cst_43 = arith.constant 1.000000e+00 : f32
    %80 = vector.broadcast %cst_43 : f32 to vector<4x1xf32>
    %81 = arith.addf %80, %79 : vector<4x1xf32>
    %82 = arith.divf %80, %81 : vector<4x1xf32>
    %c0_44 = arith.constant 0 : index
    %c0_45 = arith.constant 0 : index
    %83 = vector.load %arg16[%c0_44, %c0_45] : memref<4x1xf32, #tpu.memory_space<vmem>>, vector<4x1xf32>
    tpu.vector_store %arg16[%c0_44, %c0_45], %82 {strides = array<i32>} : memref<4x1xf32, #tpu.memory_space<vmem>>, vector<4x1xf32>,
    return
  }
  func.func @transform_0(%arg0: i32) -> (i32, i32, i32) {
    %c0_i32 = arith.constant 0 : i32
    %c0_i32_0 = arith.constant 0 : i32
    %c0_i32_1 = arith.constant 0 : i32
    return %arg0, %c0_i32, %c0_i32_0 : i32, i32, i32
  }
  func.func @transform_1(%arg0: i32) -> (i32, i32) {
    %c0_i32 = arith.constant 0 : i32
    %c0_i32_0 = arith.constant 0 : i32
    return %arg0, %c0_i32 : i32, i32
  }
  func.func @transform_2(%arg0: i32) -> (i32, i32) {
    %c0_i32 = arith.constant 0 : i32
    %c0_i32_0 = arith.constant 0 : i32
    return %arg0, %c0_i32 : i32, i32
  }
  func.func @transform_3(%arg0: i32) -> (i32, i32) {
    %c0_i32 = arith.constant 0 : i32
    %c0_i32_0 = arith.constant 0 : i32
    %c0_i32_1 = arith.constant 0 : i32
    return %c0_i32, %c0_i32_0 : i32, i32
  }
  func.func @transform_4(%arg0: i32) -> (i32, i32) {
    %c0_i32 = arith.constant 0 : i32
    %c0_i32_0 = arith.constant 0 : i32
    %c0_i32_1 = arith.constant 0 : i32
    return %c0_i32, %c0_i32_0 : i32, i32
  }
  func.func @transform_5(%arg0: i32) -> (i32, i32) {
    %c0_i32 = arith.constant 0 : i32
    %c0_i32_0 = arith.constant 0 : i32
    %c0_i32_1 = arith.constant 0 : i32
    return %c0_i32, %c0_i32_0 : i32, i32
  }
  func.func @transform_6(%arg0: i32) -> (i32, i32) {
    %c0_i32 = arith.constant 0 : i32
    %c0_i32_0 = arith.constant 0 : i32
    %c0_i32_1 = arith.constant 0 : i32
    return %c0_i32, %c0_i32_0 : i32, i32
  }
  func.func @transform_7(%arg0: i32) -> (i32, i32) {
    %c0_i32 = arith.constant 0 : i32
    %c0_i32_0 = arith.constant 0 : i32
    %c0_i32_1 = arith.constant 0 : i32
    return %c0_i32, %c0_i32_0 : i32, i32
  }
  func.func @transform_8(%arg0: i32) -> (i32, i32) {
    %c0_i32 = arith.constant 0 : i32
    %c0_i32_0 = arith.constant 0 : i32
    %c0_i32_1 = arith.constant 0 : i32
    return %c0_i32, %c0_i32_0 : i32, i32
  }
  func.func @transform_9(%arg0: i32) -> (i32, i32) {
    %c0_i32 = arith.constant 0 : i32
    %c0_i32_0 = arith.constant 0 : i32
    %c0_i32_1 = arith.constant 0 : i32
    return %c0_i32, %c0_i32_0 : i32, i32
  }
  func.func @transform_10(%arg0: i32) -> (i32, i32) {
    %c0_i32 = arith.constant 0 : i32
    %c0_i32_0 = arith.constant 0 : i32
    %c0_i32_1 = arith.constant 0 : i32
    return %c0_i32, %c0_i32_0 : i32, i32
  }
  func.func @transform_11(%arg0: i32) -> (i32, i32) {
    %c0_i32 = arith.constant 0 : i32
    %c0_i32_0 = arith.constant 0 : i32
    %c0_i32_1 = arith.constant 0 : i32
    return %c0_i32, %c0_i32_0 : i32, i32
  }
  func.func @transform_12(%arg0: i32) -> (i32, i32) {
    %c0_i32 = arith.constant 0 : i32
    %c0_i32_0 = arith.constant 0 : i32
    %c0_i32_1 = arith.constant 0 : i32
    return %c0_i32, %c0_i32_0 : i32, i32
  }
  func.func @transform_13(%arg0: i32) -> (i32, i32) {
    %c0_i32 = arith.constant 0 : i32
    %c0_i32_0 = arith.constant 0 : i32
    %c0_i32_1 = arith.constant 0 : i32
    return %c0_i32, %c0_i32_0 : i32, i32
  }
  func.func @transform_14(%arg0: i32) -> (i32, i32) {
    %c0_i32 = arith.constant 0 : i32
    %c0_i32_0 = arith.constant 0 : i32
    %c0_i32_1 = arith.constant 0 : i32
    return %c0_i32, %c0_i32_0 : i32, i32
  }
  func.func @transform_15(%arg0: i32) -> (i32, i32) {
    %c0_i32 = arith.constant 0 : i32
    %c0_i32_0 = arith.constant 0 : i32
    return %arg0, %c0_i32 : i32, i32
  }
}

</mosaic_0001>

<bundles_post_ra>
// kernel: forward.3
= control target key start
LH: loop header
LB: loop body
LE: loop exit
PB: predicated region body
PF: predicated region fallthrough
CT: control target
= control target key end

     0   :  { %v1130_v0 = vmov 32   ;;  %vm225_vm0 = vcmask 1041409   ;;  %vm228_vm1 = vcmask 1042434   ;;  %vm231_vm2 = vcmask 1043459   ;;  %s1854_s0 = inlined_call_operand.vmem [shape: f32[12,8,33], index: 0, kind: input, shape index: {}]   ;;  %s1855_s4 = inlined_call_operand.vmem [shape: f32[1,32], index: 4, kind: input, shape index: {}]   ;;  %s1856_s5 = inlined_call_operand.vmem [shape: f32[1,32], index: 5, kind: input, shape index: {}]   ;;  %s1857_s3 = inlined_call_operand.vmem [shape: f32[1,32], index: 3, kind: input, shape index: {}]   ;;  %s1858_s1 = inlined_call_operand.vmem [shape: bf16[32,32], index: 1, kind: input, shape index: {}]   ;;  %s1859_s2 = inlined_call_operand.vmem [shape: bf16[32,32], index: 2, kind: input, shape index: {}]   ;;  %s1860_s6 = inlined_call_operand.vmem [shape: f32[12,1,32], index: 6, kind: output, shape index: {}]  }
   0x1   :  { %1070 = vset.pattern.permute.xlu2 %v1130_v0  ;;  %1069 = vset.pattern.permute.xlu1 %v1130_v0  ;;  %v28_v1 = vld [vmem:[%s1854_s0 + $0x20] sm:$0xff]  ;;  %v25_v2 = vld [vmem:[%s1854_s0 + $0x8] sm:$0xff]  ;;  %v26_v5 = vld [vmem:[%s1854_s0 + $0x10] sm:$0xff]  ;;  %vm234_vm3 = vcmask 1044484   ;;  %vm237_vm4 = vcmask 1045509   ;;  %vm240_vm5 = vcmask 1046534  }
   0x2   :  { %v24_v3 = vld [vmem:[%s1854_s0] sm:$0xff]  ;;  %1068 = vset.pattern.permute.xlu0 %v1130_v0  ;;  %64 = vperm.xlu2 %1070, %v28_v1   ;;  %v29_v4 = vld [vmem:[%s1854_s0 + $0x28] sm:$0xff]  ;;  %v27_v6 = vld [vmem:[%s1854_s0 + $0x18] sm:$0xff]  ;;  %v182_v13 = vpack.c.bf16 %v25_v2, %v25_v2  ;;  %v183_v14 = vpack.c.bf16 %v26_v5, %v26_v5  ;;  %v185_v17 = vpack.c.bf16 %v28_v1, %v28_v1  ;;  %vm243_vm6 = vcmask 1047559  }
   0x3   :  { %49 = vperm.xlu0 %1068, %v25_v2   ;;  %44 = vperm.xlu1 %1069, %v24_v3   ;;  %v34_v7 = vld [vmem:[%s1854_s0 + $0x50] sm:$0xff]  ;;  %v33_v8 = vld [vmem:[%s1854_s0 + $0x48] sm:$0xff]  ;;  %v35_v10 = vld [vmem:[%s1854_s0 + $0x58] sm:$0xff]  ;;  %v181_v15 = vpack.c.bf16 %v24_v3, %v24_v3  ;;  %v184_v16 = vpack.c.bf16 %v27_v6, %v27_v6  ;;  %v186_v19 = vpack.c.bf16 %v29_v4, %v29_v4  ;;  %vm264_vm7 = vcmask 261120  }
   0x4   :  { %v30_v9 = vld [vmem:[%s1854_s0 + $0x30] sm:$0xff]  ;;  %v31_v11 = vld [vmem:[%s1854_s0 + $0x38] sm:$0xff]  ;;  %v32_v12 = vld [vmem:[%s1854_s0 + $0x40] sm:$0xff]  ;;  %v1202_v18 = vunpack.c.l.b16 %v182_v13  ;;  %v191_v20 = vpack.c.bf16 %v34_v7, %v34_v7  ;;  %v190_v21 = vpack.c.bf16 %v33_v8, %v33_v8  ;;  %v1204_v22 = vunpack.c.l.b16 %v183_v14 }
   0x5   :  { %v187_v23 = vpack.c.bf16 %v30_v9, %v30_v9  ;;  %v188_v24 = vpack.c.bf16 %v31_v11, %v31_v11  ;;  %v1206_v25 = vunpack.c.l.b16 %v181_v15  ;;  %v1208_v26 = vunpack.c.l.b16 %v184_v16  ;;  %v1226_v36 = vld [vmem:[%s1855_s4] ss:$0 sm:$0xff]  ;;  %v1066_v39 = vld [vmem:[%s1858_s1 + $0x8] sm:$0xff] }
   0x6   :  { %v189_v27 = vpack.c.bf16 %v32_v12, %v32_v12  ;;  %v1210_v28 = vunpack.c.l.b16 %v185_v17  ;;  %v192_v29 = vpack.c.bf16 %v35_v10, %v35_v10  ;;  %v1212_v30 = vunpack.c.l.b16 %v186_v19  ;;  %v1242_v43 = vld [vmem:[%s1856_s5] ss:$0 sm:$0xff]  ;;  %274 = vmatpush.bf16.msra.mxu0 %v1066_v39  ;;  %312 = vmatpush.bf16.msra.mxu1 %v1066_v39 }
   0x7   :  { %v1214_v31 = vunpack.c.l.b16 %v191_v20  ;;  %v1216_v32 = vunpack.c.l.b16 %v190_v21  ;;  %v224_v33 = vrot.slane %v1202_v18, 7  ;;  %v1219_v34 = vunpack.c.l.b16 %v187_v23  ;;  %350 = vmatpush.bf16.msra.mxu2 %v1066_v39  ;;  %388 = vmatpush.bf16.msra.mxu3 %v1066_v39  ;;  %v1065_v53 = vld [vmem:[%s1858_s1] sm:$0xff] }
   0x8   :  { %v1221_v35 = vunpack.c.l.b16 %v188_v24  ;;  %v227_v37 = vrot.slane %v1204_v22, 6  ;;  %v1229_v38 = vunpack.c.l.b16 %v189_v27  ;;  %v230_v41 = vrot.slane %v1208_v26, 5 }
   0x9   :  { %v226_v40 = vsel %vm225_vm0, %v224_v33, %v1206_v25  ;;  %v1237_v42 = vunpack.c.l.b16 %v192_v29  ;;  %v233_v45 = vrot.slane %v1210_v28, 4  ;;  %v236_v48 = vrot.slane %v1212_v30, 3 }
   0xa   :  { %69 = vperm.xlu2 %1070, %v29_v4   ;;  %v229_v44 = vsel %vm228_vm1, %v227_v37, %v226_v40  ;;  %v245_v49 = vrot.slane %v1216_v32, 7  ;;  %v239_v52 = vrot.slane %v1219_v34, 2  ;;  %v242_v55 = vrot.slane %v1221_v35, 1  ;;  %275 = vmatpush.bf16.msra.mxu0 %v1065_v53 }
   0xb   :  { %54 = vperm.xlu0 %1068, %v26_v5   ;;  %59 = vperm.xlu1 %1069, %v27_v6   ;;  %v232_v47 = vsel %vm231_vm2, %v230_v41, %v229_v44  ;;  %v247_v59 = vrot.slane %v1214_v31, 6  ;;  %v249_v61 = vrot.slane %v1237_v42, 5  ;;  %v404_v17 = vrot.slane %v1212_v30, 7 }
   0xc   :  { %v235_v51 = vsel %vm234_vm3, %v233_v45, %v232_v47  ;;  %v246_v56 = vsel %vm225_vm0, %v245_v49, %v1229_v38  ;;  %313 = vmatpush.bf16.msra.mxu1 %v1065_v53  ;;  %351 = vmatpush.bf16.msra.mxu2 %v1065_v53  ;;  %v410_v19 = vrot.slane %v1229_v38, 4  ;;  %v411_v20 = vrot.slane %v1216_v32, 3 }
   0xd   :  { %v238_v54 = vsel %vm237_vm4, %v236_v48, %v235_v51  ;;  %v248_v63 = vsel %vm228_vm1, %v247_v59, %v246_v56  ;;  %389 = vmatpush.bf16.msra.mxu3 %v1065_v53  ;;  %v406_v27 = vrot.slane %v1219_v34, 6  ;;  %v408_v33 = vrot.slane %v1221_v35, 5 }
   0xe   :  { %v241_v58 = vsel %vm240_vm5, %v239_v52, %v238_v54  ;;  %427 = vmatpush.bf16.msrb.mxu0 %v1066_v39  ;;  %v250_v0 = vsel %vm231_vm2, %v249_v61, %v248_v63  ;;  %v412_v37 = vsel %vm225_vm0, %v411_v20, %v410_v19  ;;  %v415_v44 = vrot.slane %v1237_v42, 1 }
   0xf   :  { %v244_v60 = vsel %vm243_vm6, %v242_v55, %v241_v58  ;;  %vm1014_vm8 = vcmask 253952  }
  0x10   :  { %466 = vmatpush.bf16.msrb.mxu1 %v1066_v39  ;;  %v251_v2 = vpack.c.b16 %v250_v0, %v244_v60  ;;  %505 = vmatpush.bf16.msrb.mxu2 %v1066_v39 }
  0x11   :  { %544 = vmatpush.bf16.msrb.mxu3 %v1066_v39  ;;  %v413_v39 = vrot.slane %v1214_v31, 2 }
  0x12   :  { %94 = vperm.xlu2 %1070, %v34_v7   ;;  %1039 = vmatmul.msk.bf16.vlgmr.msra.gmra.mxu0 %vm264_vm7, %v251_v2  ;;  %v396_v7 = vrot.slane %v1206_v25, 4  ;;  %v1309_v2 = vld [vmem:[%s1859_s2 + $0x8] sm:$0xff] }
  0x13   :  { %89 = vperm.xlu0 %1068, %v33_v8   ;;  %74 = vperm.xlu1 %1069, %v30_v9   ;;  %v397_v8 = vrot.slane %v1202_v18, 3 }
  0x14   :  { %467 = vmatpush.bf16.msrb.mxu1 %v1065_v53  ;;  %428 = vmatpush.bf16.msrb.mxu0 %v1065_v53 }
  0x15   :  { %506 = vmatpush.bf16.msrb.mxu2 %v1065_v53  ;;  %545 = vmatpush.bf16.msrb.mxu3 %v1065_v53 }
  0x18   :  { %642 = vmatpush.bf16.msra.mxu0 %v1309_v2 }
  0x1a   :  { %99 = vperm.xlu2 %1070, %v35_v10   ;;  %v399_v10 = vrot.slane %v1204_v22, 2 }
  0x1b   :  { %79 = vperm.xlu0 %1068, %v31_v11   ;;  %84 = vperm.xlu1 %1069, %v32_v12   ;;  %v398_v11 = vsel %vm225_vm0, %v397_v8, %v396_v7  ;;  %v401_v12 = vrot.slane %v1208_v26, 1  ;;  %v1315_v7 = vld [vmem:[%s1859_s2] sm:$0xff] }
  0x1c   :  { %v400_v14 = vsel %vm228_vm1, %v399_v10, %v398_v11  ;;  %643 = vmatpush.bf16.msra.mxu0 %v1315_v7 }
  0x1d   :  { %v402_v16 = vsel %vm231_vm2, %v401_v12, %v400_v14 }
  0x1e   :  { %v403_v24 = vsel %vm234_vm3, %v1210_v28, %v402_v16 }
  0x1f   :  { %v405_v29 = vsel %vm237_vm4, %v404_v17, %v403_v24 }
  0x20   :  { %v407_v41 = vsel %vm240_vm5, %v406_v27, %v405_v29 }
  0x21   :  { %v409_v45 = vsel %vm243_vm6, %v408_v33, %v407_v41 }
  0x5c   :  { %v65_v46 = vpop.permute.xlu2 %64 }
  0x5d   :  { %v109_v50 = vmul.f32 %v1226_v36, %v65_v46  ;;  %v414_v46 = vsel %vm228_vm1, %v413_v39, %v412_v37 }
  0x5e   :  { %v416_v49 = vsel %vm231_vm2, %v415_v44, %v414_v46 }
  0x5f   :  { %v125_v57 = vadd.f32 %v1242_v43, %v109_v50  ;;  %v417_v50 = vpack.c.b16 %v416_v49, %v409_v45 }
  0x61   :  { %v137_v62 = vmax.f32 %v125_v57, 0.0  ;;  %1043 = vmatmul.msk.bf16.vlgmr.msrb.gmra.mxu0 %vm264_vm7, %v417_v50 }
  0x62   :  { %839 = vmatpush.bf16.msrb.mxu0 %v1309_v2 }
  0x63   :  { %v149_v1 = vsub.f32 0.0, %v137_v62 }
  0x64   :  { %v70_v3 = vpop.permute.xlu2 %69 }
  0x65   :  { %v110_v4 = vmul.f32 %v1226_v36, %v70_v3  ;;  %v165_v5 = vmul.f32 1.442695, %v149_v1 }
  0x66   :  { %840 = vmatpush.bf16.msrb.mxu0 %v1315_v7 }
  0x67   :  { %v126_v6 = vadd.f32 %v1242_v43, %v110_v4  ;;  %1074 = vpow2.f32 %v165_v5 }
  0x69   :  { %v138_v9 = vmax.f32 %v126_v6, 0.0 }
  0x6b   :  { %v150_v13 = vsub.f32 0.0, %v138_v9 }
  0x6c   :  { %v95_v15 = vpop.permute.xlu2 %94 }
  0x6d   :  { %v167_v21 = vmul.f32 1.442695, %v150_v13  ;;  %v115_v23 = vmul.f32 %v1226_v36, %v95_v15  ;;  %v1292_v47 = vpop.eup %1074 }
  0x6e   :  { %v556_v58 = vmul.f32 0.0, %v1292_v47  ;;  %v672_v33 = vrot.slane %v1292_v47, 5  ;;  %v718_v37 = vrot.slane %v1292_v47, 6  ;;  %v764_v44 = vrot.slane %v1292_v47, 7 }
  0x6f   :  { %1076 = vpow2.f32 %v167_v21  ;;  %v131_v40 = vadd.f32 %v1242_v43, %v115_v23 }
  0x70   :  { %v568_v3 = vpack.c.bf16 %v556_v58, %v556_v58 }
  0x71   :  { %v143_v48 = vmax.f32 %v131_v40, 0.0 }
  0x72   :  { %v1319_v15 = vunpack.c.l.b16 %v568_v3 }
  0x73   :  { %v155_v51 = vsub.f32 0.0, %v143_v48 }
  0x74   :  { %v100_v52 = vpop.permute.xlu2 %99  ;;  %v606_v41 = vrot.slane %v1319_v15, 4 }
  0x75   :  { %v1295_v53 = vpop.eup %1076  ;;  %v177_v54 = vmul.f32 1.442695, %v155_v51  ;;  %v116_v55 = vmul.f32 %v1226_v36, %v100_v52  ;;  %v50_v56 = vpop.permute.xlu0 %49 }
  0x76   :  { %v45_v57 = vpop.permute.xlu1 %44  ;;  %v106_v59 = vmul.f32 %v1226_v36, %v50_v56  ;;  %v557_v0 = vmul.f32 0.0, %v1295_v53  ;;  %v674_v46 = vrot.slane %v1295_v53, 4  ;;  %v720_v48 = vrot.slane %v1295_v53, 5 }
  0x77   :  { %v105_v60 = vmul.f32 %v1226_v36, %v45_v57  ;;  %1078 = vpow2.f32 %v177_v54  ;;  %v132_v61 = vadd.f32 %v1242_v43, %v116_v55  ;;  %v766_v49 = vrot.slane %v1295_v53, 6 }
  0x78   :  { %v122_v62 = vadd.f32 %v1242_v43, %v106_v59  ;;  %v569_v10 = vpack.c.bf16 %v557_v0, %v557_v0 }
  0x79   :  { %v121_v63 = vadd.f32 %v1242_v43, %v105_v60  ;;  %v144_v1 = vmax.f32 %v132_v61, 0.0 }
  0x7a   :  { %v134_v4 = vmax.f32 %v122_v62, 0.0  ;;  %v1327_v27 = vunpack.c.l.b16 %v569_v10 }
  0x7b   :  { %v133_v5 = vmax.f32 %v121_v63, 0.0  ;;  %v156_v6 = vsub.f32 0.0, %v144_v1 }
  0x7c   :  { %v146_v8 = vsub.f32 0.0, %v134_v4  ;;  %v608_v52 = vrot.slane %v1327_v27, 3 }
  0x7d   :  { %v145_v9 = vsub.f32 0.0, %v133_v5  ;;  %v1317_v11 = vpop.eup %1078  ;;  %v179_v12 = vmul.f32 1.442695, %v156_v6  ;;  %v55_v13 = vpop.permute.xlu0 %54 }
  0x7e   :  { %v60_v14 = vpop.permute.xlu1 %59  ;;  %v159_v16 = vmul.f32 1.442695, %v146_v8  ;;  %v107_v19 = vmul.f32 %v1226_v36, %v55_v13  ;;  %v562_v21 = vmul.f32 0.0, %v1317_v11  ;;  %v682_v54 = vrot.slane %v1317_v11, 7 }
  0x7f   :  { %v157_v17 = vmul.f32 1.442695, %v145_v9  ;;  %v108_v20 = vmul.f32 %v1226_v36, %v60_v14  ;;  %1080 = vpow2.f32 %v179_v12  ;;  %v775_v59 = vrot.slane %v1317_v11, 1 }
  0x80   :  { %1082 = vpow2.f32 %v159_v16  ;;  %v123_v23 = vadd.f32 %v1242_v43, %v107_v19  ;;  %v574_v29 = vpack.c.bf16 %v562_v21, %v562_v21 }
  0x81   :  { %v124_v24 = vadd.f32 %v1242_v43, %v108_v20  ;;  %1084 = vpow2.f32 %v157_v17 }
  0x82   :  { %v135_v39 = vmax.f32 %v123_v23, 0.0  ;;  %v1334_v45 = vunpack.c.l.b16 %v574_v29 }
  0x83   :  { %v136_v40 = vmax.f32 %v124_v24, 0.0 }
  0x84   :  { %v147_v50 = vsub.f32 0.0, %v135_v39  ;;  %v616_v58 = vrot.slane %v1334_v45, 6 }
  0x85   :  { %v148_v51 = vsub.f32 0.0, %v136_v40  ;;  %v1342_v55 = vpop.eup %1080  ;;  %v90_v56 = vpop.permute.xlu0 %89 }
  0x86   :  { %v75_v57 = vpop.permute.xlu1 %74  ;;  %v1348_v62 = vpop.eup %1082  ;;  %v161_v63 = vmul.f32 1.442695, %v147_v50  ;;  %v114_v1 = vmul.f32 %v1226_v36, %v90_v56  ;;  %v563_v6 = vmul.f32 0.0, %v1342_v55  ;;  %v684_v8 = vrot.slane %v1342_v55, 6 }
  0x87   :  { %v163_v0 = vmul.f32 1.442695, %v148_v51  ;;  %v111_v3 = vmul.f32 %v1226_v36, %v75_v57  ;;  %v1352_v4 = vpop.eup %1084  ;;  %v553_v5 = vmul.f32 0.0, %v1348_v62  ;;  %v713_v9 = vrot.slane %v1348_v62, 1 }
  0x88   :  { %1086 = vpow2.f32 %v161_v63  ;;  %v130_v10 = vadd.f32 %v1242_v43, %v114_v1  ;;  %v552_v13 = vmul.f32 0.0, %v1352_v4  ;;  %v575_v16 = vpack.c.bf16 %v563_v6, %v563_v6 }
  0x89   :  { %v127_v12 = vadd.f32 %v1242_v43, %v111_v3  ;;  %1088 = vpow2.f32 %v163_v0  ;;  %v565_v14 = vpack.c.bf16 %v553_v5, %v553_v5  ;;  %v666_v17 = vrot.slane %v1352_v4, 1 }
  0x8a   :  { %v142_v19 = vmax.f32 %v130_v10, 0.0  ;;  %v564_v21 = vpack.c.bf16 %v552_v13, %v552_v13  ;;  %v712_v23 = vrot.slane %v1352_v4, 2  ;;  %v1363_v29 = vunpack.c.l.b16 %v575_v16 }
  0x8b   :  { %v139_v20 = vmax.f32 %v127_v12, 0.0  ;;  %v589_v24 = vunpack.c.l.b16 %v565_v14  ;;  %v667_v39 = vsel %vm225_vm0, %v1348_v62, %v666_v17  ;;  %v730_v40 = vrot.slane %v1342_v55, 7 }
  0x8c   :  { %v154_v50 = vsub.f32 0.0, %v142_v19  ;;  %v588_v56 = vunpack.c.l.b16 %v564_v21  ;;  %v714_v57 = vsel %vm225_vm0, %v713_v9, %v712_v23  ;;  %v618_v3 = vrot.slane %v1363_v29, 5 }
  0x8d   :  { %v151_v51 = vsub.f32 0.0, %v139_v20  ;;  %v80_v63 = vpop.permute.xlu0 %79  ;;  %v600_v1 = vrot.slane %v589_v24, 7  ;;  %v758_v5 = vrot.slane %v1352_v4, 3  ;;  %v759_v6 = vrot.slane %v1348_v62, 2 }
  0x8e   :  { %v85_v0 = vpop.permute.xlu1 %84  ;;  %v1372_v10 = vpop.eup %1086  ;;  %v175_v12 = vmul.f32 1.442695, %v154_v50  ;;  %v112_v14 = vmul.f32 %v1226_v36, %v80_v63 }
  0x8f   :  { %v169_v13 = vmul.f32 1.442695, %v151_v51  ;;  %v113_v16 = vmul.f32 %v1226_v36, %v85_v0  ;;  %v1376_v17 = vpop.eup %1088  ;;  %v554_v9 = vmul.f32 0.0, %v1372_v10  ;;  %v601_v19 = vsel %vm225_vm0, %v600_v1, %v588_v56 }
  0x90   :  { %v668_v20 = vrot.slane %v1372_v10, 7  ;;  %v715_v21 = vsel %vm228_vm1, %v1372_v10, %v714_v57  ;;  %1090 = vpow2.f32 %v175_v12  ;;  %v128_v23 = vadd.f32 %v1242_v43, %v112_v14 }
  0x91   :  { %v129_v24 = vadd.f32 %v1242_v43, %v113_v16  ;;  %v555_v50 = vmul.f32 0.0, %v1376_v17  ;;  %1092 = vpow2.f32 %v169_v13  ;;  %v566_v36 = vpack.c.bf16 %v554_v9, %v554_v9 }
  0x92   :  { %v669_v51 = vsel %vm228_vm1, %v668_v20, %v667_v39  ;;  %v670_v63 = vrot.slane %v1376_v17, 6  ;;  %v140_v0 = vmax.f32 %v128_v23, 0.0  ;;  %v716_v61 = vrot.slane %v1376_v17, 7 }
  0x93   :  { %v141_v56 = vmax.f32 %v129_v24, 0.0  ;;  %v567_v1 = vpack.c.bf16 %v555_v50, %v555_v50  ;;  %v590_v60 = vunpack.c.l.b16 %v566_v36  ;;  %v760_v12 = vsel %vm225_vm0, %v759_v6, %v758_v5 }
  0x94   :  { %v671_v57 = vsel %vm231_vm2, %v670_v63, %v669_v51  ;;  %v761_v43 = vrot.slane %v1372_v10, 1  ;;  %v152_v14 = vsub.f32 0.0, %v140_v0  ;;  %v717_v23 = vsel %vm231_vm2, %v716_v61, %v715_v21 }
  0x95   :  { %v153_v16 = vsub.f32 0.0, %v141_v56  ;;  %v591_v13 = vunpack.c.l.b16 %v567_v1  ;;  %v673_v39 = vsel %vm234_vm3, %v672_v33, %v671_v57  ;;  %v602_v9 = vrot.slane %v590_v60, 6 }
  0x96   :  { %v675_v20 = vsel %vm237_vm4, %v674_v46, %v673_v39  ;;  %v762_v24 = vsel %vm228_vm1, %v761_v43, %v760_v12  ;;  %v1400_v50 = vpop.eup %1090  ;;  %v171_v5 = vmul.f32 1.442695, %v152_v14  ;;  %v719_v51 = vsel %vm234_vm3, %v718_v37, %v717_v23 }
  0x97   :  { %v173_v6 = vmul.f32 1.442695, %v153_v16  ;;  %v604_v36 = vrot.slane %v591_v13, 5  ;;  %v1405_v63 = vpop.eup %1092  ;;  %v561_v33 = vmul.f32 0.0, %v1400_v50  ;;  %v603_v60 = vsel %vm228_vm1, %v602_v9, %v601_v19 }
  0x98   :  { %v721_v46 = vsel %vm237_vm4, %v720_v48, %v719_v51  ;;  %v727_v61 = vrot.slane %v1400_v50, 1  ;;  %1094 = vpow2.f32 %v171_v5  ;;  %v558_v21 = vmul.f32 0.0, %v1405_v63 }
  0x99   :  { %v605_v0 = vsel %vm231_vm2, %v604_v36, %v603_v60  ;;  %v676_v56 = vrot.slane %v1405_v63, 3  ;;  %1096 = vpow2.f32 %v173_v6  ;;  %v573_v37 = vpack.c.bf16 %v561_v33, %v561_v33 }
  0x9a   :  { %v607_v1 = vsel %vm234_vm3, %v606_v41, %v605_v0  ;;  %v722_v19 = vrot.slane %v1405_v63, 4  ;;  %v570_v57 = vpack.c.bf16 %v558_v21, %v558_v21  ;;  %v763_v43 = vsel %vm231_vm2, %v1376_v17, %v762_v24 }
  0x9b   :  { %v609_v48 = vsel %vm237_vm4, %v608_v52, %v607_v1  ;;  %v677_v12 = vsel %vm240_vm5, %v676_v56, %v675_v20  ;;  %v597_v14 = vunpack.c.l.b16 %v573_v37  ;;  %v765_v15 = vsel %vm234_vm3, %v764_v44, %v763_v43 }
  0x9c   :  { %v723_v16 = vsel %vm240_vm5, %v722_v19, %v721_v46  ;;  %v768_v41 = vrot.slane %v1405_v63, 5  ;;  %v594_v13 = vunpack.c.l.b16 %v570_v57  ;;  %v767_v27 = vsel %vm237_vm4, %v766_v49, %v765_v15 }
  0x9d   :  { %v773_v52 = vrot.slane %v1400_v50, 2  ;;  %v804_v39 = vrot.slane %v1352_v4, 4  ;;  %v614_v9 = vrot.slane %v597_v14, 7  ;;  %v805_v23 = vrot.slane %v1348_v62, 3 }
  0x9e   :  { %v769_v20 = vsel %vm240_vm5, %v768_v41, %v767_v27  ;;  %v807_v24 = vrot.slane %v1372_v10, 2  ;;  %v1439_v5 = vpop.eup %1094  ;;  %v610_v44 = vrot.slane %v594_v13, 2  ;;  %v809_v6 = vrot.slane %v1376_v17, 1 }
  0x9f   :  { %v814_v36 = vrot.slane %v1405_v63, 6  ;;  %v819_v49 = vrot.slane %v1400_v50, 3  ;;  %v1444_v51 = vpop.eup %1096  ;;  %v559_v33 = vmul.f32 0.0, %v1439_v5  ;;  %v678_v60 = vrot.slane %v1439_v5, 2 }
  0xa0   :  { %v724_v46 = vrot.slane %v1439_v5, 3  ;;  %v770_v21 = vrot.slane %v1439_v5, 4  ;;  %v560_v0 = vmul.f32 0.0, %v1444_v51  ;;  %v611_v56 = vsel %vm240_vm5, %v610_v44, %v609_v48 }
  0xa1   :  { %v680_v37 = vrot.slane %v1444_v51, 1  ;;  %v726_v1 = vrot.slane %v1444_v51, 2  ;;  %v571_v19 = vpack.c.bf16 %v559_v33, %v559_v33  ;;  %v1455_v57 = vsel %vm243_vm6, %v678_v60, %v677_v12 }
  0xa2   :  { %v1458_v43 = vsel %vm243_vm6, %v724_v46, %v723_v16  ;;  %v1461_v14 = vsel %vm243_vm6, %v770_v21, %v769_v20  ;;  %v572_v15 = vpack.c.bf16 %v560_v0, %v560_v0  ;;  %v772_v13 = vrot.slane %v1444_v51, 3 }
  0xa3   :  { %v681_v41 = vsel %vm225_vm0, %v1400_v50, %v680_v37  ;;  %v728_v48 = vsel %vm225_vm0, %v727_v61, %v726_v1  ;;  %v595_v27 = vunpack.c.l.b16 %v571_v19  ;;  %v806_v44 = vsel %vm225_vm0, %v805_v23, %v804_v39 }
  0xa4   :  { %v683_v12 = vsel %vm228_vm1, %v682_v54, %v681_v41  ;;  %v729_v16 = vsel %vm228_vm1, %v1317_v11, %v728_v48  ;;  %v596_v20 = vunpack.c.l.b16 %v572_v15  ;;  %v774_v60 = vsel %vm225_vm0, %v773_v52, %v772_v13 }
  0xa5   :  { %v1476_v33 = vsel %vm231_vm2, %v684_v8, %v683_v12  ;;  %v1481_v61 = vsel %vm231_vm2, %v730_v40, %v729_v16  ;;  %v612_v46 = vrot.slane %v595_v27, 1  ;;  %v776_v54 = vsel %vm228_vm1, %v775_v59, %v774_v60 }
  0xa6   :  { %v808_v39 = vsel %vm228_vm1, %v807_v24, %v806_v44  ;;  %v816_v23 = vrot.slane %v1439_v5, 5  ;;  %v615_v21 = vsel %vm225_vm0, %v614_v9, %v596_v20  ;;  %v1492_v8 = vsel %vm231_vm2, %v1342_v55, %v776_v54 }
  0xa7   :  { %v810_v40 = vsel %vm231_vm2, %v809_v6, %v808_v39  ;;  %v818_v0 = vrot.slane %v1444_v51, 4  ;;  %v613_v52 = vsel %vm243_vm6, %v612_v46, %v611_v56  ;;  %v617_v59 = vsel %vm228_vm1, %v616_v58, %v615_v21 }
  0xa8   :  { %v811_v24 = vsel %vm234_vm3, %v1292_v47, %v810_v40  ;;  %v823_v37 = vrot.slane %v1342_v55, 1  ;;  %v619_v9 = vsel %vm231_vm2, %v618_v3, %v617_v59  ;;  %v1861_v1 = vrot.slane %v1295_v53, 7 }
  0xa9   :  { %v820_v19 = vsel %vm225_vm0, %v819_v49, %v818_v0  ;;  %v851_v56 = vrot.slane %v1352_v4, 5  ;;  %v620_v45 = vpack.c.b16 %v619_v9, %v613_v52  ;;  %v1862_v15 = vrot.slane %v1317_v11, 2 }
  0xaa   :  { %v813_v6 = vsel %vm237_vm4, %v1861_v1, %v811_v24  ;;  %v852_v48 = vrot.slane %v1348_v62, 4  ;;  %v854_v13 = vrot.slane %v1372_v10, 3  ;;  %v856_v49 = vrot.slane %v1376_v17, 2 }
  0xab   :  { %v815_v58 = vsel %vm240_vm5, %v814_v36, %v813_v6  ;;  %v822_v41 = vsel %vm228_vm1, %v1862_v15, %v820_v19  ;;  %1055 = vmatmul.msk.bf16.vlgmr.msra.gmra.mxu0 %vm264_vm7, %v620_v45  ;;  %v858_v27 = vrot.slane %v1292_v47, 1  ;;  %v861_v12 = vrot.slane %v1405_v63, 7 }
  0xac   :  { %v1517_v29 = vsel %vm243_vm6, %v816_v23, %v815_v58  ;;  %v1520_v3 = vsel %vm231_vm2, %v823_v37, %v822_v41  ;;  %v853_v36 = vsel %vm225_vm0, %v852_v48, %v851_v56  ;;  %v863_v16 = vrot.slane %v1439_v5, 6 }
  0xad   :  { %v855_v44 = vsel %vm228_vm1, %v854_v13, %v853_v36  ;;  %v865_v20 = vrot.slane %v1444_v51, 5  ;;  %v866_v60 = vrot.slane %v1400_v50, 4  ;;  %v868_v46 = vrot.slane %v1317_v11, 3 }
  0xae   :  { %v857_v54 = vsel %vm231_vm2, %v856_v49, %v855_v44  ;;  %v870_v39 = vrot.slane %v1342_v55, 2  ;;  %v898_v23 = vrot.slane %v1352_v4, 6  ;;  %v899_v21 = vrot.slane %v1348_v62, 5 }
  0xaf   :  { %v859_v40 = vsel %vm234_vm3, %v858_v27, %v857_v54  ;;  %v867_v0 = vsel %vm225_vm0, %v866_v60, %v865_v20  ;;  %v901_v52 = vrot.slane %v1372_v10, 4  ;;  %v903_v59 = vrot.slane %v1376_v17, 3 }
  0xb0   :  { %v860_v24 = vsel %vm237_vm4, %v1295_v53, %v859_v40  ;;  %v869_v37 = vsel %vm228_vm1, %v868_v46, %v867_v0  ;;  %v900_v9 = vsel %vm225_vm0, %v899_v21, %v898_v23  ;;  %v905_v1 = vrot.slane %v1292_v47, 2 }
  0xb1   :  { %v862_v6 = vsel %vm240_vm5, %v861_v12, %v860_v24  ;;  %v1548_v19 = vsel %vm231_vm2, %v870_v39, %v869_v37  ;;  %v902_v56 = vsel %vm228_vm1, %v901_v52, %v900_v9  ;;  %v907_v45 = vrot.slane %v1295_v53, 1 }
  0xb2   :  { %v1553_v58 = vsel %vm243_vm6, %v863_v16, %v862_v6  ;;  %v904_v15 = vsel %vm231_vm2, %v903_v59, %v902_v56  ;;  %v910_v41 = vrot.slane %v1439_v5, 7  ;;  %v912_v48 = vrot.slane %v1444_v51, 6 }
  0xb3   :  { %v906_v13 = vsel %vm234_vm3, %v905_v1, %v904_v15  ;;  %v913_v49 = vrot.slane %v1400_v50, 5  ;;  %v915_v36 = vrot.slane %v1317_v11, 4  ;;  %v945_v12 = vrot.slane %v1352_v4, 7 }
  0xb4   :  { %v908_v27 = vsel %vm237_vm4, %v907_v45, %v906_v13  ;;  %v946_v44 = vrot.slane %v1348_v62, 6  ;;  %v948_v16 = vrot.slane %v1372_v10, 5  ;;  %v917_v46 = vrot.slane %v1342_v55, 3 }
  0xb5   :  { %v909_v20 = vsel %vm240_vm5, %v1405_v63, %v908_v27  ;;  %v914_v60 = vsel %vm225_vm0, %v913_v49, %v912_v48  ;;  %v950_v54 = vrot.slane %v1376_v17, 4  ;;  %v952_v62 = vrot.slane %v1292_v47, 3 }
  0xb6   :  { %v1571_v39 = vsel %vm243_vm6, %v910_v41, %v909_v20  ;;  %v916_v23 = vsel %vm228_vm1, %v915_v36, %v914_v60  ;;  %v947_v4 = vsel %vm225_vm0, %v946_v44, %v945_v12  ;;  %v956_v40 = vrot.slane %v1405_v63, 1 }
  0xb7   :  { %v1577_v10 = vsel %vm231_vm2, %v917_v46, %v916_v23  ;;  %v949_v21 = vsel %vm228_vm1, %v948_v16, %v947_v4  ;;  %v959_v0 = vrot.slane %v1444_v51, 7  ;;  %v954_v52 = vrot.slane %v1295_v53, 2 }
  0xb8   :  { %v951_v17 = vsel %vm231_vm2, %v950_v54, %v949_v21  ;;  %v960_v59 = vrot.slane %v1400_v50, 6  ;;  %v962_v37 = vrot.slane %v1317_v11, 5  ;;  %v964_v1 = vrot.slane %v1342_v55, 4 }
  0xb9   :  { %v953_v24 = vsel %vm234_vm3, %v952_v62, %v951_v17  ;;  %v282_v50 = vrot.slane %v1206_v25, 1  ;;  %v284_v11 = vrot.slane %v1204_v22, 7  ;;  %v286_v56 = vrot.slane %v1208_v26, 6 }
  0xba   :  { %v955_v47 = vsel %vm237_vm4, %v954_v52, %v953_v24  ;;  %v961_v9 = vsel %vm225_vm0, %v960_v59, %v959_v0  ;;  %v288_v45 = vrot.slane %v1210_v28, 5  ;;  %v296_v55 = vrot.slane %v1229_v38, 1 }
  0xbb   :  { %v957_v63 = vsel %vm240_vm5, %v956_v40, %v955_v47  ;;  %v963_v51 = vsel %vm228_vm1, %v962_v37, %v961_v9  ;;  %v283_v15 = vsel %vm225_vm0, %v1202_v18, %v282_v50  ;;  %v290_v41 = vrot.slane %v1212_v30, 4 }
  0xbc   :  { %v1594_v6 = vsel %vm243_vm6, %v1439_v5, %v957_v63  ;;  %v1597_v53 = vsel %vm231_vm2, %v964_v1, %v963_v51  ;;  %v298_v5 = vrot.slane %v1214_v31, 7  ;;  %v300_v48 = vrot.slane %v1237_v42, 6 }
  0xbd   :  { %v285_v13 = vsel %vm228_vm1, %v284_v11, %v283_v15  ;;  %v292_v49 = vrot.slane %v1219_v34, 3  ;;  %v297_v36 = vsel %vm225_vm0, %v1216_v32, %v296_v55  ;;  %v294_v12 = vrot.slane %v1221_v35, 2 }
  0xbe   :  { %v287_v27 = vsel %vm231_vm2, %v286_v56, %v285_v13  ;;  %v299_v44 = vsel %vm228_vm1, %v298_v5, %v297_v36  ;;  %v435_v23 = vrot.slane %v1206_v25, 5  ;;  %v436_v4 = vrot.slane %v1202_v18, 4  ;;  %v277_v5 = vpop.f32.mrf.mxu0  ;;  %v1656_v36 = vld [vmem:[%s1857_s3] ss:$0 sm:$0xff] }
  0xbf   :  { %v289_v16 = vsel %vm234_vm3, %v288_v45, %v287_v27  ;;  %v301_v60 = vsel %vm231_vm2, %v300_v48, %v299_v44  ;;  %v438_v62 = vrot.slane %v1204_v22, 3  ;;  %v440_v40 = vrot.slane %v1208_v26, 2 }
  0xc0   :  { %v291_v20 = vsel %vm237_vm4, %v290_v41, %v289_v16  ;;  %v442_v0 = vrot.slane %v1210_v28, 1  ;;  %v437_v17 = vsel %vm225_vm0, %v436_v4, %v435_v23  ;;  %v449_v52 = vrot.slane %v1229_v38, 5 }
  0xc1   :  { %v293_v46 = vsel %vm240_vm5, %v292_v49, %v291_v20  ;;  %v450_v59 = vrot.slane %v1216_v32, 4  ;;  %v439_v24 = vsel %vm228_vm1, %v438_v62, %v437_v17  ;;  %v445_v9 = vrot.slane %v1219_v34, 7 }
  0xc2   :  { %v295_v54 = vsel %vm243_vm6, %v294_v12, %v293_v46  ;;  %v441_v37 = vsel %vm231_vm2, %v440_v40, %v439_v24  ;;  %v452_v1 = vrot.slane %v1214_v31, 3  ;;  %v447_v50 = vrot.slane %v1221_v35, 6 }
  0xc3   :  { %v302_v21 = vpack.c.b16 %v301_v60, %v295_v54  ;;  %v443_v47 = vsel %vm234_vm3, %v442_v0, %v441_v37  ;;  %v451_v51 = vsel %vm225_vm0, %v450_v59, %v449_v52  ;;  %v454_v11 = vrot.slane %v1237_v42, 2 }
  0xc4   :  { %v444_v63 = vsel %vm237_vm4, %v1212_v30, %v443_v47  ;;  %v453_v45 = vsel %vm228_vm1, %v452_v1, %v451_v51  ;;  %v278_v12 = vadd.f32 %v1656_v36, %v277_v5  ;;  %v321_v40 = vrot.slane %v1202_v18, 1 }
  0xc5   :  { %1040 = vmatmul.msk.bf16.vlgmr.msra.gmra.mxu1 %vm264_vm7, %v302_v21  ;;  %v446_v56 = vsel %vm240_vm5, %v445_v9, %v444_v63  ;;  %v455_v15 = vsel %vm231_vm2, %v454_v11, %v453_v45  ;;  %v320_v21 = vrot.slane %v1206_v25, 2  ;;  %v324_v0 = vrot.slane %v1208_v26, 7 }
  0xc6   :  { %700 = vmatpush.bf16.msra.mxu1 %v1309_v2  ;;  %v448_v55 = vsel %vm243_vm6, %v447_v50, %v446_v56  ;;  %v279_v48 = vpop.f32.mrf.mxu0  ;;  %v326_v17 = vrot.slane %v1210_v28, 6  ;;  %v334_v52 = vrot.slane %v1229_v38, 2  ;;  %v328_v24 = vrot.slane %v1212_v30, 5 }
  0xc7   :  { %v456_v41 = vpack.c.b16 %v455_v15, %v448_v55  ;;  %v280_v16 = vadd.f32 %v1656_v36, %v279_v48  ;;  %v322_v59 = vsel %vm225_vm0, %v321_v40, %v320_v21  ;;  %v330_v47 = vrot.slane %v1219_v34, 4 }
  0xc8   :  { %v323_v37 = vsel %vm228_vm1, %v1204_v22, %v322_v59  ;;  %v332_v1 = vrot.slane %v1221_v35, 3  ;;  %v474_v15 = vrot.slane %v1206_v25, 6  ;;  %v477_v5 = vrot.slane %v1204_v22, 4 }
  0xc9   :  { %v325_v9 = vsel %vm231_vm2, %v324_v0, %v323_v37  ;;  %v486_v40 = vrot.slane %v1221_v35, 7  ;;  %v493_v0 = vrot.slane %v1237_v42, 3 }
  0xca   :  { %701 = vmatpush.bf16.msra.mxu1 %v1315_v7  ;;  %v327_v51 = vsel %vm234_vm3, %v326_v17, %v325_v9 }
  0xcb   :  { %v329_v11 = vsel %vm237_vm4, %v328_v24, %v327_v51 }
  0xcc   :  { %v331_v45 = vsel %vm240_vm5, %v330_v47, %v329_v11 }
  0xcd   :  { %v333_v55 = vsel %vm243_vm6, %v332_v1, %v331_v45 }
  0xd5   :  { %1044 = vmatmul.msk.bf16.vlgmr.msrb.gmra.mxu1 %vm264_vm7, %v456_v41  ;;  %v475_v41 = vrot.slane %v1202_v18, 5 }
  0xd6   :  { %886 = vmatpush.bf16.msrb.mxu1 %v1309_v2 }
  0xda   :  { %887 = vmatpush.bf16.msrb.mxu1 %v1315_v7 }
  0xde   :  { %v1649_v13 = vpop.f32.mrf.mxu0 }
  0xe6   :  { %v1651_v49 = vpop.f32.mrf.mxu0 }
 0x128   :  { %v645_v27 = vpop.f32.mrf.mxu0 }
 0x129   :  { %v650_v44 = vadd.f32 %v645_v27, %v278_v12  ;;  %v479_v27 = vrot.slane %v1208_v26, 3  ;;  %v481_v12 = vrot.slane %v1210_v28, 2 }
 0x12b   :  { %1098 = vtanh.f32 %v650_v44  ;;  %v476_v44 = vsel %vm225_vm0, %v475_v41, %v474_v15  ;;  %v359_v15 = vrot.slane %v1202_v18, 2  ;;  %v361_v41 = vrot.slane %v1204_v22, 1 }
 0x130   :  { %v647_v20 = vpop.f32.mrf.mxu0 }
 0x131   :  { %v651_v60 = vadd.f32 %v647_v20, %v280_v16  ;;  %v1099_v46 = vpop.eup %1098  ;;  %v483_v16 = vrot.slane %v1212_v30, 1  ;;  %v488_v20 = vrot.slane %v1229_v38, 6 }
 0x132   :  { %v688_v23 = vmul.f32 %v1099_v46, %v1455_v57  ;;  %v335_v57 = vrot.slane %v1216_v32, 1  ;;  %v478_v46 = vsel %vm228_vm1, %v477_v5, %v476_v44  ;;  %v372_v44 = vrot.slane %v1229_v38, 3 }
 0x133   :  { %1100 = vtanh.f32 %v651_v60  ;;  %v489_v60 = vrot.slane %v1216_v32, 5 }
 0x134   :  { %v336_v63 = vsel %vm225_vm0, %v335_v57, %v334_v52 }
 0x135   :  { %v337_v50 = vsel %vm228_vm1, %v1214_v31, %v336_v63  ;;  %v490_v21 = vsel %vm225_vm0, %v489_v60, %v488_v20  ;;  %v373_v60 = vrot.slane %v1216_v32, 2 }
 0x139   :  { %v1101_v54 = vpop.eup %1100 }
 0x13a   :  { %v689_v4 = vmul.f32 %v1101_v54, %v1476_v33  ;;  %v338_v33 = vrot.slane %v1237_v42, 7  ;;  %v480_v54 = vsel %vm231_vm2, %v479_v27, %v478_v46  ;;  %v364_v27 = vrot.slane %v1210_v28, 7 }
 0x13b   :  { %v375_v46 = vrot.slane %v1214_v31, 1 }
 0x13c   :  { %v690_v62 = vpack.c.bf16 %v689_v4, %v688_v23  ;;  %v339_v56 = vsel %vm231_vm2, %v338_v33, %v337_v50  ;;  %v482_v23 = vsel %vm234_vm3, %v481_v12, %v480_v54  ;;  %v491_v4 = vrot.slane %v1214_v31, 4 }
 0x13d   :  { %v340_v48 = vpack.c.b16 %v339_v56, %v333_v55  ;;  %v358_v55 = vrot.slane %v1206_v25, 3  ;;  %v366_v12 = vrot.slane %v1212_v30, 6 }
 0x13e   :  { %1056 = vmatmul.msk.bf16.vlgmr.msra.gmra.mxu1 %vm264_vm7, %v690_v62  ;;  %v484_v62 = vsel %vm237_vm4, %v483_v16, %v482_v23  ;;  %v492_v52 = vsel %vm228_vm1, %v491_v4, %v490_v21  ;;  %v368_v23 = vrot.slane %v1219_v34, 5  ;;  %v374_v21 = vsel %vm225_vm0, %v373_v60, %v372_v44 }
 0x13f   :  { %1041 = vmatmul.msk.bf16.vlgmr.msra.gmra.mxu2 %vm264_vm7, %v340_v48  ;;  %v485_v17 = vsel %vm240_vm5, %v1219_v34, %v484_v62  ;;  %v494_v24 = vsel %vm231_vm2, %v493_v0, %v492_v52  ;;  %v360_v20 = vsel %vm225_vm0, %v359_v15, %v358_v55  ;;  %v370_v62 = vrot.slane %v1221_v35, 4 }
 0x140   :  { %746 = vmatpush.bf16.msra.mxu2 %v1309_v2  ;;  %v487_v59 = vsel %vm243_vm6, %v486_v40, %v485_v17  ;;  %v362_v54 = vsel %vm228_vm1, %v361_v41, %v360_v20  ;;  %v376_v40 = vsel %vm228_vm1, %v375_v46, %v374_v21 }
 0x141   :  { %v495_v57 = vpack.c.b16 %v494_v24, %v487_v59  ;;  %v377_v17 = vsel %vm231_vm2, %v1237_v42, %v376_v40  ;;  %v513_v24 = vrot.slane %v1206_v25, 7 }
 0x142   :  { %v315_v33 = vpop.f32.mrf.mxu1 }
 0x143   :  { %v316_v63 = vadd.f32 %v1656_v36, %v315_v33  ;;  %v516_v33 = vrot.slane %v1204_v22, 5 }
 0x144   :  { %747 = vmatpush.bf16.msra.mxu2 %v1315_v7 }
 0x14a   :  { %v317_v37 = vpop.f32.mrf.mxu1 }
 0x14b   :  { %v318_v50 = vadd.f32 %v1656_v36, %v317_v37 }
 0x14f   :  { %1045 = vmatmul.msk.bf16.vlgmr.msrb.gmra.mxu2 %vm264_vm7, %v495_v57  ;;  %v514_v57 = vrot.slane %v1202_v18, 6 }
 0x150   :  { %933 = vmatpush.bf16.msrb.mxu2 %v1309_v2 }
 0x152   :  { %v1713_v47 = vpop.f32.mrf.mxu1 }
 0x154   :  { %934 = vmatpush.bf16.msrb.mxu2 %v1315_v7 }
 0x15a   :  { %v1715_v9 = vpop.f32.mrf.mxu1 }
 0x1bb   :  { %v703_v1 = vpop.f32.mrf.mxu1 }
 0x1bc   :  { %v708_v51 = vadd.f32 %v703_v1, %v316_v63  ;;  %v518_v1 = vrot.slane %v1208_v26, 4  ;;  %v520_v63 = vrot.slane %v1210_v28, 3  ;;  %v530_v28 = vrot.slane %v1214_v31, 5 }
 0x1be   :  { %1102 = vtanh.f32 %v708_v51  ;;  %v515_v51 = vsel %vm225_vm0, %v514_v57, %v513_v24 }
 0x1bf   :  { %v517_v25 = vsel %vm228_vm1, %v516_v33, %v515_v51  ;;  %v431_v33 = vadd.f32 %v1656_v36, %v1649_v13  ;;  %v470_v13 = vadd.f32 %v1656_v36, %v1713_v47 }
 0x1c0   :  { %v519_v18 = vsel %vm231_vm2, %v518_v1, %v517_v25 }
 0x1c1   :  { %v521_v22 = vsel %vm234_vm3, %v520_v63, %v519_v18  ;;  %v433_v63 = vadd.f32 %v1656_v36, %v1651_v49  ;;  %v472_v49 = vadd.f32 %v1656_v36, %v1715_v9 }
 0x1c2   :  { %v353_v31 = vpop.f32.mrf.mxu2 }
 0x1c3   :  { %v705_v11 = vpop.f32.mrf.mxu1 }
 0x1c4   :  { %v709_v56 = vadd.f32 %v705_v11, %v318_v50  ;;  %v1103_v45 = vpop.eup %1102  ;;  %v522_v50 = vrot.slane %v1212_v30, 2  ;;  %v527_v11 = vrot.slane %v1229_v38, 7 }
 0x1c5   :  { %v734_v48 = vmul.f32 %v1103_v45, %v1458_v43  ;;  %v363_v43 = vsel %vm231_vm2, %v1208_v26, %v362_v54  ;;  %v524_v26 = vrot.slane %v1219_v34, 1 }
 0x1c6   :  { %1104 = vtanh.f32 %v709_v56  ;;  %v528_v56 = vrot.slane %v1216_v32, 6  ;;  %v523_v30 = vsel %vm237_vm4, %v522_v50, %v521_v22  ;;  %v532_v32 = vrot.slane %v1237_v42, 4 }
 0x1c7   :  { %v525_v45 = vsel %vm240_vm5, %v524_v26, %v523_v30 }
 0x1c8   :  { %v529_v38 = vsel %vm225_vm0, %v528_v56, %v527_v11  ;;  %v526_v15 = vsel %vm243_vm6, %v1221_v35, %v525_v45 }
 0x1c9   :  { %v531_v55 = vsel %vm228_vm1, %v530_v28, %v529_v38 }
 0x1ca   :  { %v533_v41 = vsel %vm231_vm2, %v532_v32, %v531_v55  ;;  %v355_v42 = vpop.f32.mrf.mxu2 }
 0x1cb   :  { %v534_v34 = vpack.c.b16 %v533_v41, %v526_v15  ;;  %v356_v35 = vadd.f32 %v1656_v36, %v355_v42 }
 0x1cc   :  { %v1105_v5 = vpop.eup %1104 }
 0x1cd   :  { %v735_v16 = vmul.f32 %v1105_v5, %v1481_v61  ;;  %v365_v61 = vsel %vm234_vm3, %v364_v27, %v363_v43 }
 0x1ce   :  { %v367_v0 = vsel %vm237_vm4, %v366_v12, %v365_v61  ;;  %v354_v12 = vadd.f32 %v1656_v36, %v353_v31 }
 0x1cf   :  { %v736_v4 = vpack.c.bf16 %v735_v16, %v734_v48  ;;  %v369_v52 = vsel %vm240_vm5, %v368_v23, %v367_v0 }
 0x1d0   :  { %v371_v59 = vsel %vm243_vm6, %v370_v62, %v369_v52 }
 0x1d1   :  { %1057 = vmatmul.msk.bf16.vlgmr.msra.gmra.mxu2 %vm264_vm7, %v736_v4  ;;  %v378_v37 = vpack.c.b16 %v377_v17, %v371_v59 }
 0x1d2   :  { %v508_v5 = vpop.f32.mrf.mxu2 }
 0x1d3   :  { %1042 = vmatmul.msk.bf16.vlgmr.msra.gmra.mxu3 %vm264_vm7, %v378_v37  ;;  %v509_v47 = vadd.f32 %v1656_v36, %v508_v5 }
 0x1d4   :  { %792 = vmatpush.bf16.msra.mxu3 %v1309_v2 }
 0x1d8   :  { %793 = vmatpush.bf16.msra.mxu3 %v1315_v7 }
 0x1da   :  { %v1772_v48 = vpop.f32.mrf.mxu2 }
 0x1db   :  { %v511_v9 = vadd.f32 %v1656_v36, %v1772_v48 }
 0x1e3   :  { %1046 = vmatmul.msk.bf16.vlgmr.msrb.gmra.mxu3 %vm264_vm7, %v534_v34 }
 0x1e4   :  { %980 = vmatpush.bf16.msrb.mxu3 %v1309_v2 }
 0x1e8   :  { %981 = vmatpush.bf16.msrb.mxu3 %v1315_v7 }
 0x254   :  { %v749_v27 = vpop.f32.mrf.mxu2 }
 0x255   :  { %v754_v44 = vadd.f32 %v749_v27, %v354_v12 }
 0x256   :  { %v391_v23 = vpop.f32.mrf.mxu3 }
 0x257   :  { %1106 = vtanh.f32 %v754_v44  ;;  %v392_v61 = vadd.f32 %v1656_v36, %v391_v23 }
 0x25c   :  { %v751_v16 = vpop.f32.mrf.mxu2 }
 0x25d   :  { %v755_v20 = vadd.f32 %v751_v16, %v356_v35  ;;  %v1107_v60 = vpop.eup %1106 }
 0x25e   :  { %v780_v2 = vmul.f32 %v1107_v60, %v1461_v14  ;;  %v393_v4 = vpop.f32.mrf.mxu3 }
 0x25f   :  { %1108 = vtanh.f32 %v755_v20  ;;  %v394_v0 = vadd.f32 %v1656_v36, %v393_v4 }
 0x265   :  { %v1109_v46 = vpop.eup %1108 }
 0x266   :  { %v781_v7 = vmul.f32 %v1109_v46, %v1492_v8  ;;  %v547_v43 = vpop.f32.mrf.mxu3 }
 0x267   :  { %v548_v5 = vadd.f32 %v1656_v36, %v547_v43 }
 0x268   :  { %v782_v54 = vpack.c.bf16 %v781_v7, %v780_v2 }
 0x26a   :  { %1058 = vmatmul.msk.bf16.vlgmr.msra.gmra.mxu3 %vm264_vm7, %v782_v54 }
 0x26e   :  { %v549_v62 = vpop.f32.mrf.mxu3 }
 0x26f   :  { %v550_v44 = vadd.f32 %v1656_v36, %v549_v62 }
 0x2ed   :  { %v795_v21 = vpop.f32.mrf.mxu3 }
 0x2ee   :  { %v800_v40 = vadd.f32 %v795_v21, %v392_v61 }
 0x2f0   :  { %1110 = vtanh.f32 %v800_v40 }
 0x2f5   :  { %v797_v17 = vpop.f32.mrf.mxu3 }
 0x2f6   :  { %v801_v52 = vadd.f32 %v797_v17, %v394_v0  ;;  %v1111_v14 = vpop.eup %1110 }
 0x2f7   :  { %v827_v8 = vmul.f32 %v1111_v14, %v1517_v29 }
 0x2f8   :  { %1112 = vtanh.f32 %v801_v52 }
 0x2fe   :  { %v1113_v59 = vpop.eup %1112 }
 0x2ff   :  { %v828_v24 = vmul.f32 %v1113_v59, %v1520_v3 }
 0x301   :  { %v829_v57 = vpack.c.bf16 %v828_v24, %v827_v8 }
 0x303   :  { %1059 = vmatmul.msk.bf16.vlgmr.msrb.gmra.mxu0 %vm264_vm7, %v829_v57 }
 0x380   :  { %v842_v37 = vpop.f32.mrf.mxu0 }
 0x381   :  { %v847_v1 = vadd.f32 %v842_v37, %v431_v33 }
 0x383   :  { %1114 = vtanh.f32 %v847_v1 }
 0x388   :  { %v844_v51 = vpop.f32.mrf.mxu0 }
 0x389   :  { %v1115_v50 = vpop.eup %1114  ;;  %v848_v11 = vadd.f32 %v844_v51, %v433_v63 }
 0x38a   :  { %v874_v56 = vmul.f32 %v1115_v50, %v1553_v58 }
 0x38b   :  { %1116 = vtanh.f32 %v848_v11 }
 0x391   :  { %v1117_v29 = vpop.eup %1116 }
 0x392   :  { %v875_v3 = vmul.f32 %v1117_v29, %v1548_v19 }
 0x394   :  { %v876_v25 = vpack.c.bf16 %v875_v3, %v874_v56 }
 0x396   :  { %1060 = vmatmul.msk.bf16.vlgmr.msrb.gmra.mxu1 %vm264_vm7, %v876_v25 }
 0x413   :  { %v889_v18 = vpop.f32.mrf.mxu1 }
 0x414   :  { %v894_v22 = vadd.f32 %v889_v18, %v470_v13 }
 0x416   :  { %1118 = vtanh.f32 %v894_v22 }
 0x41b   :  { %v891_v26 = vpop.f32.mrf.mxu1 }
 0x41c   :  { %v1119_v28 = vpop.eup %1118  ;;  %v895_v30 = vadd.f32 %v891_v26, %v472_v49 }
 0x41d   :  { %v921_v58 = vmul.f32 %v1119_v28, %v1571_v39 }
 0x41e   :  { %1120 = vtanh.f32 %v895_v30 }
 0x424   :  { %v1121_v38 = vpop.eup %1120 }
 0x425   :  { %v922_v19 = vmul.f32 %v1121_v38, %v1577_v10 }
 0x427   :  { %v923_v32 = vpack.c.bf16 %v922_v19, %v921_v58 }
 0x429   :  { %1061 = vmatmul.msk.bf16.vlgmr.msrb.gmra.mxu2 %vm264_vm7, %v923_v32 }
 0x4ac   :  { %v936_v45 = vpop.f32.mrf.mxu2 }
 0x4ad   :  { %v941_v55 = vadd.f32 %v936_v45, %v509_v47 }
 0x4af   :  { %1122 = vtanh.f32 %v941_v55 }
 0x4b4   :  { %v938_v15 = vpop.f32.mrf.mxu2 }
 0x4b5   :  { %v1123_v41 = vpop.eup %1122  ;;  %v942_v34 = vadd.f32 %v938_v15, %v511_v9 }
 0x4b6   :  { %v968_v39 = vmul.f32 %v1123_v41, %v1594_v6 }
 0x4b7   :  { %1124 = vtanh.f32 %v942_v34 }
 0x4bd   :  { %v1125_v31 = vpop.eup %1124 }
 0x4be   :  { %v969_v10 = vmul.f32 %v1125_v31, %v1597_v53 }
 0x4c0   :  { %v970_v42 = vpack.c.bf16 %v969_v10, %v968_v39 }
 0x4c2   :  { %1062 = vmatmul.msk.bf16.vlgmr.msrb.gmra.mxu3 %vm264_vm7, %v970_v42 }
 0x545   :  { %v983_v27 = vpop.f32.mrf.mxu3 }
 0x546   :  { %v988_v12 = vadd.f32 %v983_v27, %v548_v5 }
 0x548   :  { %1126 = vtanh.f32 %v988_v12 }
 0x54d   :  { %v985_v48 = vpop.f32.mrf.mxu3 }
 0x54e   :  { %v1127_v35 = vpop.eup %1126  ;;  %v989_v16 = vadd.f32 %v985_v48, %v550_v44 }
 0x54f   :  { %v994_v20 = vrot.slane %v1127_v35, 1  ;;  %v995_v6 = vrot.slane %v1127_v35, 2  ;;  %v996_v60 = vrot.slane %v1127_v35, 3  ;;  %1015 = vst.msk [vmem:[%s1860_s6] sm:$0x1] %vm1014_vm8, %v1127_v35  ;;  %v997_v53 = vrot.slane %v1127_v35, 4 }
 0x550   :  { %1128 = vtanh.f32 %v989_v16  ;;  %v998_v46 = vrot.slane %v1127_v35, 5  ;;  %v999_v36 = vrot.slane %v1127_v35, 6  ;;  %v1000_v2 = vrot.slane %v1127_v35, 7 }
 0x551   :  { %1016 = vst.msk [vmem:[%s1860_s6 + $0x1] sm:$0x1] %vm1014_vm8, %v994_v20 }
 0x552   :  { %1017 = vst.msk [vmem:[%s1860_s6 + $0x2] sm:$0x1] %vm1014_vm8, %v995_v6 }
 0x553   :  { %1018 = vst.msk [vmem:[%s1860_s6 + $0x3] sm:$0x1] %vm1014_vm8, %v996_v60 }
 0x554   :  { %1019 = vst.msk [vmem:[%s1860_s6 + $0x4] sm:$0x1] %vm1014_vm8, %v997_v53 }
 0x555   :  { %1020 = vst.msk [vmem:[%s1860_s6 + $0x5] sm:$0x1] %vm1014_vm8, %v998_v46 }
 0x556   :  { %v1129_v7 = vpop.eup %1128  ;;  %1021 = vst.msk [vmem:[%s1860_s6 + $0x6] sm:$0x1] %vm1014_vm8, %v999_v36 }
 0x557   :  { %v1001_v54 = vrot.slane %v1129_v7, 1  ;;  %v1002_v23 = vrot.slane %v1129_v7, 2  ;;  %v1003_v4 = vrot.slane %v1129_v7, 3  ;;  %1022 = vst.msk [vmem:[%s1860_s6 + $0x7] sm:$0x1] %vm1014_vm8, %v1000_v2 }
 0x558   :  { %1023 = vst.msk [vmem:[%s1860_s6 + $0x8] sm:$0x1] %vm1014_vm8, %v1129_v7 }
 0x559   :  { %1024 = vst.msk [vmem:[%s1860_s6 + $0x9] sm:$0x1] %vm1014_vm8, %v1001_v54 }
 0x55a   :  { %1025 = vst.msk [vmem:[%s1860_s6 + $0xa] sm:$0x1] %vm1014_vm8, %v1002_v23 }
 0x55b   :  { %1026 = vst.msk [vmem:[%s1860_s6 + $0xb] sm:$0x1] %vm1014_vm8, %v1003_v4 }

// kernel: forward.4
= control target key start
LH: loop header
LB: loop body
LE: loop exit
PB: predicated region body
PF: predicated region fallthrough
CT: control target
= control target key end

     0   :  { %v649_v0 = vmov 16   ;;  %vm97_vm0 = vcmask 1041409   ;;  %vm106_vm1 = vcmask 130048   ;;  %vm329_vm2 = vcmask 261120   ;;  %s897_s0 = inlined_call_operand.vmem [shape: f32[2,10,17], index: 0, kind: input, shape index: {}]   ;;  %s898_s1 = inlined_call_operand.vmem [shape: bf16[16,32], index: 1, kind: input, shape index: {}]   ;;  %s899_s4 = inlined_call_operand.vmem [shape: f32[1,32], index: 4, kind: input, shape index: {}]   ;;  %s900_s5 = inlined_call_operand.vmem [shape: f32[1,32], index: 5, kind: input, shape index: {}]   ;;  %s901_s3 = inlined_call_operand.vmem [shape: f32[1,32], index: 3, kind: input, shape index: {}]   ;;  %s902_s2 = inlined_call_operand.vmem [shape: bf16[32,32], index: 2, kind: input, shape index: {}]   ;;  %s903_s6 = inlined_call_operand.vmem [shape: f32[2,2,32], index: 6, kind: output, shape index: {}]  }
   0x1   :  { %616 = vset.pattern.permute.xlu0 %v649_v0  ;;  %v26_v1 = vld [vmem:[%s897_s0 + $0x10] sm:$0xff]  ;;  %v691_v2 = vld [vmem:[%s897_s0 + $0x18] sm:$0x3]  ;;  %617 = vset.pattern.permute.xlu1 %v649_v0  ;;  %v24_v4 = vld [vmem:[%s897_s0] sm:$0xff]  ;;  %vm545_vm3 = vcmask 253952  }
   0x2   :  { %46 = vperm.xlu0 %616, %v26_v1   ;;  %v86_v3 = vpack.c.bf16 %v26_v1, %v26_v1  ;;  %v699_v5 = vld [vmem:[%s898_s1] sm:$0xff]  ;;  %51 = vperm.xlu1 %617, %v691_v2   ;;  %v85_v6 = vpack.c.bf16 %v24_v4, %v24_v4  ;;  %v719_v11 = vld [vmem:[%s897_s0 + $0x8] sm:$0x3] }
   0x3   :  { %156 = vmatpush.bf16.msra.mxu2 %v699_v5  ;;  %117 = vmatpush.bf16.msra.mxu0 %v699_v5  ;;  %v731_v18 = vld [vmem:[%s902_s2 + $0x8] sm:$0xff]  ;;  %v738_v20 = vld [vmem:[%s902_s2] sm:$0xff] }
   0x4   :  { %v702_v7 = vunpack.c.l.b16 %v86_v3  ;;  %v706_v8 = vunpack.c.l.b16 %v85_v6  ;;  %176 = vmatpush.bf16.msra.mxu3 %v699_v5  ;;  %136 = vmatpush.bf16.msra.mxu1 %v699_v5  ;;  %v749_v23 = vld [vmem:[%s899_s4] ss:$0 sm:$0xff] }
   0x5   :  { %v755_v24 = vld [vmem:[%s900_s5] ss:$0 sm:$0xff] }
   0x6   :  { %v143_v9 = vrot.slane %v702_v7, 1  ;;  %v142_v10 = vrot.slane %v706_v8, 2  ;;  %v222_v14 = vrot.slane %v706_v8, 6  ;;  %v223_v15 = vrot.slane %v702_v7, 5 }
   0x7   :  { %236 = vmatpush.bf16.msrb.mxu2 %v699_v5  ;;  %196 = vmatpush.bf16.msrb.mxu0 %v699_v5  ;;  %v96_v19 = vrot.slane %v702_v7, 7  ;;  %v162_v28 = vrot.slane %v706_v8, 3  ;;  %v163_v29 = vrot.slane %v702_v7, 2 }
   0x8   :  { %256 = vmatpush.bf16.msrb.mxu3 %v699_v5  ;;  %216 = vmatpush.bf16.msrb.mxu1 %v699_v5  ;;  %v144_v12 = vsel %vm97_vm0, %v143_v9, %v142_v10  ;;  %v224_v16 = vsel %vm97_vm0, %v223_v15, %v222_v14  ;;  %v242_v15 = vrot.slane %v706_v8, 7 }
   0x9   :  { %v145_v13 = vpack.c.b16 %v144_v12, %v144_v12  ;;  %v225_v17 = vpack.c.b16 %v224_v16, %v224_v16  ;;  %v98_v21 = vsel %vm97_vm0, %v96_v19, %v706_v8  ;;  %v164_v31 = vsel %vm97_vm0, %v163_v29, %v162_v28 }
   0xa   :  { %36 = vperm.xlu0 %616, %v24_v4   ;;  %41 = vperm.xlu1 %617, %v719_v11   ;;  %v99_v22 = vpack.c.b16 %v98_v21, %v98_v21  ;;  %v165_v32 = vpack.c.b16 %v164_v31, %v164_v31  ;;  %v243_v16 = vrot.slane %v702_v7, 6  ;;  %v182_v31 = vrot.slane %v706_v8, 4 }
   0xb   :  { %586 = vmatmul.msk.bf16.vlgmr.msra.gmra.mxu2 %vm106_vm1, %v145_v13 }
   0xc   :  { %339 = vmatpush.bf16.msra.mxu2 %v731_v18  ;;  %584 = vmatmul.msk.bf16.vlgmr.msra.gmra.mxu0 %vm106_vm1, %v99_v22 }
   0xd   :  { %281 = vmatpush.bf16.msra.mxu0 %v699_v5  ;;  %587 = vmatmul.msk.bf16.vlgmr.msra.gmra.mxu3 %vm106_vm1, %v165_v32  ;;  %v183_v32 = vrot.slane %v702_v7, 3 }
   0xe   :  { %364 = vmatpush.bf16.msra.mxu3 %v731_v18 }
  0x10   :  { %340 = vmatpush.bf16.msra.mxu2 %v738_v20 }
  0x12   :  { %365 = vmatpush.bf16.msra.mxu3 %v738_v20 }
  0x1b   :  { %590 = vmatmul.msk.bf16.vlgmr.msrb.gmra.mxu2 %vm106_vm1, %v225_v17  ;;  %v244_v17 = vsel %vm97_vm0, %v243_v16, %v242_v15 }
  0x1c   :  { %436 = vmatpush.bf16.msrb.mxu2 %v731_v18  ;;  %v245_v19 = vpack.c.b16 %v244_v17, %v244_v17 }
  0x1e   :  { %591 = vmatmul.msk.bf16.vlgmr.msrb.gmra.mxu3 %vm106_vm1, %v245_v19 }
  0x1f   :  { %460 = vmatpush.bf16.msrb.mxu3 %v731_v18 }
  0x20   :  { %437 = vmatpush.bf16.msrb.mxu2 %v738_v20 }
  0x23   :  { %461 = vmatpush.bf16.msrb.mxu3 %v738_v20 }
  0x74   :  { %v47_v25 = vpop.permute.xlu0 %46 }
  0x75   :  { %v59_v26 = vmul.f32 %v749_v23, %v47_v25 }
  0x77   :  { %v67_v27 = vadd.f32 %v755_v24, %v59_v26 }
  0x79   :  { %v71_v30 = vmax.f32 %v67_v27, 0.0  ;;  %v123_v27 = vrot.slane %v706_v8, 1 }
  0x7b   :  { %v75_v33 = vsub.f32 0.0, %v71_v30  ;;  %v124_v28 = vsel %vm97_vm0, %v702_v7, %v123_v27 }
  0x7c   :  { %v37_v34 = vpop.permute.xlu0 %36  ;;  %v125_v29 = vpack.c.b16 %v124_v28, %v124_v28 }
  0x7d   :  { %v81_v35 = vmul.f32 1.442695, %v75_v33  ;;  %v57_v36 = vmul.f32 %v749_v23, %v37_v34  ;;  %v184_v33 = vsel %vm97_vm0, %v183_v32, %v182_v31 }
  0x7e   :  { %585 = vmatmul.msk.bf16.vlgmr.msra.gmra.mxu1 %vm106_vm1, %v125_v29  ;;  %v185_v34 = vpack.c.b16 %v184_v33, %v184_v33 }
  0x7f   :  { %621 = vpow2.f32 %v81_v35  ;;  %v65_v37 = vadd.f32 %v755_v24, %v57_v36  ;;  %300 = vmatpush.bf16.msra.mxu1 %v699_v5  ;;  %v816_v5 = vld [vmem:[%s901_s3] ss:$0 sm:$0xff] }
  0x80   :  { %588 = vmatmul.msk.bf16.vlgmr.msrb.gmra.mxu0 %vm106_vm1, %v185_v34 }
  0x81   :  { %v69_v38 = vmax.f32 %v65_v37, 0.0  ;;  %388 = vmatpush.bf16.msrb.mxu0 %v731_v18 }
  0x83   :  { %v73_v39 = vsub.f32 0.0, %v69_v38 }
  0x85   :  { %v622_v40 = vpop.eup %621  ;;  %v77_v41 = vmul.f32 1.442695, %v73_v39  ;;  %389 = vmatpush.bf16.msrb.mxu0 %v738_v20 }
  0x86   :  { %v307_v42 = vmul.f32 0.0, %v622_v40  ;;  %v374_v44 = vrot.slane %v622_v40, 1  ;;  %v398_v45 = vrot.slane %v622_v40, 2  ;;  %v422_v48 = vrot.slane %v622_v40, 3 }
  0x87   :  { %623 = vpow2.f32 %v77_v41  ;;  %v446_v49 = vrot.slane %v622_v40, 4  ;;  %v470_v50 = vrot.slane %v622_v40, 5  ;;  %v494_v63 = vrot.slane %v622_v40, 6 }
  0x88   :  { %v309_v43 = vpack.c.bf16 %v307_v42, %v307_v42 }
  0x89   :  { %v119_v22 = vpop.f32.mrf.mxu0 }
  0x8a   :  { %v313_v47 = vunpack.c.l.b16 %v309_v43  ;;  %v120_v36 = vadd.f32 %v816_v5, %v119_v22 }
  0x8c   :  { %v314_v9 = vrot.slane %v313_v47, 7 }
  0x8d   :  { %v624_v46 = vpop.eup %623 }
  0x8e   :  { %v306_v51 = vmul.f32 0.0, %v624_v46  ;;  %v350_v52 = vrot.slane %v624_v46, 1  ;;  %v373_v53 = vrot.slane %v624_v46, 2  ;;  %v397_v54 = vrot.slane %v624_v46, 3  ;;  %v767_v55 = vpop.f32.mrf.mxu2 }
  0x8f   :  { %v421_v56 = vrot.slane %v624_v46, 4  ;;  %v445_v57 = vrot.slane %v624_v46, 5  ;;  %v469_v58 = vrot.slane %v624_v46, 6  ;;  %v493_v59 = vrot.slane %v624_v46, 7 }
  0x90   :  { %v308_v60 = vpack.c.bf16 %v306_v51, %v306_v51  ;;  %v351_v61 = vsel %vm97_vm0, %v622_v40, %v350_v52  ;;  %v771_v62 = vsel %vm97_vm0, %v374_v44, %v373_v53  ;;  %v774_v0 = vsel %vm97_vm0, %v398_v45, %v397_v54  ;;  %v805_v30 = vpop.f32.mrf.mxu3 }
  0x91   :  { %v777_v1 = vsel %vm97_vm0, %v422_v48, %v421_v56  ;;  %v780_v3 = vsel %vm97_vm0, %v446_v49, %v445_v57  ;;  %v783_v4 = vsel %vm97_vm0, %v470_v50, %v469_v58  ;;  %v786_v10 = vsel %vm97_vm0, %v494_v63, %v493_v59  ;;  %v121_v26 = vpop.f32.mrf.mxu0 }
  0x92   :  { %v312_v6 = vunpack.c.l.b16 %v308_v60  ;;  %v263_v44 = vpack.c.bf16 %v691_v2, %v691_v2  ;;  %v262_v46 = vpack.c.bf16 %v719_v11, %v719_v11  ;;  %v202_v2 = vrot.slane %v706_v8, 5 }
  0x93   :  { %v203_v56 = vrot.slane %v702_v7, 4  ;;  %v179_v29 = vadd.f32 %v816_v5, %v805_v30 }
  0x94   :  { %v315_v12 = vsel %vm97_vm0, %v314_v9, %v312_v6  ;;  %v267_v45 = vunpack.c.l.b16 %v263_v44  ;;  %v266_v49 = vunpack.c.l.b16 %v262_v46 }
  0x95   :  { %v316_v13 = vpack.c.b16 %v315_v12, %v315_v12  ;;  %v204_v11 = vsel %vm97_vm0, %v203_v56, %v202_v2 }
  0x96   :  { %v160_v14 = vpop.f32.mrf.mxu2  ;;  %v268_v48 = vrot.slane %v267_v45, 7  ;;  %v205_v57 = vpack.c.b16 %v204_v11, %v204_v11  ;;  %v287_v9 = vrot.slane %v266_v49, 1 }
  0x97   :  { %602 = vmatmul.msk.bf16.vlgmr.msra.gmra.mxu2 %vm329_vm2, %v316_v13 }
  0x98   :  { %533 = vmatpush.bf16.msra.mxu2 %v731_v18  ;;  %v180_v35 = vpop.f32.mrf.mxu3  ;;  %v269_v50 = vsel %vm97_vm0, %v268_v48, %v266_v49  ;;  %589 = vmatmul.msk.bf16.vlgmr.msrb.gmra.mxu1 %vm106_vm1, %v205_v57  ;;  %v288_v12 = vsel %vm97_vm0, %v267_v45, %v287_v9 }
  0x99   :  { %v270_v51 = vpack.c.b16 %v269_v50, %v269_v50  ;;  %412 = vmatpush.bf16.msrb.mxu1 %v731_v18  ;;  %v289_v13 = vpack.c.b16 %v288_v12, %v288_v12 }
  0x9b   :  { %592 = vmatmul.msk.bf16.vlgmr.msra.gmra.mxu0 %vm106_vm1, %v270_v51 }
  0x9c   :  { %534 = vmatpush.bf16.msra.mxu2 %v738_v20  ;;  %484 = vmatpush.bf16.msra.mxu0 %v731_v18 }
  0x9d   :  { %413 = vmatpush.bf16.msrb.mxu1 %v738_v20 }
  0x9e   :  { %v798_v21 = vpop.f32.mrf.mxu2 }
  0x9f   :  { %v239_v48 = vadd.f32 %v816_v5, %v798_v21 }
  0xa0   :  { %485 = vmatpush.bf16.msra.mxu0 %v738_v20 }
  0xa1   :  { %v822_v43 = vpop.f32.mrf.mxu3 }
  0xa6   :  { %v240_v25 = vpop.f32.mrf.mxu2 }
  0xa8   :  { %593 = vmatmul.msk.bf16.vlgmr.msra.gmra.mxu1 %vm106_vm1, %v289_v13 }
  0xa9   :  { %v260_v47 = vpop.f32.mrf.mxu3  ;;  %508 = vmatpush.bf16.msra.mxu1 %v731_v18 }
  0xad   :  { %509 = vmatpush.bf16.msra.mxu1 %v738_v20 }
  0xfb   :  { %v138_v52 = vpop.f32.mrf.mxu1 }
  0xfc   :  { %v139_v59 = vadd.f32 %v816_v5, %v138_v52 }
  0xfd   :  { %v198_v54 = vpop.f32.mrf.mxu0 }
 0x103   :  { %v140_v53 = vpop.f32.mrf.mxu1 }
 0x105   :  { %v200_v58 = vpop.f32.mrf.mxu0 }
 0x115   :  { %v218_v16 = vpop.f32.mrf.mxu1 }
 0x118   :  { %v845_v14 = vpop.f32.mrf.mxu0 }
 0x11a   :  { %v342_v37 = vpop.f32.mrf.mxu2 }
 0x11b   :  { %v346_v38 = vadd.f32 %v342_v37, %v120_v36 }
 0x11d   :  { %625 = vtanh.f32 %v346_v38  ;;  %v220_v17 = vpop.f32.mrf.mxu1 }
 0x11e   :  { %v284_v17 = vadd.f32 %v816_v5, %v845_v14 }
 0x120   :  { %v285_v15 = vpop.f32.mrf.mxu0 }
 0x122   :  { %v344_v39 = vpop.f32.mrf.mxu2 }
 0x123   :  { %v626_v40 = vpop.eup %625 }
 0x124   :  { %v353_v41 = vmul.f32 %v626_v40, %v351_v61 }
 0x126   :  { %v354_v42 = vpack.c.bf16 %v353_v41, %v353_v41  ;;  %v219_v41 = vadd.f32 %v816_v5, %v218_v16 }
 0x128   :  { %603 = vmatmul.msk.bf16.vlgmr.msra.gmra.mxu3 %vm329_vm2, %v354_v42 }
 0x129   :  { %562 = vmatpush.bf16.msra.mxu3 %v731_v18  ;;  %v851_v18 = vpop.f32.mrf.mxu1 }
 0x12a   :  { %v303_v14 = vadd.f32 %v816_v5, %v851_v18 }
 0x12d   :  { %563 = vmatpush.bf16.msra.mxu3 %v738_v20 }
 0x131   :  { %v304_v20 = vpop.f32.mrf.mxu1 }
 0x1ab   :  { %v367_v60 = vpop.f32.mrf.mxu3 }
 0x1ac   :  { %v371_v61 = vadd.f32 %v367_v60, %v139_v59 }
 0x1ae   :  { %627 = vtanh.f32 %v371_v61 }
 0x1b3   :  { %v369_v63 = vpop.f32.mrf.mxu3 }
 0x1b4   :  { %v628_v6 = vpop.eup %627  ;;  %v259_v63 = vadd.f32 %v816_v5, %v822_v43 }
 0x1b5   :  { %v377_v8 = vmul.f32 %v628_v6, %v771_v62  ;;  %v159_v62 = vadd.f32 %v816_v5, %v767_v55 }
 0x1b7   :  { %v378_v7 = vpack.c.bf16 %v377_v8, %v377_v8 }
 0x1b9   :  { %604 = vmatmul.msk.bf16.vlgmr.msrb.gmra.mxu0 %vm329_vm2, %v378_v7 }
 0x236   :  { %v391_v19 = vpop.f32.mrf.mxu0 }
 0x237   :  { %v395_v22 = vadd.f32 %v391_v19, %v159_v62 }
 0x239   :  { %629 = vtanh.f32 %v395_v22 }
 0x23e   :  { %v393_v25 = vpop.f32.mrf.mxu0 }
 0x23f   :  { %v630_v26 = vpop.eup %629 }
 0x240   :  { %v401_v27 = vmul.f32 %v630_v26, %v774_v0  ;;  %v199_v0 = vadd.f32 %v816_v5, %v198_v54  ;;  %v52_v54 = vpop.permute.xlu1 %51 }
 0x241   :  { %v60_v2 = vmul.f32 %v749_v23, %v52_v54 }
 0x242   :  { %v402_v28 = vpack.c.bf16 %v401_v27, %v401_v27 }
 0x243   :  { %v68_v56 = vadd.f32 %v755_v24, %v60_v2 }
 0x244   :  { %605 = vmatmul.msk.bf16.vlgmr.msrb.gmra.mxu1 %vm329_vm2, %v402_v28 }
 0x245   :  { %v72_v57 = vmax.f32 %v68_v56, 0.0 }
 0x247   :  { %v76_v58 = vsub.f32 0.0, %v72_v57 }
 0x249   :  { %v83_v60 = vmul.f32 1.442695, %v76_v58 }
 0x2c1   :  { %v415_v31 = vpop.f32.mrf.mxu1 }
 0x2c2   :  { %v419_v32 = vadd.f32 %v415_v31, %v179_v29 }
 0x2c4   :  { %631 = vtanh.f32 %v419_v32 }
 0x2c9   :  { %v417_v55 = vpop.f32.mrf.mxu1 }
 0x2ca   :  { %v632_v33 = vpop.eup %631 }
 0x2cb   :  { %v425_v34 = vmul.f32 %v632_v33, %v777_v1 }
 0x2cd   :  { %v426_v35 = vpack.c.bf16 %v425_v34, %v425_v34 }
 0x2cf   :  { %606 = vmatmul.msk.bf16.vlgmr.msrb.gmra.mxu2 %vm329_vm2, %v426_v35 }
 0x352   :  { %v439_v36 = vpop.f32.mrf.mxu2 }
 0x353   :  { %v443_v37 = vadd.f32 %v439_v36, %v199_v0 }
 0x355   :  { %633 = vtanh.f32 %v443_v37 }
 0x35a   :  { %v441_v38 = vpop.f32.mrf.mxu2 }
 0x35b   :  { %v634_v39 = vpop.eup %633 }
 0x35c   :  { %v449_v40 = vmul.f32 %v634_v39, %v780_v3 }
 0x35e   :  { %v450_v30 = vpack.c.bf16 %v449_v40, %v449_v40 }
 0x360   :  { %607 = vmatmul.msk.bf16.vlgmr.msrb.gmra.mxu3 %vm329_vm2, %v450_v30 }
 0x3e3   :  { %v463_v42 = vpop.f32.mrf.mxu3 }
 0x3e4   :  { %v467_v44 = vadd.f32 %v463_v42, %v219_v41 }
 0x3e6   :  { %635 = vtanh.f32 %v467_v44 }
 0x3eb   :  { %v465_v1 = vpop.f32.mrf.mxu3 }
 0x3ec   :  { %v636_v45 = vpop.eup %635 }
 0x3ed   :  { %v473_v46 = vmul.f32 %v636_v45, %v783_v4  ;;  %v42_v4 = vpop.permute.xlu1 %41 }
 0x3ee   :  { %v58_v11 = vmul.f32 %v749_v23, %v42_v4 }
 0x3ef   :  { %v474_v47 = vpack.c.bf16 %v473_v46, %v473_v46 }
 0x3f0   :  { %v66_v21 = vadd.f32 %v755_v24, %v58_v11 }
 0x3f1   :  { %608 = vmatmul.msk.bf16.vlgmr.msra.gmra.mxu0 %vm329_vm2, %v474_v47 }
 0x3f2   :  { %v70_v59 = vmax.f32 %v66_v21, 0.0 }
 0x3f4   :  { %v74_v61 = vsub.f32 0.0, %v70_v59 }
 0x46e   :  { %v487_v49 = vpop.f32.mrf.mxu0 }
 0x46f   :  { %v491_v3 = vadd.f32 %v487_v49, %v239_v48 }
 0x471   :  { %637 = vtanh.f32 %v491_v3 }
 0x472   :  { %639 = vpow2.f32 %v83_v60 }
 0x476   :  { %v489_v50 = vpop.f32.mrf.mxu0 }
 0x477   :  { %v638_v51 = vpop.eup %637 }
 0x478   :  { %v497_v52 = vmul.f32 %v638_v51, %v786_v10  ;;  %v79_v10 = vmul.f32 1.442695, %v74_v61  ;;  %v640_v7 = vpop.eup %639 }
 0x479   :  { %v519_v9 = vrot.slane %v640_v7, 7 }
 0x47a   :  { %v498_v53 = vpack.c.bf16 %v497_v52, %v497_v52  ;;  %641 = vpow2.f32 %v79_v10 }
 0x47c   :  { %609 = vmatmul.msk.bf16.vlgmr.msra.gmra.mxu1 %vm329_vm2, %v498_v53 }
 0x480   :  { %v642_v12 = vpop.eup %641 }
 0x481   :  { %v520_v24 = vsel %vm97_vm0, %v519_v9, %v642_v12  ;;  %v548_v19 = vrot.slane %v642_v12, 1 }
 0x483   :  { %v549_v26 = vsel %vm97_vm0, %v640_v7, %v548_v19 }
 0x4f9   :  { %v511_v6 = vpop.f32.mrf.mxu1 }
 0x4fa   :  { %v515_v8 = vadd.f32 %v511_v6, %v259_v63 }
 0x4fc   :  { %643 = vtanh.f32 %v515_v8 }
 0x501   :  { %v513_v23 = vpop.f32.mrf.mxu1 }
 0x502   :  { %v644_v13 = vpop.eup %643 }
 0x503   :  { %v522_v15 = vmul.f32 %v644_v13, %v520_v24 }
 0x505   :  { %v523_v16 = vpack.c.bf16 %v522_v15, %v522_v15 }
 0x507   :  { %610 = vmatmul.msk.bf16.vlgmr.msra.gmra.mxu2 %vm329_vm2, %v523_v16 }
 0x58a   :  { %v536_v62 = vpop.f32.mrf.mxu2 }
 0x58b   :  { %v540_v43 = vadd.f32 %v536_v62, %v284_v17 }
 0x58d   :  { %645 = vtanh.f32 %v540_v43 }
 0x592   :  { %v538_v22 = vpop.f32.mrf.mxu2 }
 0x593   :  { %v646_v25 = vpop.eup %645 }
 0x594   :  { %v543_v27 = vrot.slane %v646_v25, 1  ;;  %v551_v28 = vmul.f32 %v646_v25, %v549_v26  ;;  %546 = vst.msk [vmem:[%s903_s6] sm:$0x1] %vm545_vm3, %v646_v25 }
 0x596   :  { %v552_v20 = vpack.c.bf16 %v551_v28, %v551_v28  ;;  %547 = vst.msk [vmem:[%s903_s6 + $0x2] sm:$0x1] %vm545_vm3, %v543_v27 }
 0x598   :  { %611 = vmatmul.msk.bf16.vlgmr.msra.gmra.mxu3 %vm329_vm2, %v552_v20 }
 0x61b   :  { %v565_v29 = vpop.f32.mrf.mxu3 }
 0x61c   :  { %v569_v31 = vadd.f32 %v565_v29, %v303_v14 }
 0x61e   :  { %647 = vtanh.f32 %v569_v31 }
 0x623   :  { %v567_v32 = vpop.f32.mrf.mxu3 }
 0x624   :  { %v648_v55 = vpop.eup %647 }
 0x625   :  { %v572_v33 = vrot.slane %v648_v55, 1  ;;  %574 = vst.msk [vmem:[%s903_s6 + $0x1] sm:$0x1] %vm545_vm3, %v648_v55 }
 0x627   :  { %575 = vst.msk [vmem:[%s903_s6 + $0x3] sm:$0x1] %vm545_vm3, %v572_v33 }

// kernel: forward.5
= control target key start
LH: loop header
LB: loop body
LE: loop exit
PB: predicated region body
PF: predicated region fallthrough
CT: control target
= control target key end

     0   :  { %vm96_vm0 = vcmask 261120   ;;  %v114_v2 = vlaneseq  ;;  %v832_v7 = vmov 0   ;;  %vm75_vm1 = vcmask 1041409   ;;  %s834_s17 = smov 64   ;;  %s835_s18 = smov 96   ;;  %s1070_s4 = inlined_call_operand.vmem [shape: bf16[32,4], index: 4, kind: input, shape index: {}]   ;;  %s1071_s0 = inlined_call_operand.vmem [shape: f32[4,3,32], index: 0, kind: input, shape index: {}]   ;;  %s1072_s5 = inlined_call_operand.vmem [shape: f32[4,1], index: 5, kind: input, shape index: {}]   ;;  %s1073_s3 = inlined_call_operand.vmem [shape: bf16[4,32], index: 3, kind: input, shape index: {}]   ;;  %s1074_s8 = inlined_call_operand.vmem [shape: bf16[128,64], index: 8, kind: input, shape index: {}]   ;;  %s1075_s6 = inlined_call_operand.vmem [shape: bf16[16,64], index: 6, kind: input, shape index: {}]   ;;  %s1076_s7 = inlined_call_operand.vmem [shape: bf16[32,64], index: 7, kind: input, shape index: {}]   ;;  %s1077_s1 = inlined_call_operand.vmem [shape: f32[4,16], index: 1, kind: input, shape index: {}]   ;;  %s1078_s9 = inlined_call_operand.vmem [shape: bf16[32,64], index: 9, kind: input, shape index: {}]   ;;  %s1079_s2 = inlined_call_operand.vmem [shape: f32[4,32], index: 2, kind: input, shape index: {}]   ;;  %s1080_s10 = inlined_call_operand.vmem [shape: f32[1,64], index: 10, kind: input, shape index: {}]   ;;  %s1081_s12 = inlined_call_operand.vmem [shape: f32[1,32], index: 12, kind: input, shape index: {}]   ;;  %s1082_s11 = inlined_call_operand.vmem [shape: bf16[64,32], index: 11, kind: input, shape index: {}]   ;;  %s1083_s13 = inlined_call_operand.vmem [shape: bf16[32,1], index: 13, kind: input, shape index: {}]   ;;  %s1084_s14 = inlined_call_operand.<no memory space> [shape: f32[1,1], index: 14, kind: input, shape index: {}]   ;;  %s1085_s15 = inlined_call_operand.vmem [shape: f32[4,1], index: 15, kind: output, shape index: {}]  }
   0x1   :  { %v771_v0 = vld [vmem:[%s1070_s4 + $0x8] sm:$0xff]  ;;  %v53_v1 = vld [vmem:[%s1071_s0] sm:$0x7]  ;;  %v54_v3 = vld [vmem:[%s1071_s0 + $0x4] sm:$0x7]  ;;  %797 = vset.pattern.permute.xlu1 %v832_v7  ;;  %vm78_vm2 = vcmask 1042434  }
   0x2   :  { %v55_v4 = vld [vmem:[%s1071_s0 + $0x8] sm:$0x7]  ;;  %v56_v5 = vld [vmem:[%s1071_s0 + $0xc] sm:$0x7]  ;;  %v932_v6 = vpack.c.bf16 %v53_v1, %v53_v1  ;;  %106 = vmatpush.bf16.msra.mxu0 %v771_v0  ;;  %v770_v8 = vld [vmem:[%s1070_s4] sm:$0xff]  ;;  %v937_v9 = vpack.c.bf16 %v54_v3, %v54_v3  ;;  %v115_v13 = vshrl.u32 %v114_v2, 7 }
   0x3   :  { %v939_v10 = vpack.c.bf16 %v55_v4, %v55_v4  ;;  %v941_v11 = vpack.c.bf16 %v56_v5, %v56_v5  ;;  %v208_v12 = vld [vmem:[%s1072_s5] sm:$0xf]  ;;  %vm81_vm3 = vcmask 1043459   ;;  %vm230_vm4 = vcmask 19456   ;;  %s836_s19 = smov 32  }
   0x4   :  { %v70_v14 = vunpack.c.l.b16 %v932_v6  ;;  %211 = vperm.xlu1 %797, %v208_v12   ;;  %v145_v15 = vsel %vm96_vm0, %v932_v6, 0  ;;  %v71_v16 = vunpack.c.l.b16 %v937_v9  ;;  %799 = vset.pattern.permute.xlu2 %v115_v13  ;;  %v161_v20 = vsel %vm96_vm0, %v937_v9, 0  ;;  %v61_v28 = vld [vmem:[%s1073_s3] sm:$0x3] }
   0x5   :  { %v72_v17 = vunpack.c.l.b16 %v939_v10  ;;  %v73_v18 = vunpack.c.l.b16 %v941_v11  ;;  %v193_v19 = vsel %vm96_vm0, %v941_v11, 0  ;;  %154 = vmatpush.bf16.xpose.msra.mxu1 %v145_v15  ;;  %v177_v21 = vsel %vm96_vm0, %v939_v10, 0  ;;  %796 = vset.pattern.permute.xlu0 %v115_v13 }
   0x6   :  { %107 = vmatpush.bf16.msra.mxu0 %v770_v8  ;;  %v74_v22 = vrot.slane %v71_v16, 7  ;;  %170 = vmatpush.bf16.xpose.msra.mxu2 %v161_v20  ;;  %vm259_vm5 = vcmask 1040384   ;;  %vm260_vm6 = vcmask 1041408   ;;  %vm255_vm7 = vcmask 23552  }
   0x7   :  { %v77_v23 = vrot.slane %v72_v17, 6  ;;  %v80_v24 = vrot.slane %v73_v18, 5  ;;  %186 = vmatpush.bf16.xpose.msra.mxu3 %v177_v21  ;;  %vm414_vm8 = vcmask 130048   ;;  %vm371_vm9 = vcmask 523264  }
   0x8   :  { %v76_v25 = vsel %vm75_vm1, %v74_v22, %v70_v14  ;;  %vm373_vm10 = vcmask 785408  }
   0x9   :  { %v79_v26 = vsel %vm78_vm2, %v77_v23, %v76_v25 }
   0xa   :  { %202 = vmatpush.bf16.xpose.msrb.mxu0 %v193_v19  ;;  %v82_v27 = vsel %vm81_vm3, %v80_v24, %v79_v26 }
   0xb   :  { %v964_v29 = vpack.c.b16 %v82_v27, %v82_v27 }
   0xc   :  { %680 = vmatmul.msk.bf16.vlgmr.msra.gmra.mxu1 %vm96_vm0, %v61_v28  ;;  %798 = vset.pattern.permute.xlu1 %v115_v13  ;;  %v833_v13 = vmov 65535  }
   0xd   :  { %679 = vmatmul.msk.bf16.vlgmr.msra.gmra.mxu0 %vm96_vm0, %v964_v29  ;;  %681 = vmatmul.msk.bf16.vlgmr.msra.gmra.mxu2 %vm96_vm0, %v61_v28  ;;  %v261_v14 = vsel %vm259_vm5, 4294967295, %v833_v13  ;;  %v773_v13 = vld [vmem:[%s1076_s7] sm:$0xff] }
   0xe   :  { %682 = vmatmul.msk.bf16.vlgmr.msra.gmra.mxu3 %vm96_vm0, %v61_v28  ;;  %v262_v15 = vsel %vm260_vm6, %v261_v14, 0  ;;  %v779_v14 = vld [vmem:[%s1074_s8 + $0x20] sm:$0xff] }
   0xf   :  { %v281_v16 = vand.u32 %v262_v15, %v937_v9  ;;  %v263_v17 = vand.u32 %v262_v15, %v932_v6  ;;  %v299_v18 = vand.u32 %v262_v15, %v939_v10  ;;  %v317_v19 = vand.u32 %v262_v15, %v941_v11  ;;  %v778_v15 = vld [vmem:[%s1074_s8 + $0x18] sm:$0xff] }
  0x11   :  { %290 = vmatpush.bf16.msrb.mxu2 %v281_v16  ;;  %272 = vmatpush.bf16.msrb.mxu1 %v263_v17  ;;  %v777_v16 = vld [vmem:[%s1074_s8 + $0x10] sm:$0xff]  ;;  %v776_v17 = vld [vmem:[%s1074_s8 + $0x8] sm:$0xff] }
  0x12   :  { %308 = vmatpush.bf16.msrb.mxu3 %v299_v18  ;;  %326 = vmatpush.bf16.msra.mxu0 %v317_v19  ;;  %v775_v18 = vld [vmem:[%s1074_s8] sm:$0xff] }
  0x13   :  { %v783_v19 = vld [vmem:[%s1078_s9] sm:$0xff] }
  0x1d   :  { %683 = vmatmul.msk.bf16.vlgmr.msrb.gmra.mxu0 %vm96_vm0, %v61_v28 }
  0x76   :  { %v212_v44 = vpop.permute.xlu1 %211 }
  0x89   :  { %v156_v38 = vpop.f32.mrf.mxu1 }
  0x8a   :  { %v109_v30 = vpop.f32.mrf.mxu0 }
  0x8b   :  { %v134_v31 = vperm.slane %v109_v30, 3  ;;  %v120_v32 = vperm.slane %v109_v30, 1  ;;  %v113_v33 = vperm.slane %v109_v30, 0  ;;  %v127_v35 = vperm.slane %v109_v30, 2 }
  0x8d   :  { %139 = vperm.xlu2 %799, %v134_v31   ;;  %125 = vperm.xlu0 %796, %v120_v32  }
  0x8e   :  { %118 = vperm.xlu1 %798, %v113_v33   ;;  %v782_v33 = vld [vmem:[%s1074_s8 + $0x38] sm:$0xff] }
  0x8f   :  { %496 = vmatpush.bf16.msra.mxu3 %v782_v33  ;;  %v786_v33 = vld [vmem:[%s1082_s11 + $0x8] sm:$0xff] }
  0x90   :  { %v172_v37 = vpop.f32.mrf.mxu2 }
  0x91   :  { %v188_v39 = vpop.f32.mrf.mxu3  ;;  %v158_v42 = vpop.f32.mrf.mxu1 }
  0x92   :  { %v111_v34 = vpop.f32.mrf.mxu0 }
  0x95   :  { %132 = vperm.xlu0 %796, %v127_v35  }
  0x98   :  { %v174_v41 = vpop.f32.mrf.mxu2 }
  0x99   :  { %v190_v43 = vpop.f32.mrf.mxu3 }
  0x9a   :  { %v204_v36 = vpop.f32.mrf.mxu0 }
  0x9d   :  { %800 = vset.pattern.permute.xlu0 %v832_v7 }
  0xa2   :  { %v206_v40 = vpop.f32.mrf.mxu0 }
  0xe7   :  { %v140_v45 = vpop.permute.xlu2 %139 }
  0xe8   :  { %v205_v46 = vadd.f32 %v204_v36, %v140_v45 }
  0xea   :  { %v217_v51 = vadd.f32 %v212_v44, %v205_v46 }
  0xff   :  { %v126_v47 = vpop.permute.xlu0 %125 }
 0x100   :  { %v173_v48 = vadd.f32 %v172_v37, %v126_v47  ;;  %v119_v49 = vpop.permute.xlu1 %118 }
 0x101   :  { %v157_v50 = vadd.f32 %v156_v38, %v119_v49 }
 0x102   :  { %v215_v52 = vadd.f32 %v212_v44, %v173_v48 }
 0x103   :  { %v214_v53 = vadd.f32 %v212_v44, %v157_v50 }
 0x104   :  { %804 = vtanh.f32 %v215_v52 }
 0x105   :  { %806 = vtanh.f32 %v214_v53 }
 0x106   :  { %808 = vtanh.f32 %v217_v51 }
 0x107   :  { %v133_v54 = vpop.permute.xlu0 %132 }
 0x108   :  { %v189_v55 = vadd.f32 %v188_v39, %v133_v54 }
 0x10a   :  { %v805_v56 = vpop.eup %804  ;;  %v216_v57 = vadd.f32 %v212_v44, %v189_v55 }
 0x10b   :  { %v807_v58 = vpop.eup %806  ;;  %v224_v59 = vmul.f32 1.442695, %v805_v56 }
 0x10c   :  { %v809_v60 = vpop.eup %808  ;;  %v222_v61 = vmul.f32 1.442695, %v807_v58  ;;  %810 = vtanh.f32 %v216_v57 }
 0x10d   :  { %812 = vpow2.f32 %v224_v59  ;;  %v228_v62 = vmul.f32 1.442695, %v809_v60 }
 0x10e   :  { %814 = vpow2.f32 %v222_v61 }
 0x10f   :  { %816 = vpow2.f32 %v228_v62 }
 0x112   :  { %v811_v63 = vpop.eup %810 }
 0x113   :  { %v813_v0 = vpop.eup %812  ;;  %v226_v1 = vmul.f32 1.442695, %v811_v63 }
 0x114   :  { %v815_v2 = vpop.eup %814  ;;  %v234_v3 = vsel %vm230_vm4, %v813_v0, 0.0 }
 0x115   :  { %818 = vpow2.f32 %v226_v1  ;;  %235 = vadd.xlane.f32.xlu2 %v234_v3  ;;  %v231_v4 = vsel %vm230_vm4, %v815_v2, 0.0  ;;  %v817_v5 = vpop.eup %816  ;;  %v772_v3 = vld [vmem:[%s1075_s6] sm:$0xff] }
 0x116   :  { %232 = vadd.xlane.f32.xlu1 %v231_v4  ;;  %v240_v12 = vsel %vm230_vm4, %v817_v5, 0.0  ;;  %v780_v4 = vld [vmem:[%s1074_s8 + $0x28] sm:$0xff]  ;;  %425 = vmatpush.bf16.msra.mxu2 %v772_v3 }
 0x11b   :  { %v819_v7 = vpop.eup %818 }
 0x11c   :  { %v237_v8 = vsel %vm230_vm4, %v819_v7, 0.0 }
 0x11d   :  { %238 = vadd.xlane.f32.xlu0 %v237_v8  ;;  %241 = vadd.xlane.f32.xlu2 %v240_v12  ;;  %v784_v8 = vld [vmem:[%s1078_s9 + $0x8] sm:$0xff] }
 0x11e   :  { %537 = vmatpush.bf16.msrb.mxu0 %v784_v8 }
 0x122   :  { %538 = vmatpush.bf16.msrb.mxu0 %v783_v19 }
 0x188   :  { %v236_v20 = vpop.xlane.xlu2 %235 }
 0x189   :  { %820 = vrcp.f32 %v236_v20  ;;  %v233_v21 = vpop.xlane.xlu1 %232 }
 0x18a   :  { %822 = vrcp.f32 %v233_v21 }
 0x18f   :  { %v821_v22 = vpop.eup %820 }
 0x190   :  { %v823_v23 = vpop.eup %822  ;;  %v248_v24 = vmul.f32 %v821_v22, %v813_v0  ;;  %v239_v25 = vpop.xlane.xlu0 %238 }
 0x191   :  { %v242_v26 = vpop.xlane.xlu2 %241  ;;  %v247_v9 = vmul.f32 %v823_v23, %v815_v2  ;;  %824 = vrcp.f32 %v239_v25  ;;  %v781_v2 = vld [vmem:[%s1074_s8 + $0x30] sm:$0xff] }
 0x192   :  { %826 = vrcp.f32 %v242_v26  ;;  %v252_v6 = vpack.c.bf16 %v248_v24, %v248_v24  ;;  %497 = vmatpush.bf16.msra.mxu3 %v781_v2 }
 0x193   :  { %v251_v10 = vpack.c.bf16 %v247_v9, %v247_v9 }
 0x194   :  { %685 = vmatmul.msk.bf16.vlgmr.msrb.gmra.mxu2 %vm255_vm7, %v252_v6  ;;  %v788_v6 = vld [vmem:[%s1082_s11 + $0x18] sm:$0xff] }
 0x195   :  { %684 = vmatmul.msk.bf16.vlgmr.msrb.gmra.mxu1 %vm255_vm7, %v251_v10 }
 0x196   :  { %498 = vmatpush.bf16.msra.mxu3 %v780_v4 }
 0x197   :  { %v825_v27 = vpop.eup %824 }
 0x198   :  { %v827_v11 = vpop.eup %826  ;;  %v249_v28 = vmul.f32 %v825_v27, %v819_v7  ;;  %v375_v7 = vld [vmem:[%s1077_s1] sm:$0xf] }
 0x199   :  { %v250_v30 = vmul.f32 %v827_v11, %v817_v5  ;;  %v774_v5 = vld [vmem:[%s1076_s7 + $0x8] sm:$0xff]  ;;  %v376_v12 = vpack.c.bf16 %v375_v7, %v375_v7 }
 0x19a   :  { %v253_v31 = vpack.c.bf16 %v249_v28, %v249_v28  ;;  %401 = vmatpush.bf16.msra.mxu1 %v774_v5  ;;  %499 = vmatpush.bf16.msra.mxu3 %v779_v14 }
 0x19b   :  { %v254_v32 = vpack.c.bf16 %v250_v30, %v250_v30 }
 0x19c   :  { %686 = vmatmul.msk.bf16.vlgmr.msrb.gmra.mxu3 %vm255_vm7, %v253_v31  ;;  %v787_v31 = vld [vmem:[%s1082_s11 + $0x10] sm:$0xff] }
 0x19d   :  { %687 = vmatmul.msk.bf16.vlgmr.msra.gmra.mxu0 %vm255_vm7, %v254_v32 }
 0x19e   :  { %402 = vmatpush.bf16.msra.mxu1 %v773_v13  ;;  %500 = vmatpush.bf16.msra.mxu3 %v778_v15 }
 0x1a2   :  { %501 = vmatpush.bf16.msra.mxu3 %v777_v16  ;;  %597 = vmatpush.bf16.msrb.mxu1 %v788_v6 }
 0x1a4   :  { %701 = vmatmul.msk.bf16.vlgmr.msra.gmra.mxu2 %vm414_vm8, %v376_v12 }
 0x1a5   :  { %696 = vmatmul.msk.bf16.vlgmr.msra.gmra.mxu1 %vm96_vm0, %v964_v29  ;;  %v510_v29 = vld [vmem:[%s1079_s2] sm:$0xf] }
 0x1a6   :  { %502 = vmatpush.bf16.msra.mxu3 %v776_v17  ;;  %v511_v20 = vpack.c.bf16 %v510_v29, %v510_v29  ;;  %598 = vmatpush.bf16.msrb.mxu1 %v787_v31 }
 0x1aa   :  { %503 = vmatpush.bf16.msra.mxu3 %v775_v18  ;;  %599 = vmatpush.bf16.msrb.mxu1 %v786_v33 }
 0x1ad   :  { %742 = vmatmul.msk.bf16.vlgmr.msrb.gmra.mxu0 %vm96_vm0, %v511_v20 }
 0x212   :  { %v274_v34 = vpop.f32.mrf.mxu1 }
 0x213   :  { %v343_v41 = vrot.slane %v274_v34, 1  ;;  %v352_v42 = vrot.slane %v274_v34, 2  ;;  %v361_v44 = vrot.slane %v274_v34, 3 }
 0x217   :  { %v292_v35 = vpop.f32.mrf.mxu2 }
 0x218   :  { %v336_v36 = vrot.slane %v292_v35, 7  ;;  %v353_v40 = vrot.slane %v292_v35, 1  ;;  %v362_v43 = vrot.slane %v292_v35, 2  ;;  %v344_v45 = vsel %vm75_vm1, %v292_v35, %v343_v41  ;;  %v790_v35 = vld [vmem:[%s1083_s13 + $0x8] sm:$0xff] }
 0x219   :  { %639 = vmatpush.bf16.msrb.mxu2 %v790_v35 }
 0x21a   :  { %v276_v37 = vpop.f32.mrf.mxu1  ;;  %v328_v38 = vpop.f32.mrf.mxu0  ;;  %v337_v39 = vsel %vm75_vm1, %v336_v36, %v274_v34  ;;  %v354_v49 = vsel %vm75_vm1, %v353_v40, %v352_v42  ;;  %v363_v57 = vsel %vm75_vm1, %v362_v43, %v361_v44  ;;  %v785_v34 = vld [vmem:[%s1082_s11] sm:$0xff] }
 0x21b   :  { %v356_v46 = vrot.slane %v328_v38, 7  ;;  %v340_v54 = vrot.slane %v328_v38, 5  ;;  %v347_v55 = vrot.slane %v328_v38, 6  ;;  %600 = vmatpush.bf16.msrb.mxu1 %v785_v34 }
 0x21f   :  { %v294_v47 = vpop.f32.mrf.mxu2  ;;  %v310_v48 = vpop.f32.mrf.mxu3 }
 0x220   :  { %v338_v50 = vrot.slane %v310_v48, 6  ;;  %v345_v51 = vrot.slane %v310_v48, 7  ;;  %v364_v52 = vrot.slane %v310_v48, 1  ;;  %v355_v53 = vsel %vm78_vm2, %v310_v48, %v354_v49  ;;  %v802_v48 = vld [vmem:[%s1081_s12] ss:$0 sm:$0xff] }
 0x221   :  { %v357_v56 = vsel %vm81_vm3, %v356_v46, %v355_v53  ;;  %v789_v46 = vld [vmem:[%s1083_s13] sm:$0xff]  ;;  %v20_v47 = vstv %s1084_s14 }
 0x222   :  { %v330_v58 = vpop.f32.mrf.mxu0  ;;  %358 = vrot.lane.b32.xlu0 %v357_v56, %s834_s17  ;;  %v365_v59 = vsel %vm78_vm2, %v364_v52, %v363_v57  ;;  %v346_v60 = vsel %vm78_vm2, %v345_v51, %v344_v45  ;;  %v339_v61 = vsel %vm78_vm2, %v338_v50, %v337_v39  ;;  %v404_v10 = vpop.f32.mrf.mxu1  ;;  %v801_v39 = vld [vmem:[%s1080_s10] ss:$0 sm:$0xff]  ;;  %640 = vmatpush.bf16.msrb.mxu2 %v789_v46 }
 0x223   :  { %v366_v62 = vsel %vm81_vm3, %v328_v38, %v365_v59  ;;  %v348_v63 = vsel %vm81_vm3, %v347_v55, %v346_v60  ;;  %v341_v0 = vsel %vm81_vm3, %v340_v54, %v339_v61  ;;  %21 = vst [vmem:[#allocation2] sm:$0x1] %v20_v47 }
 0x224   :  { %367 = vrot.lane.b32.xlu1 %v366_v62, %s835_s18  ;;  %349 = vrot.lane.b32.xlu2 %v348_v63, %s836_s19 }
 0x227   :  { %v312_v1 = vpop.f32.mrf.mxu3  ;;  %v427_v27 = vpop.f32.mrf.mxu2 }
 0x228   :  { %v428_v36 = vadd.f32 %v427_v27, %v404_v10 }
 0x22a   :  { %v406_v11 = vpop.f32.mrf.mxu1  ;;  %v540_v30 = vpop.f32.mrf.mxu0  ;;  %v803_v55 = vld [vmem:[#allocation2] ss:$0 sm:$0xff] }
 0x22f   :  { %v429_v28 = vpop.f32.mrf.mxu2 }
 0x232   :  { %v542_v32 = vpop.f32.mrf.mxu0 }
 0x27e   :  { %v350_v21 = vpop.permute.xlu2 %349 }
 0x27f   :  { %v370_v22 = vsel %vm96_vm0, %v341_v0, %v350_v21 }
 0x294   :  { %v359_v23 = vpop.permute.xlu0 %358 }
 0x295   :  { %v372_v24 = vsel %vm371_vm9, %v370_v22, %v359_v23 }
 0x296   :  { %v368_v25 = vpop.permute.xlu1 %367 }
 0x297   :  { %v374_v26 = vsel %vm373_vm10, %v372_v24, %v368_v25 }
 0x298   :  { %v431_v9 = vpack.c.bf16 %v374_v26, %v374_v26 }
 0x29a   :  { %504 = vmatmul.bf16.vlgmr.msra.gmra.mxu3 %v431_v9 }
 0x31d   :  { %v505_v37 = vpop.f32.mrf.mxu3 }
 0x31e   :  { %v509_v38 = vadd.f32 %v505_v37, %v428_v36 }
 0x320   :  { %v544_v40 = vadd.f32 %v540_v30, %v509_v38 }
 0x322   :  { %v549_v41 = vadd.f32 %v801_v39, %v544_v40 }
 0x324   :  { %vm550_vm11 = vcmp.gt.f32.partialorder %v549_v41, 0.0  ;;  %v551_v42 = vmul.f32 0.01, %v549_v41 }
 0x325   :  { %v507_v43 = vpop.f32.mrf.mxu3 }
 0x326   :  { %v552_v44 = vsel %vm550_vm11, %v549_v41, %v551_v42 }
 0x327   :  { %v553_v45 = vpack.c.bf16 %v552_v44, %v552_v44 }
 0x329   :  { %759 = vmatmul.msk.bf16.vlgmr.msrb.gmra.mxu1 %vm371_vm9, %v553_v45 }
 0x3a6   :  { %v602_v49 = vpop.f32.mrf.mxu1 }
 0x3a7   :  { %v603_v50 = vadd.f32 %v802_v48, %v602_v49 }
 0x3a9   :  { %vm606_vm12 = vcmp.gt.f32.partialorder %v603_v50, 0.0  ;;  %v607_v51 = vmul.f32 0.01, %v603_v50 }
 0x3ab   :  { %v608_v52 = vsel %vm606_vm12, %v603_v50, %v607_v51 }
 0x3ac   :  { %v609_v53 = vpack.c.bf16 %v608_v52, %v608_v52 }
 0x3ae   :  { %v604_v54 = vpop.f32.mrf.mxu1  ;;  %768 = vmatmul.msk.bf16.vlgmr.msrb.gmra.mxu2 %vm96_vm0, %v609_v53  ;;  %vm665_vm0 = vcmask 3072  }
 0x431   :  { %v642_v56 = vpop.f32.mrf.mxu2 }
 0x432   :  { %v643_v57 = vadd.f32 %v803_v55, %v642_v56 }
 0x434   :  { %v769_v58 = vmul.f32 -1.442695, %v643_v57 }
 0x436   :  { %828 = vpow2.f32 %v769_v58 }
 0x439   :  { %v644_v59 = vpop.f32.mrf.mxu2 }
 0x43c   :  { %v829_v60 = vpop.eup %828 }
 0x43d   :  { %v649_v61 = vadd.f32 1.0, %v829_v60 }
 0x43f   :  { %830 = vrcp.f32 %v649_v61  ;;  %v661_v1 = vand.u32 2147483648, %v649_v61  ;;  %v659_v3 = vand.u32 2147483647, %v649_v61  ;;  %vm655_vm14 = vweird.f32 %v649_v61 }
 0x441   :  { %v662_v5 = vor.u32 1.1754944e-38, %v661_v1  ;;  %vm660_vm1 = vcmp.eq.f32.partialorder %v659_v3, 8.507059e+37 }
 0x445   :  { %v831_v62 = vpop.eup %830 }
 0x446   :  { %v651_v63 = vmul.f32 %v831_v62, %v649_v61  ;;  %vm656_vm13 = vweird.f32 %v831_v62 }
 0x447   :  { %vm657_vm15 = vmor %vm655_vm14, %vm656_vm13 }
 0x448   :  { %v652_v0 = vsub.f32 1.0, %v651_v63 }
 0x44a   :  { %v653_v2 = vmul.f32 %v831_v62, %v652_v0 }
 0x44c   :  { %v654_v4 = vadd.f32 %v831_v62, %v653_v2 }
 0x44e   :  { %v658_v7 = vsel %vm657_vm15, %v831_v62, %v654_v4 }
 0x44f   :  { %v663_v8 = vsel %vm660_vm1, %v662_v5, %v658_v7 }
 0x450   :  { %666 = vst.msk [vmem:[%s1085_s15] sm:$0xf] %vm665_vm0, %v663_v8 }

</bundles_post_ra>
